<compile_context>
chip_gen: v6e
topology: v6e:2x2x1
jax: 0.10.0
libtpu: 0.0.40
codegen_flags: <defaults>
</compile_context>

<pallas_src>
import jax
import jax.numpy as jnp
import numpy as np
from jax import lax
from jax.experimental import pallas as pl
from jax.experimental.pallas import tpu as pltpu

# --- module constants (from gptopus.py) ---
N_EMBD = 192
N_HEADS = 6
HEAD_SIZE = N_EMBD // N_HEADS     # 32
HEAD_PAD = 128                    # lane-aligned per-head slot (cols 32..127 are zero)
NHP = N_HEADS * HEAD_PAD          # 768
BLOCK_SIZE = 64                   # max T (causal mask buffer size)
FF_HIDDEN = 4 * N_EMBD            # 768
LN_EPS = 1e-5                     # PyTorch nn.LayerNorm default
MAX_BATCH_BLOCK = 8               # batch elements per grid step (upper bound)


def _layernorm(x, g, b):
    """PyTorch LayerNorm over the last dim (biased variance, eps=1e-5), in f32."""
    mu = jnp.mean(x, axis=-1, keepdims=True)
    xc = x - mu
    var = jnp.mean(xc * xc, axis=-1, keepdims=True)
    return xc * lax.rsqrt(var + LN_EPS) * g + b


def _block_kernel(x_ref, g1_ref, be1_ref, wqkv_ref, wproj_ref, bproj_ref,
                  g2_ref, be2_ref, wf1_ref, bf1_ref, wf2_ref, bf2_ref,
                  o_ref, qkv_scr, attn_scr):
    """Grid = (B // BB,).  BB batch elements per step; weights resident in VMEM.

    x_ref     : (BB, T, C)          current batch block
    g1/be1    : (1, C)   f32        LayerNorm1 gamma / beta
    wqkv_ref  : (C, NHP) mm_dtype   head-padded stacked q==k==v weight (x @ W layout)
    wproj_ref : (NHP, C) mm_dtype   head-padded proj weight (x @ W layout)
    bproj_ref : (1, C)   f32
    g2/be2    : (1, C)   f32        LayerNorm2 gamma / beta
    wf1_ref   : (C, 4C)  mm_dtype   FFN first linear (x @ W layout)
    bf1_ref   : (1, 4C)  f32
    wf2_ref   : (4C, C)  mm_dtype   FFN second linear (x @ W layout)
    bf2_ref   : (1, C)   f32
    o_ref     : (BB, T, C)          output
    qkv_scr   : (BB*T, NHP) f32     fused per-head q==k==v activations (head-padded)
    attn_scr  : (BB*T, NHP) f32     concatenated head outputs (head-padded)
    """
    bb, t, c = x_ref.shape
    mm = wqkv_ref.dtype                      # MXU operand dtype (bf16 by default)
    scale = float(c) ** (-0.5)               # quirk: n_embd**-0.5, not head_size**-0.5

    x_slab = x_ref[...].reshape(bb * t, c)   # leading-dim merge: layout-preserving

    # ---------------- x + MHA(LayerNorm1(x)) ----------------
    xn1 = _layernorm(x_slab, g1_ref[...], be1_ref[...])           # f32
    # One fat (BB*T, C) x (C, NHP) matmul -> q==k==v for all heads, f32 accumulate.
    qkv_scr[...] = jnp.dot(xn1.astype(mm), wqkv_ref[...],
                           preferred_element_type=jnp.float32)

    # Causal mask built once for all heads / batch elements.
    row = lax.broadcasted_iota(jnp.int32, (t, t), 0)
    col = lax.broadcasted_iota(jnp.int32, (t, t), 1)
    causal = col <= row                                           # (T, T)

    for h in range(N_HEADS):                                      # 6 heads, static
        lo = h * HEAD_PAD
        qh = qkv_scr[:, lo:lo + HEAD_PAD]                         # (BB*T, 128), aligned
        q3 = qh.reshape(bb, t, HEAD_PAD)                          # free leading split
        # scores = q @ k^T * n_embd**-0.5, batched over BB; score path stays f32.
        s = jnp.einsum('bqd,bkd->bqk', q3, q3,
                       preferred_element_type=jnp.float32) * scale
        s = jnp.where(causal, s, -jnp.inf)                        # diag never masked
        s = s - jnp.max(s, axis=-1, keepdims=True)
        p = jnp.exp(s)
        p = p * (1.0 / jnp.sum(p, axis=-1, keepdims=True))        # exact reciprocal
        pv = jnp.einsum('bqk,bkd->bqd', p, q3,
                        preferred_element_type=jnp.float32)       # (BB, T, 128)
        attn_scr[:, lo:lo + HEAD_PAD] = pv.reshape(bb * t, HEAD_PAD)

    # One fat projection on the head-padded concatenated outputs (zero rows of
    # wproj line up with the zero pad columns, so the result is exact).
    sattn = jnp.dot(attn_scr[...].astype(mm), wproj_ref[...],
                    preferred_element_type=jnp.float32) + bproj_ref[...]
    x1 = x_slab + sattn

    # ---------------- x + FFN(LayerNorm2(x)) ----------------
    xn2 = _layernorm(x1, g2_ref[...], be2_ref[...])
    hid = jnp.dot(xn2.astype(mm), wf1_ref[...],
                  preferred_element_type=jnp.float32) + bf1_ref[...]
    hid = jnp.maximum(hid, 0.0)                                   # ReLU in f32
    ff = jnp.dot(hid.astype(mm), wf2_ref[...],
                 preferred_element_type=jnp.float32) + bf2_ref[...]

    o_ref[...] = (x1 + ff).reshape(bb, t, c).astype(o_ref.dtype)


def _pick_batch_block(B, max_bb=MAX_BATCH_BLOCK):
    """Largest divisor of B that is <= max_bb."""
    bb = min(B, max_bb)
    while B % bb:
        bb -= 1
    return bb


def transformer_block(x, params, *, matmul_dtype=jnp.bfloat16, batch_block=None):
    """x: (B, T, C). params in PyTorch (out, in) layout; re-laid-out here (host side)."""
    (ln1_g, ln1_b, w_heads, proj_w, proj_b,
     ln2_g, ln2_b, ff_w1, ff_b1, ff_w2, ff_b2) = params
    B, T, C = x.shape
    nh, hs, _ = w_heads.shape
    H = FF_HIDDEN
    assert C == N_EMBD and nh == N_HEADS and hs == HEAD_SIZE and T <= BLOCK_SIZE

    BB = batch_block if batch_block is not None else _pick_batch_block(B)
    assert B % BB == 0
    n_steps = B // BB

    # --- host-side layout plumbing (free): x @ W orientation, lane-padded heads ---
    # Head h occupies lanes [h*128, h*128+32) of the QKV / attention slabs; the
    # remaining lanes are zero, and the matching rows of the padded proj weight are
    # zero, so all head slices in the kernel are 128-lane aligned and exact.
    wqkv3 = jnp.transpose(w_heads, (2, 0, 1))                         # (C, NH, HS)
    wqkv_pad = jnp.pad(wqkv3, ((0, 0), (0, 0), (0, HEAD_PAD - hs))).reshape(C, NHP)
    wproj3 = proj_w.T.reshape(nh, hs, C)                              # (NH, HS, C)
    wproj_pad = jnp.pad(wproj3, ((0, 0), (0, HEAD_PAD - hs), (0, 0))).reshape(NHP, C)
    wf1_t = ff_w1.T                                                   # (C, 4C)
    wf2_t = ff_w2.T                                                   # (4C, C)

    # MXU-operand cast (bf16 native on v5e/v6e/v7x); accumulation stays f32.
    wqkv_pad = wqkv_pad.astype(matmul_dtype)
    wproj_pad = wproj_pad.astype(matmul_dtype)
    wf1_t = wf1_t.astype(matmul_dtype)
    wf2_t = wf2_t.astype(matmul_dtype)

    g1 = ln1_g.reshape(1, C).astype(jnp.float32)
    b1 = ln1_b.reshape(1, C).astype(jnp.float32)
    g2 = ln2_g.reshape(1, C).astype(jnp.float32)
    b2 = ln2_b.reshape(1, C).astype(jnp.float32)
    bp = proj_b.reshape(1, C).astype(jnp.float32)
    bf1 = ff_b1.reshape(1, H).astype(jnp.float32)
    bf2 = ff_b2.reshape(1, C).astype(jnp.float32)

    wbytes = int((wqkv_pad.size + wproj_pad.size + wf1_t.size + wf2_t.size)
                 * jnp.dtype(matmul_dtype).itemsize)
    flops = int(B * T * (2 * C * NHP + 2 * NHP * C + 2 * C * H + 2 * H * C)
                + B * N_HEADS * 4 * T * T * HEAD_PAD)
    transcendentals = int(B * N_HEADS * T * T + 6 * B * T)
    bytes_accessed = int(2 * B * T * C * 4 + wbytes + 4 * (6 * C + H))
    cost = pl.CostEstimate(flops=flops, transcendentals=transcendentals,
                           bytes_accessed=bytes_accessed)

    resident = lambda i: (0, 0)     # constant index_map: DMA'd once, stays in VMEM
    xmap = lambda i: (i, 0, 0)

    return pl.pallas_call(
        _block_kernel,
        out_shape=jax.ShapeDtypeStruct((B, T, C), x.dtype),
        grid_spec=pltpu.PrefetchScalarGridSpec(
            num_scalar_prefetch=0,
            grid=(n_steps,),
            in_specs=[
                pl.BlockSpec((BB, T, C), xmap),        # x (batch block)
                pl.BlockSpec((1, C), resident),        # ln1 gamma
                pl.BlockSpec((1, C), resident),        # ln1 beta
                pl.BlockSpec((C, NHP), resident),      # head-padded qkv weight
                pl.BlockSpec((NHP, C), resident),      # head-padded proj weight
                pl.BlockSpec((1, C), resident),        # proj bias
                pl.BlockSpec((1, C), resident),        # ln2 gamma
                pl.BlockSpec((1, C), resident),        # ln2 beta
                pl.BlockSpec((C, H), resident),        # ffn W1^T
                pl.BlockSpec((1, H), resident),        # ffn b1
                pl.BlockSpec((H, C), resident),        # ffn W2^T
                pl.BlockSpec((1, C), resident),        # ffn b2
            ],
            out_specs=pl.BlockSpec((BB, T, C), xmap),
            scratch_shapes=[pltpu.VMEM((BB * T, NHP), jnp.float32),   # qkv slab
                            pltpu.VMEM((BB * T, NHP), jnp.float32)],  # head outputs
        ),
        compiler_params=pltpu.CompilerParams(
            dimension_semantics=("parallel",),  # batch-block axis shardable over TCs
        ),
        cost_estimate=cost,
    )(x, g1, b1, wqkv_pad, wproj_pad, bp, g2, b2, wf1_t, bf1, wf2_t, bf2)


def reference_forward(x, params):
    """Pure-JAX reference matching the PyTorch TransformerBlock (eval mode)."""
    (ln1_g, ln1_b, w_heads, proj_w, proj_b,
     ln2_g, ln2_b, ff_w1, ff_b1, ff_w2, ff_b2) = params
    B, T, C = x.shape

    def ln(z, g, b):
        mu = z.mean(-1, keepdims=True)
        var = ((z - mu) ** 2).mean(-1, keepdims=True)
        return (z - mu) / jnp.sqrt(var + LN_EPS) * g + b

    h1 = ln(x, ln1_g, ln1_b)
    mask = jnp.tril(jnp.ones((T, T)))
    outs = []
    for h in range(w_heads.shape[0]):
        W = w_heads[h]                                   # (HS, C)
        qkv = jnp.einsum("btc,hc->bth", h1, W)           # q == k == v
        s = jnp.einsum("bth,bsh->bts", qkv, qkv) * C ** (-0.5)
        s = jnp.where(mask == 0, -jnp.inf, s)
        p = jax.nn.softmax(s, axis=-1)
        outs.append(jnp.einsum("bts,bsh->bth", p, qkv))
    sattn = jnp.concatenate(outs, axis=-1) @ proj_w.T + proj_b
    x1 = x + sattn
    h2 = ln(x1, ln2_g, ln2_b)
    ff = jnp.maximum(h2 @ ff_w1.T + ff_b1, 0.0) @ ff_w2.T + ff_b2
    return x1 + ff


if __name__ == "__main__":
    B, T = 2, 8  # small shapes; T <= block_size = 64, C fixed at n_embd = 192

    key = jax.random.PRNGKey(0)
    ks = jax.random.split(key, 12)
    x = jax.random.normal(ks[0], (B, T, N_EMBD), dtype=jnp.float32)
    w_heads = 0.05 * jax.random.normal(ks[1], (N_HEADS, HEAD_SIZE, N_EMBD), jnp.float32)
    proj_w = 0.05 * jax.random.normal(ks[2], (N_EMBD, N_EMBD), jnp.float32)
    proj_b = 0.05 * jax.random.normal(ks[3], (N_EMBD,), jnp.float32)
    ln1_g = 1.0 + 0.1 * jax.random.normal(ks[4], (N_EMBD,), jnp.float32)
    ln1_b = 0.1 * jax.random.normal(ks[5], (N_EMBD,), jnp.float32)
    ln2_g = 1.0 + 0.1 * jax.random.normal(ks[6], (N_EMBD,), jnp.float32)
    ln2_b = 0.1 * jax.random.normal(ks[7], (N_EMBD,), jnp.float32)
    ff_w1 = 0.05 * jax.random.normal(ks[8], (FF_HIDDEN, N_EMBD), jnp.float32)
    ff_b1 = 0.05 * jax.random.normal(ks[9], (FF_HIDDEN,), jnp.float32)
    ff_w2 = 0.05 * jax.random.normal(ks[10], (N_EMBD, FF_HIDDEN), jnp.float32)
    ff_b2 = 0.05 * jax.random.normal(ks[11], (N_EMBD,), jnp.float32)

    params = (ln1_g, ln1_b, w_heads, proj_w, proj_b,
              ln2_g, ln2_b, ff_w1, ff_b1, ff_w2, ff_b2)

    ref = reference_forward(x, params)

    # Exact-precision path: f32 MXU operands -> tight tolerance (softmax now uses an
    # exact reciprocal, so only matmul reduction-order differences remain).
    out_f32 = jax.block_until_ready(
        transformer_block(x, params, matmul_dtype=jnp.float32))
    np.testing.assert_allclose(np.asarray(out_f32), np.asarray(ref),
                               rtol=1e-3, atol=1e-3)

    # Default fast path: bf16 MXU operands with f32 accumulation; score/softmax and
    # LayerNorm math stay f32.  Tolerance reflects the deliberate bf16 operand cast.
    out_bf16 = jax.block_until_ready(transformer_block(x, params))
    np.testing.assert_allclose(np.asarray(out_bf16), np.asarray(ref),
                               rtol=3e-2, atol=3e-2)

    print("KERNEL_OK")
</pallas_src>

<mosaic_0001>
module attributes {stable_mosaic.version = 11 : i64} {
  func.func @_block_kernel(%arg0: i32, %arg1: memref<2x8x192xf32, #tpu.memory_space<vmem>>, %arg2: memref<1x192xf32, #tpu.memory_space<vmem>>, %arg3: memref<1x192xf32, #tpu.memory_space<vmem>>, %arg4: memref<192x768xf32, #tpu.memory_space<vmem>>, %arg5: memref<768x192xf32, #tpu.memory_space<vmem>>, %arg6: memref<1x192xf32, #tpu.memory_space<vmem>>, %arg7: memref<1x192xf32, #tpu.memory_space<vmem>>, %arg8: memref<1x192xf32, #tpu.memory_space<vmem>>, %arg9: memref<192x768xf32, #tpu.memory_space<vmem>>, %arg10: memref<1x768xf32, #tpu.memory_space<vmem>>, %arg11: memref<768x192xf32, #tpu.memory_space<vmem>>, %arg12: memref<1x192xf32, #tpu.memory_space<vmem>>, %arg13: memref<2x8x192xf32, #tpu.memory_space<vmem>>, %arg14: memref<16x768xf32, #tpu.memory_space<vmem>>, %arg15: memref<16x768xf32, #tpu.memory_space<vmem>>) attributes {dimension_semantics = [#tpu.dimension_semantics<parallel>], iteration_bounds = array<i64: 1>, scalar_prefetch = 0 : i64, scratch_operands = 2 : i64, tpu.core_type = #tpu.core_type<tc>, window_params = [{transform_indices = @transform_0, window_bounds = array<i64: 2, 8, 192>}, {pipeline_mode = #tpu.pipeline_mode<synchronous>, transform_indices = @transform_1, window_bounds = array<i64: 1, 192>}, {pipeline_mode = #tpu.pipeline_mode<synchronous>, transform_indices = @transform_2, window_bounds = array<i64: 1, 192>}, {pipeline_mode = #tpu.pipeline_mode<synchronous>, transform_indices = @transform_3, window_bounds = array<i64: 192, 768>}, {pipeline_mode = #tpu.pipeline_mode<synchronous>, transform_indices = @transform_4, window_bounds = array<i64: 768, 192>}, {pipeline_mode = #tpu.pipeline_mode<synchronous>, transform_indices = @transform_5, window_bounds = array<i64: 1, 192>}, {pipeline_mode = #tpu.pipeline_mode<synchronous>, transform_indices = @transform_6, window_bounds = array<i64: 1, 192>}, {pipeline_mode = #tpu.pipeline_mode<synchronous>, transform_indices = @transform_7, window_bounds = array<i64: 1, 192>}, {pipeline_mode = #tpu.pipeline_mode<synchronous>, transform_indices = @transform_8, window_bounds = array<i64: 192, 768>}, {pipeline_mode = #tpu.pipeline_mode<synchronous>, transform_indices = @transform_9, window_bounds = array<i64: 1, 768>}, {pipeline_mode = #tpu.pipeline_mode<synchronous>, transform_indices = @transform_10, window_bounds = array<i64: 768, 192>}, {pipeline_mode = #tpu.pipeline_mode<synchronous>, transform_indices = @transform_11, window_bounds = array<i64: 1, 192>}, {transform_indices = @transform_12, window_bounds = array<i64: 2, 8, 192>}]} {
    %c0 = arith.constant 0 : index
    %c0_0 = arith.constant 0 : index
    %c0_1 = arith.constant 0 : index
    %0 = vector.load %arg1[%c0, %c0_0, %c0_1] : memref<2x8x192xf32, #tpu.memory_space<vmem>>, vector<2x8x192xf32>
    %1 = vector.shape_cast %0 : vector<2x8x192xf32> to vector<16x192xf32>
    %c0_2 = arith.constant 0 : index
    %c0_3 = arith.constant 0 : index
    %2 = vector.load %arg2[%c0_2, %c0_3] : memref<1x192xf32, #tpu.memory_space<vmem>>, vector<1x192xf32>
    %c0_4 = arith.constant 0 : index
    %c0_5 = arith.constant 0 : index
    %3 = vector.load %arg3[%c0_4, %c0_5] : memref<1x192xf32, #tpu.memory_space<vmem>>, vector<1x192xf32>
    %cst = arith.constant dense<0.000000e+00> : vector<16xf32>
    %4 = vector.multi_reduction <add>, %1, %cst [1] : vector<16x192xf32> to vector<16xf32>
    %5 = vector.shape_cast %4 : vector<16xf32> to vector<16x1xf32>
    %cst_6 = arith.constant 1.920000e+02 : f32
    %6 = vector.broadcast %cst_6 : f32 to vector<16x1xf32>
    %7 = arith.divf %5, %6 : vector<16x1xf32>
    %8 = vector.broadcast %7 : vector<16x1xf32> to vector<16x192xf32>
    %9 = arith.subf %1, %8 : vector<16x192xf32>
    %10 = arith.mulf %9, %9 : vector<16x192xf32>
    %cst_7 = arith.constant dense<0.000000e+00> : vector<16xf32>
    %11 = vector.multi_reduction <add>, %10, %cst_7 [1] : vector<16x192xf32> to vector<16xf32>
    %12 = vector.shape_cast %11 : vector<16xf32> to vector<16x1xf32>
    %cst_8 = arith.constant 1.920000e+02 : f32
    %13 = vector.broadcast %cst_8 : f32 to vector<16x1xf32>
    %14 = arith.divf %12, %13 : vector<16x1xf32>
    %cst_9 = arith.constant 9.99999974E-6 : f32
    %15 = vector.broadcast %cst_9 : f32 to vector<16x1xf32>
    %16 = arith.addf %14, %15 : vector<16x1xf32>
    %17 = math.rsqrt %16 : vector<16x1xf32>
    %18 = vector.broadcast %17 : vector<16x1xf32> to vector<16x192xf32>
    %19 = arith.mulf %9, %18 : vector<16x192xf32>
    %20 = vector.broadcast %2 : vector<1x192xf32> to vector<16x192xf32>
    %21 = arith.mulf %19, %20 : vector<16x192xf32>
    %22 = vector.broadcast %3 : vector<1x192xf32> to vector<16x192xf32>
    %23 = arith.addf %21, %22 : vector<16x192xf32>
    %c0_10 = arith.constant 0 : index
    %c0_11 = arith.constant 0 : index
    %24 = vector.load %arg4[%c0_10, %c0_11] : memref<192x768xf32, #tpu.memory_space<vmem>>, vector<192x768xf32>
    %cst_12 = arith.constant dense<0.000000e+00> : vector<16x768xf32>
    %25 = tpu.matmul %23, %24, %cst_12 {dimension_numbers = #tpu.dot_dimension_numbers<[1], [0], [0], [1], [0, 0, 1, 1], [], []>} : vector<16x192xf32>, vector<192x768xf32>, vector<16x768xf32> -> vector<16x768xf32>
    %c0_13 = arith.constant 0 : index
    %c0_14 = arith.constant 0 : index
    %26 = vector.load %arg14[%c0_13, %c0_14] : memref<16x768xf32, #tpu.memory_space<vmem>>, vector<16x768xf32>
    tpu.vector_store %arg14[%c0_13, %c0_14], %25 {strides = array<i32>} : memref<16x768xf32, #tpu.memory_space<vmem>>, vector<16x768xf32>,
    %27 = tpu.iota {dimensions = array<i32: 0>} : vector<8x8xi32>
    %28 = tpu.iota {dimensions = array<i32: 1>} : vector<8x8xi32>
    %29 = arith.cmpi sle, %28, %27 : vector<8x8xi32>
    %c0_15 = arith.constant 0 : index
    %c0_16 = arith.constant 0 : index
    %30 = vector.load %arg14[%c0_15, %c0_16] : memref<16x768xf32, #tpu.memory_space<vmem>>, vector<16x128xf32>
    %31 = vector.shape_cast %30 : vector<16x128xf32> to vector<2x8x128xf32>
    "tpu.trace_start"() <{level = 10 : i32, message = "bqd,bkd->bqk"}> : () -> ()
    %cst_17 = arith.constant dense<0.000000e+00> : vector<2x8x8xf32>
    %32 = tpu.matmul %31, %31, %cst_17 {dimension_numbers = #tpu.dot_dimension_numbers<[2], [2], [1], [1], [0, 0, 0, 1, 1, 1], [0], [0]>} : vector<2x8x128xf32>, vector<2x8x128xf32>, vector<2x8x8xf32> -> vector<2x8x8xf32>
    "tpu.trace_stop"() : () -> ()
    %cst_18 = arith.constant 0.0721687824 : f32
    %33 = vector.broadcast %cst_18 : f32 to vector<2x8x8xf32>
    %34 = arith.mulf %32, %33 : vector<2x8x8xf32>
    %cst_19 = arith.constant 0xFF800000 : f32
    %35 = vector.shape_cast %29 : vector<8x8xi1> to vector<1x8x8xi1>
    %36 = vector.broadcast %35 : vector<1x8x8xi1> to vector<2x8x8xi1>
    %37 = vector.broadcast %cst_19 : f32 to vector<2x8x8xf32>
    %38 = arith.select %36, %34, %37 : vector<2x8x8xi1>, vector<2x8x8xf32>
    %cst_20 = arith.constant dense<0xFF800000> : vector<2x8xf32>
    %39 = vector.multi_reduction <maximumf>, %38, %cst_20 [2] : vector<2x8x8xf32> to vector<2x8xf32>
    %40 = vector.shape_cast %39 : vector<2x8xf32> to vector<2x8x1xf32>
    %41 = vector.broadcast %40 : vector<2x8x1xf32> to vector<2x8x8xf32>
    %42 = arith.subf %38, %41 : vector<2x8x8xf32>
    %43 = math.exp %42 : vector<2x8x8xf32>
    %cst_21 = arith.constant dense<0.000000e+00> : vector<2x8xf32>
    %44 = vector.multi_reduction <add>, %43, %cst_21 [2] : vector<2x8x8xf32> to vector<2x8xf32>
    %45 = vector.shape_cast %44 : vector<2x8xf32> to vector<2x8x1xf32>
    %cst_22 = arith.constant 1.000000e+00 : f32
    %46 = vector.broadcast %cst_22 : f32 to vector<2x8x1xf32>
    %47 = arith.divf %46, %45 : vector<2x8x1xf32>
    %48 = vector.broadcast %47 : vector<2x8x1xf32> to vector<2x8x8xf32>
    %49 = arith.mulf %43, %48 : vector<2x8x8xf32>
    "tpu.trace_start"() <{level = 10 : i32, message = "bqk,bkd->bqd"}> : () -> ()
    %cst_23 = arith.constant dense<0.000000e+00> : vector<2x8x128xf32>
    %50 = tpu.matmul %49, %31, %cst_23 {dimension_numbers = #tpu.dot_dimension_numbers<[2], [1], [1], [2], [0, 0, 0, 1, 1, 2], [0], [0]>} : vector<2x8x8xf32>, vector<2x8x128xf32>, vector<2x8x128xf32> -> vector<2x8x128xf32>
    "tpu.trace_stop"() : () -> ()
    %51 = vector.shape_cast %50 : vector<2x8x128xf32> to vector<16x128xf32>
    %c0_24 = arith.constant 0 : index
    %c0_25 = arith.constant 0 : index
    %52 = vector.load %arg15[%c0_24, %c0_25] : memref<16x768xf32, #tpu.memory_space<vmem>>, vector<16x128xf32>
    tpu.vector_store %arg15[%c0_24, %c0_25], %51 {strides = array<i32>} : memref<16x768xf32, #tpu.memory_space<vmem>>, vector<16x128xf32>,
    %c0_26 = arith.constant 0 : index
    %c128 = arith.constant 128 : index
    %53 = vector.load %arg14[%c0_26, %c128] : memref<16x768xf32, #tpu.memory_space<vmem>>, vector<16x128xf32>
    %54 = vector.shape_cast %53 : vector<16x128xf32> to vector<2x8x128xf32>
    "tpu.trace_start"() <{level = 10 : i32, message = "bqd,bkd->bqk"}> : () -> ()
    %cst_27 = arith.constant dense<0.000000e+00> : vector<2x8x8xf32>
    %55 = tpu.matmul %54, %54, %cst_27 {dimension_numbers = #tpu.dot_dimension_numbers<[2], [2], [1], [1], [0, 0, 0, 1, 1, 1], [0], [0]>} : vector<2x8x128xf32>, vector<2x8x128xf32>, vector<2x8x8xf32> -> vector<2x8x8xf32>
    "tpu.trace_stop"() : () -> ()
    %cst_28 = arith.constant 0.0721687824 : f32
    %56 = vector.broadcast %cst_28 : f32 to vector<2x8x8xf32>
    %57 = arith.mulf %55, %56 : vector<2x8x8xf32>
    %cst_29 = arith.constant 0xFF800000 : f32
    %58 = vector.shape_cast %29 : vector<8x8xi1> to vector<1x8x8xi1>
    %59 = vector.broadcast %58 : vector<1x8x8xi1> to vector<2x8x8xi1>
    %60 = vector.broadcast %cst_29 : f32 to vector<2x8x8xf32>
    %61 = arith.select %59, %57, %60 : vector<2x8x8xi1>, vector<2x8x8xf32>
    %cst_30 = arith.constant dense<0xFF800000> : vector<2x8xf32>
    %62 = vector.multi_reduction <maximumf>, %61, %cst_30 [2] : vector<2x8x8xf32> to vector<2x8xf32>
    %63 = vector.shape_cast %62 : vector<2x8xf32> to vector<2x8x1xf32>
    %64 = vector.broadcast %63 : vector<2x8x1xf32> to vector<2x8x8xf32>
    %65 = arith.subf %61, %64 : vector<2x8x8xf32>
    %66 = math.exp %65 : vector<2x8x8xf32>
    %cst_31 = arith.constant dense<0.000000e+00> : vector<2x8xf32>
    %67 = vector.multi_reduction <add>, %66, %cst_31 [2] : vector<2x8x8xf32> to vector<2x8xf32>
    %68 = vector.shape_cast %67 : vector<2x8xf32> to vector<2x8x1xf32>
    %cst_32 = arith.constant 1.000000e+00 : f32
    %69 = vector.broadcast %cst_32 : f32 to vector<2x8x1xf32>
    %70 = arith.divf %69, %68 : vector<2x8x1xf32>
    %71 = vector.broadcast %70 : vector<2x8x1xf32> to vector<2x8x8xf32>
    %72 = arith.mulf %66, %71 : vector<2x8x8xf32>
    "tpu.trace_start"() <{level = 10 : i32, message = "bqk,bkd->bqd"}> : () -> ()
    %cst_33 = arith.constant dense<0.000000e+00> : vector<2x8x128xf32>
    %73 = tpu.matmul %72, %54, %cst_33 {dimension_numbers = #tpu.dot_dimension_numbers<[2], [1], [1], [2], [0, 0, 0, 1, 1, 2], [0], [0]>} : vector<2x8x8xf32>, vector<2x8x128xf32>, vector<2x8x128xf32> -> vector<2x8x128xf32>
    "tpu.trace_stop"() : () -> ()
    %74 = vector.shape_cast %73 : vector<2x8x128xf32> to vector<16x128xf32>
    %c0_34 = arith.constant 0 : index
    %c128_35 = arith.constant 128 : index
    %75 = vector.load %arg15[%c0_34, %c128_35] : memref<16x768xf32, #tpu.memory_space<vmem>>, vector<16x128xf32>
    tpu.vector_store %arg15[%c0_34, %c128_35], %74 {strides = array<i32>} : memref<16x768xf32, #tpu.memory_space<vmem>>, vector<16x128xf32>,
    %c0_36 = arith.constant 0 : index
    %c256 = arith.constant 256 : index
    %76 = vector.load %arg14[%c0_36, %c256] : memref<16x768xf32, #tpu.memory_space<vmem>>, vector<16x128xf32>
    %77 = vector.shape_cast %76 : vector<16x128xf32> to vector<2x8x128xf32>
    "tpu.trace_start"() <{level = 10 : i32, message = "bqd,bkd->bqk"}> : () -> ()
    %cst_37 = arith.constant dense<0.000000e+00> : vector<2x8x8xf32>
    %78 = tpu.matmul %77, %77, %cst_37 {dimension_numbers = #tpu.dot_dimension_numbers<[2], [2], [1], [1], [0, 0, 0, 1, 1, 1], [0], [0]>} : vector<2x8x128xf32>, vector<2x8x128xf32>, vector<2x8x8xf32> -> vector<2x8x8xf32>
    "tpu.trace_stop"() : () -> ()
    %cst_38 = arith.constant 0.0721687824 : f32
    %79 = vector.broadcast %cst_38 : f32 to vector<2x8x8xf32>
    %80 = arith.mulf %78, %79 : vector<2x8x8xf32>
    %cst_39 = arith.constant 0xFF800000 : f32
    %81 = vector.shape_cast %29 : vector<8x8xi1> to vector<1x8x8xi1>
    %82 = vector.broadcast %81 : vector<1x8x8xi1> to vector<2x8x8xi1>
    %83 = vector.broadcast %cst_39 : f32 to vector<2x8x8xf32>
    %84 = arith.select %82, %80, %83 : vector<2x8x8xi1>, vector<2x8x8xf32>
    %cst_40 = arith.constant dense<0xFF800000> : vector<2x8xf32>
    %85 = vector.multi_reduction <maximumf>, %84, %cst_40 [2] : vector<2x8x8xf32> to vector<2x8xf32>
    %86 = vector.shape_cast %85 : vector<2x8xf32> to vector<2x8x1xf32>
    %87 = vector.broadcast %86 : vector<2x8x1xf32> to vector<2x8x8xf32>
    %88 = arith.subf %84, %87 : vector<2x8x8xf32>
    %89 = math.exp %88 : vector<2x8x8xf32>
    %cst_41 = arith.constant dense<0.000000e+00> : vector<2x8xf32>
    %90 = vector.multi_reduction <add>, %89, %cst_41 [2] : vector<2x8x8xf32> to vector<2x8xf32>
    %91 = vector.shape_cast %90 : vector<2x8xf32> to vector<2x8x1xf32>
    %cst_42 = arith.constant 1.000000e+00 : f32
    %92 = vector.broadcast %cst_42 : f32 to vector<2x8x1xf32>
    %93 = arith.divf %92, %91 : vector<2x8x1xf32>
    %94 = vector.broadcast %93 : vector<2x8x1xf32> to vector<2x8x8xf32>
    %95 = arith.mulf %89, %94 : vector<2x8x8xf32>
    "tpu.trace_start"() <{level = 10 : i32, message = "bqk,bkd->bqd"}> : () -> ()
    %cst_43 = arith.constant dense<0.000000e+00> : vector<2x8x128xf32>
    %96 = tpu.matmul %95, %77, %cst_43 {dimension_numbers = #tpu.dot_dimension_numbers<[2], [1], [1], [2], [0, 0, 0, 1, 1, 2], [0], [0]>} : vector<2x8x8xf32>, vector<2x8x128xf32>, vector<2x8x128xf32> -> vector<2x8x128xf32>
    "tpu.trace_stop"() : () -> ()
    %97 = vector.shape_cast %96 : vector<2x8x128xf32> to vector<16x128xf32>
    %c0_44 = arith.constant 0 : index
    %c256_45 = arith.constant 256 : index
    %98 = vector.load %arg15[%c0_44, %c256_45] : memref<16x768xf32, #tpu.memory_space<vmem>>, vector<16x128xf32>
    tpu.vector_store %arg15[%c0_44, %c256_45], %97 {strides = array<i32>} : memref<16x768xf32, #tpu.memory_space<vmem>>, vector<16x128xf32>,
    %c0_46 = arith.constant 0 : index
    %c384 = arith.constant 384 : index
    %99 = vector.load %arg14[%c0_46, %c384] : memref<16x768xf32, #tpu.memory_space<vmem>>, vector<16x128xf32>
    %100 = vector.shape_cast %99 : vector<16x128xf32> to vector<2x8x128xf32>
    "tpu.trace_start"() <{level = 10 : i32, message = "bqd,bkd->bqk"}> : () -> ()
    %cst_47 = arith.constant dense<0.000000e+00> : vector<2x8x8xf32>
    %101 = tpu.matmul %100, %100, %cst_47 {dimension_numbers = #tpu.dot_dimension_numbers<[2], [2], [1], [1], [0, 0, 0, 1, 1, 1], [0], [0]>} : vector<2x8x128xf32>, vector<2x8x128xf32>, vector<2x8x8xf32> -> vector<2x8x8xf32>
    "tpu.trace_stop"() : () -> ()
    %cst_48 = arith.constant 0.0721687824 : f32
    %102 = vector.broadcast %cst_48 : f32 to vector<2x8x8xf32>
    %103 = arith.mulf %101, %102 : vector<2x8x8xf32>
    %cst_49 = arith.constant 0xFF800000 : f32
    %104 = vector.shape_cast %29 : vector<8x8xi1> to vector<1x8x8xi1>
    %105 = vector.broadcast %104 : vector<1x8x8xi1> to vector<2x8x8xi1>
    %106 = vector.broadcast %cst_49 : f32 to vector<2x8x8xf32>
    %107 = arith.select %105, %103, %106 : vector<2x8x8xi1>, vector<2x8x8xf32>
    %cst_50 = arith.constant dense<0xFF800000> : vector<2x8xf32>
    %108 = vector.multi_reduction <maximumf>, %107, %cst_50 [2] : vector<2x8x8xf32> to vector<2x8xf32>
    %109 = vector.shape_cast %108 : vector<2x8xf32> to vector<2x8x1xf32>
    %110 = vector.broadcast %109 : vector<2x8x1xf32> to vector<2x8x8xf32>
    %111 = arith.subf %107, %110 : vector<2x8x8xf32>
    %112 = math.exp %111 : vector<2x8x8xf32>
    %cst_51 = arith.constant dense<0.000000e+00> : vector<2x8xf32>
    %113 = vector.multi_reduction <add>, %112, %cst_51 [2] : vector<2x8x8xf32> to vector<2x8xf32>
    %114 = vector.shape_cast %113 : vector<2x8xf32> to vector<2x8x1xf32>
    %cst_52 = arith.constant 1.000000e+00 : f32
    %115 = vector.broadcast %cst_52 : f32 to vector<2x8x1xf32>
    %116 = arith.divf %115, %114 : vector<2x8x1xf32>
    %117 = vector.broadcast %116 : vector<2x8x1xf32> to vector<2x8x8xf32>
    %118 = arith.mulf %112, %117 : vector<2x8x8xf32>
    "tpu.trace_start"() <{level = 10 : i32, message = "bqk,bkd->bqd"}> : () -> ()
    %cst_53 = arith.constant dense<0.000000e+00> : vector<2x8x128xf32>
    %119 = tpu.matmul %118, %100, %cst_53 {dimension_numbers = #tpu.dot_dimension_numbers<[2], [1], [1], [2], [0, 0, 0, 1, 1, 2], [0], [0]>} : vector<2x8x8xf32>, vector<2x8x128xf32>, vector<2x8x128xf32> -> vector<2x8x128xf32>
    "tpu.trace_stop"() : () -> ()
    %120 = vector.shape_cast %119 : vector<2x8x128xf32> to vector<16x128xf32>
    %c0_54 = arith.constant 0 : index
    %c384_55 = arith.constant 384 : index
    %121 = vector.load %arg15[%c0_54, %c384_55] : memref<16x768xf32, #tpu.memory_space<vmem>>, vector<16x128xf32>
    tpu.vector_store %arg15[%c0_54, %c384_55], %120 {strides = array<i32>} : memref<16x768xf32, #tpu.memory_space<vmem>>, vector<16x128xf32>,
    %c0_56 = arith.constant 0 : index
    %c512 = arith.constant 512 : index
    %122 = vector.load %arg14[%c0_56, %c512] : memref<16x768xf32, #tpu.memory_space<vmem>>, vector<16x128xf32>
    %123 = vector.shape_cast %122 : vector<16x128xf32> to vector<2x8x128xf32>
    "tpu.trace_start"() <{level = 10 : i32, message = "bqd,bkd->bqk"}> : () -> ()
    %cst_57 = arith.constant dense<0.000000e+00> : vector<2x8x8xf32>
    %124 = tpu.matmul %123, %123, %cst_57 {dimension_numbers = #tpu.dot_dimension_numbers<[2], [2], [1], [1], [0, 0, 0, 1, 1, 1], [0], [0]>} : vector<2x8x128xf32>, vector<2x8x128xf32>, vector<2x8x8xf32> -> vector<2x8x8xf32>
    "tpu.trace_stop"() : () -> ()
    %cst_58 = arith.constant 0.0721687824 : f32
    %125 = vector.broadcast %cst_58 : f32 to vector<2x8x8xf32>
    %126 = arith.mulf %124, %125 : vector<2x8x8xf32>
    %cst_59 = arith.constant 0xFF800000 : f32
    %127 = vector.shape_cast %29 : vector<8x8xi1> to vector<1x8x8xi1>
    %128 = vector.broadcast %127 : vector<1x8x8xi1> to vector<2x8x8xi1>
    %129 = vector.broadcast %cst_59 : f32 to vector<2x8x8xf32>
    %130 = arith.select %128, %126, %129 : vector<2x8x8xi1>, vector<2x8x8xf32>
    %cst_60 = arith.constant dense<0xFF800000> : vector<2x8xf32>
    %131 = vector.multi_reduction <maximumf>, %130, %cst_60 [2] : vector<2x8x8xf32> to vector<2x8xf32>
    %132 = vector.shape_cast %131 : vector<2x8xf32> to vector<2x8x1xf32>
    %133 = vector.broadcast %132 : vector<2x8x1xf32> to vector<2x8x8xf32>
    %134 = arith.subf %130, %133 : vector<2x8x8xf32>
    %135 = math.exp %134 : vector<2x8x8xf32>
    %cst_61 = arith.constant dense<0.000000e+00> : vector<2x8xf32>
    %136 = vector.multi_reduction <add>, %135, %cst_61 [2] : vector<2x8x8xf32> to vector<2x8xf32>
    %137 = vector.shape_cast %136 : vector<2x8xf32> to vector<2x8x1xf32>
    %cst_62 = arith.constant 1.000000e+00 : f32
    %138 = vector.broadcast %cst_62 : f32 to vector<2x8x1xf32>
    %139 = arith.divf %138, %137 : vector<2x8x1xf32>
    %140 = vector.broadcast %139 : vector<2x8x1xf32> to vector<2x8x8xf32>
    %141 = arith.mulf %135, %140 : vector<2x8x8xf32>
    "tpu.trace_start"() <{level = 10 : i32, message = "bqk,bkd->bqd"}> : () -> ()
    %cst_63 = arith.constant dense<0.000000e+00> : vector<2x8x128xf32>
    %142 = tpu.matmul %141, %123, %cst_63 {dimension_numbers = #tpu.dot_dimension_numbers<[2], [1], [1], [2], [0, 0, 0, 1, 1, 2], [0], [0]>} : vector<2x8x8xf32>, vector<2x8x128xf32>, vector<2x8x128xf32> -> vector<2x8x128xf32>
    "tpu.trace_stop"() : () -> ()
    %143 = vector.shape_cast %142 : vector<2x8x128xf32> to vector<16x128xf32>
    %c0_64 = arith.constant 0 : index
    %c512_65 = arith.constant 512 : index
    %144 = vector.load %arg15[%c0_64, %c512_65] : memref<16x768xf32, #tpu.memory_space<vmem>>, vector<16x128xf32>
    tpu.vector_store %arg15[%c0_64, %c512_65], %143 {strides = array<i32>} : memref<16x768xf32, #tpu.memory_space<vmem>>, vector<16x128xf32>,
    %c0_66 = arith.constant 0 : index
    %c640 = arith.constant 640 : index
    %145 = vector.load %arg14[%c0_66, %c640] : memref<16x768xf32, #tpu.memory_space<vmem>>, vector<16x128xf32>
    %146 = vector.shape_cast %145 : vector<16x128xf32> to vector<2x8x128xf32>
    "tpu.trace_start"() <{level = 10 : i32, message = "bqd,bkd->bqk"}> : () -> ()
    %cst_67 = arith.constant dense<0.000000e+00> : vector<2x8x8xf32>
    %147 = tpu.matmul %146, %146, %cst_67 {dimension_numbers = #tpu.dot_dimension_numbers<[2], [2], [1], [1], [0, 0, 0, 1, 1, 1], [0], [0]>} : vector<2x8x128xf32>, vector<2x8x128xf32>, vector<2x8x8xf32> -> vector<2x8x8xf32>
    "tpu.trace_stop"() : () -> ()
    %cst_68 = arith.constant 0.0721687824 : f32
    %148 = vector.broadcast %cst_68 : f32 to vector<2x8x8xf32>
    %149 = arith.mulf %147, %148 : vector<2x8x8xf32>
    %cst_69 = arith.constant 0xFF800000 : f32
    %150 = vector.shape_cast %29 : vector<8x8xi1> to vector<1x8x8xi1>
    %151 = vector.broadcast %150 : vector<1x8x8xi1> to vector<2x8x8xi1>
    %152 = vector.broadcast %cst_69 : f32 to vector<2x8x8xf32>
    %153 = arith.select %151, %149, %152 : vector<2x8x8xi1>, vector<2x8x8xf32>
    %cst_70 = arith.constant dense<0xFF800000> : vector<2x8xf32>
    %154 = vector.multi_reduction <maximumf>, %153, %cst_70 [2] : vector<2x8x8xf32> to vector<2x8xf32>
    %155 = vector.shape_cast %154 : vector<2x8xf32> to vector<2x8x1xf32>
    %156 = vector.broadcast %155 : vector<2x8x1xf32> to vector<2x8x8xf32>
    %157 = arith.subf %153, %156 : vector<2x8x8xf32>
    %158 = math.exp %157 : vector<2x8x8xf32>
    %cst_71 = arith.constant dense<0.000000e+00> : vector<2x8xf32>
    %159 = vector.multi_reduction <add>, %158, %cst_71 [2] : vector<2x8x8xf32> to vector<2x8xf32>
    %160 = vector.shape_cast %159 : vector<2x8xf32> to vector<2x8x1xf32>
    %cst_72 = arith.constant 1.000000e+00 : f32
    %161 = vector.broadcast %cst_72 : f32 to vector<2x8x1xf32>
    %162 = arith.divf %161, %160 : vector<2x8x1xf32>
    %163 = vector.broadcast %162 : vector<2x8x1xf32> to vector<2x8x8xf32>
    %164 = arith.mulf %158, %163 : vector<2x8x8xf32>
    "tpu.trace_start"() <{level = 10 : i32, message = "bqk,bkd->bqd"}> : () -> ()
    %cst_73 = arith.constant dense<0.000000e+00> : vector<2x8x128xf32>
    %165 = tpu.matmul %164, %146, %cst_73 {dimension_numbers = #tpu.dot_dimension_numbers<[2], [1], [1], [2], [0, 0, 0, 1, 1, 2], [0], [0]>} : vector<2x8x8xf32>, vector<2x8x128xf32>, vector<2x8x128xf32> -> vector<2x8x128xf32>
    "tpu.trace_stop"() : () -> ()
    %166 = vector.shape_cast %165 : vector<2x8x128xf32> to vector<16x128xf32>
    %c0_74 = arith.constant 0 : index
    %c640_75 = arith.constant 640 : index
    %167 = vector.load %arg15[%c0_74, %c640_75] : memref<16x768xf32, #tpu.memory_space<vmem>>, vector<16x128xf32>
    tpu.vector_store %arg15[%c0_74, %c640_75], %166 {strides = array<i32>} : memref<16x768xf32, #tpu.memory_space<vmem>>, vector<16x128xf32>,
    %c0_76 = arith.constant 0 : index
    %c0_77 = arith.constant 0 : index
    %168 = vector.load %arg15[%c0_76, %c0_77] : memref<16x768xf32, #tpu.memory_space<vmem>>, vector<16x768xf32>
    %c0_78 = arith.constant 0 : index
    %c0_79 = arith.constant 0 : index
    %169 = vector.load %arg5[%c0_78, %c0_79] : memref<768x192xf32, #tpu.memory_space<vmem>>, vector<768x192xf32>
    %cst_80 = arith.constant dense<0.000000e+00> : vector<16x192xf32>
    %170 = tpu.matmul %168, %169, %cst_80 {dimension_numbers = #tpu.dot_dimension_numbers<[1], [0], [0], [1], [0, 0, 1, 1], [], []>} : vector<16x768xf32>, vector<768x192xf32>, vector<16x192xf32> -> vector<16x192xf32>
    %c0_81 = arith.constant 0 : index
    %c0_82 = arith.constant 0 : index
    %171 = vector.load %arg6[%c0_81, %c0_82] : memref<1x192xf32, #tpu.memory_space<vmem>>, vector<1x192xf32>
    %172 = vector.broadcast %171 : vector<1x192xf32> to vector<16x192xf32>
    %173 = arith.addf %170, %172 : vector<16x192xf32>
    %174 = arith.addf %1, %173 : vector<16x192xf32>
    %c0_83 = arith.constant 0 : index
    %c0_84 = arith.constant 0 : index
    %175 = vector.load %arg7[%c0_83, %c0_84] : memref<1x192xf32, #tpu.memory_space<vmem>>, vector<1x192xf32>
    %c0_85 = arith.constant 0 : index
    %c0_86 = arith.constant 0 : index
    %176 = vector.load %arg8[%c0_85, %c0_86] : memref<1x192xf32, #tpu.memory_space<vmem>>, vector<1x192xf32>
    %cst_87 = arith.constant dense<0.000000e+00> : vector<16xf32>
    %177 = vector.multi_reduction <add>, %174, %cst_87 [1] : vector<16x192xf32> to vector<16xf32>
    %178 = vector.shape_cast %177 : vector<16xf32> to vector<16x1xf32>
    %cst_88 = arith.constant 1.920000e+02 : f32
    %179 = vector.broadcast %cst_88 : f32 to vector<16x1xf32>
    %180 = arith.divf %178, %179 : vector<16x1xf32>
    %181 = vector.broadcast %180 : vector<16x1xf32> to vector<16x192xf32>
    %182 = arith.subf %174, %181 : vector<16x192xf32>
    %183 = arith.mulf %182, %182 : vector<16x192xf32>
    %cst_89 = arith.constant dense<0.000000e+00> : vector<16xf32>
    %184 = vector.multi_reduction <add>, %183, %cst_89 [1] : vector<16x192xf32> to vector<16xf32>
    %185 = vector.shape_cast %184 : vector<16xf32> to vector<16x1xf32>
    %cst_90 = arith.constant 1.920000e+02 : f32
    %186 = vector.broadcast %cst_90 : f32 to vector<16x1xf32>
    %187 = arith.divf %185, %186 : vector<16x1xf32>
    %cst_91 = arith.constant 9.99999974E-6 : f32
    %188 = vector.broadcast %cst_91 : f32 to vector<16x1xf32>
    %189 = arith.addf %187, %188 : vector<16x1xf32>
    %190 = math.rsqrt %189 : vector<16x1xf32>
    %191 = vector.broadcast %190 : vector<16x1xf32> to vector<16x192xf32>
    %192 = arith.mulf %182, %191 : vector<16x192xf32>
    %193 = vector.broadcast %175 : vector<1x192xf32> to vector<16x192xf32>
    %194 = arith.mulf %192, %193 : vector<16x192xf32>
    %195 = vector.broadcast %176 : vector<1x192xf32> to vector<16x192xf32>
    %196 = arith.addf %194, %195 : vector<16x192xf32>
    %c0_92 = arith.constant 0 : index
    %c0_93 = arith.constant 0 : index
    %197 = vector.load %arg9[%c0_92, %c0_93] : memref<192x768xf32, #tpu.memory_space<vmem>>, vector<192x768xf32>
    %cst_94 = arith.constant dense<0.000000e+00> : vector<16x768xf32>
    %198 = tpu.matmul %196, %197, %cst_94 {dimension_numbers = #tpu.dot_dimension_numbers<[1], [0], [0], [1], [0, 0, 1, 1], [], []>} : vector<16x192xf32>, vector<192x768xf32>, vector<16x768xf32> -> vector<16x768xf32>
    %c0_95 = arith.constant 0 : index
    %c0_96 = arith.constant 0 : index
    %199 = vector.load %arg10[%c0_95, %c0_96] : memref<1x768xf32, #tpu.memory_space<vmem>>, vector<1x768xf32>
    %200 = vector.broadcast %199 : vector<1x768xf32> to vector<16x768xf32>
    %201 = arith.addf %198, %200 : vector<16x768xf32>
    %cst_97 = arith.constant 0.000000e+00 : f32
    %202 = vector.broadcast %cst_97 : f32 to vector<16x768xf32>
    %203 = arith.maximumf %201, %202 : vector<16x768xf32>
    %c0_98 = arith.constant 0 : index
    %c0_99 = arith.constant 0 : index
    %204 = vector.load %arg11[%c0_98, %c0_99] : memref<768x192xf32, #tpu.memory_space<vmem>>, vector<768x192xf32>
    %cst_100 = arith.constant dense<0.000000e+00> : vector<16x192xf32>
    %205 = tpu.matmul %203, %204, %cst_100 {dimension_numbers = #tpu.dot_dimension_numbers<[1], [0], [0], [1], [0, 0, 1, 1], [], []>} : vector<16x768xf32>, vector<768x192xf32>, vector<16x192xf32> -> vector<16x192xf32>
    %c0_101 = arith.constant 0 : index
    %c0_102 = arith.constant 0 : index
    %206 = vector.load %arg12[%c0_101, %c0_102] : memref<1x192xf32, #tpu.memory_space<vmem>>, vector<1x192xf32>
    %207 = vector.broadcast %206 : vector<1x192xf32> to vector<16x192xf32>
    %208 = arith.addf %205, %207 : vector<16x192xf32>
    %209 = arith.addf %174, %208 : vector<16x192xf32>
    %210 = vector.shape_cast %209 : vector<16x192xf32> to vector<2x8x192xf32>
    %c0_103 = arith.constant 0 : index
    %c0_104 = arith.constant 0 : index
    %c0_105 = arith.constant 0 : index
    %211 = vector.load %arg13[%c0_103, %c0_104, %c0_105] : memref<2x8x192xf32, #tpu.memory_space<vmem>>, vector<2x8x192xf32>
    tpu.vector_store %arg13[%c0_103, %c0_104, %c0_105], %210 {strides = array<i32>} : memref<2x8x192xf32, #tpu.memory_space<vmem>>, vector<2x8x192xf32>,
    return
  }
  func.func @transform_0(%arg0: i32) -> (i32, i32, i32) {
    %c0_i32 = arith.constant 0 : i32
    %c0_i32_0 = arith.constant 0 : i32
    %c0_i32_1 = arith.constant 0 : i32
    return %arg0, %c0_i32, %c0_i32_0 : i32, i32, i32
  }
  func.func @transform_1(%arg0: i32) -> (i32, i32) {
    %c0_i32 = arith.constant 0 : i32
    %c0_i32_0 = arith.constant 0 : i32
    %c0_i32_1 = arith.constant 0 : i32
    return %c0_i32, %c0_i32_0 : i32, i32
  }
  func.func @transform_2(%arg0: i32) -> (i32, i32) {
    %c0_i32 = arith.constant 0 : i32
    %c0_i32_0 = arith.constant 0 : i32
    %c0_i32_1 = arith.constant 0 : i32
    return %c0_i32, %c0_i32_0 : i32, i32
  }
  func.func @transform_3(%arg0: i32) -> (i32, i32) {
    %c0_i32 = arith.constant 0 : i32
    %c0_i32_0 = arith.constant 0 : i32
    %c0_i32_1 = arith.constant 0 : i32
    return %c0_i32, %c0_i32_0 : i32, i32
  }
  func.func @transform_4(%arg0: i32) -> (i32, i32) {
    %c0_i32 = arith.constant 0 : i32
    %c0_i32_0 = arith.constant 0 : i32
    %c0_i32_1 = arith.constant 0 : i32
    return %c0_i32, %c0_i32_0 : i32, i32
  }
  func.func @transform_5(%arg0: i32) -> (i32, i32) {
    %c0_i32 = arith.constant 0 : i32
    %c0_i32_0 = arith.constant 0 : i32
    %c0_i32_1 = arith.constant 0 : i32
    return %c0_i32, %c0_i32_0 : i32, i32
  }
  func.func @transform_6(%arg0: i32) -> (i32, i32) {
    %c0_i32 = arith.constant 0 : i32
    %c0_i32_0 = arith.constant 0 : i32
    %c0_i32_1 = arith.constant 0 : i32
    return %c0_i32, %c0_i32_0 : i32, i32
  }
  func.func @transform_7(%arg0: i32) -> (i32, i32) {
    %c0_i32 = arith.constant 0 : i32
    %c0_i32_0 = arith.constant 0 : i32
    %c0_i32_1 = arith.constant 0 : i32
    return %c0_i32, %c0_i32_0 : i32, i32
  }
  func.func @transform_8(%arg0: i32) -> (i32, i32) {
    %c0_i32 = arith.constant 0 : i32
    %c0_i32_0 = arith.constant 0 : i32
    %c0_i32_1 = arith.constant 0 : i32
    return %c0_i32, %c0_i32_0 : i32, i32
  }
  func.func @transform_9(%arg0: i32) -> (i32, i32) {
    %c0_i32 = arith.constant 0 : i32
    %c0_i32_0 = arith.constant 0 : i32
    %c0_i32_1 = arith.constant 0 : i32
    return %c0_i32, %c0_i32_0 : i32, i32
  }
  func.func @transform_10(%arg0: i32) -> (i32, i32) {
    %c0_i32 = arith.constant 0 : i32
    %c0_i32_0 = arith.constant 0 : i32
    %c0_i32_1 = arith.constant 0 : i32
    return %c0_i32, %c0_i32_0 : i32, i32
  }
  func.func @transform_11(%arg0: i32) -> (i32, i32) {
    %c0_i32 = arith.constant 0 : i32
    %c0_i32_0 = arith.constant 0 : i32
    %c0_i32_1 = arith.constant 0 : i32
    return %c0_i32, %c0_i32_0 : i32, i32
  }
  func.func @transform_12(%arg0: i32) -> (i32, i32, i32) {
    %c0_i32 = arith.constant 0 : i32
    %c0_i32_0 = arith.constant 0 : i32
    %c0_i32_1 = arith.constant 0 : i32
    return %arg0, %c0_i32, %c0_i32_0 : i32, i32, i32
  }
}

</mosaic_0001>

<bundles_post_ra>
// kernel: tpu_custom_call.1
= control target key start
LH: loop header
LB: loop body
LE: loop exit
PB: predicated region body
PF: predicated region fallthrough
CT: control target
= control target key end

     0   :  { %vm48_vm0 = vcmask 523264   ;;  %s6650_s0 = inlined_call_operand.vmem [shape: f32[2,8,192], index: 0, kind: input, shape index: {}]   ;;  %s6651_s1 = inlined_call_operand.vmem [shape: f32[1,192], index: 1, kind: input, shape index: {}]   ;;  %s6652_s2 = inlined_call_operand.vmem [shape: f32[1,192], index: 2, kind: input, shape index: {}]   ;;  %s6653_s3 = inlined_call_operand.vmem [shape: f32[192,768], index: 3, kind: input, shape index: {}]   ;;  %s6654_s4 = inlined_call_operand.vmem [shape: f32[768,192], index: 4, kind: input, shape index: {}]   ;;  %s6655_s5 = inlined_call_operand.vmem [shape: f32[1,192], index: 5, kind: input, shape index: {}]   ;;  %s6656_s6 = inlined_call_operand.vmem [shape: f32[1,192], index: 6, kind: input, shape index: {}]   ;;  %s6657_s7 = inlined_call_operand.vmem [shape: f32[1,192], index: 7, kind: input, shape index: {}]   ;;  %s6658_s8 = inlined_call_operand.vmem [shape: f32[192,768], index: 8, kind: input, shape index: {}]   ;;  %s6659_s9 = inlined_call_operand.vmem [shape: f32[1,768], index: 9, kind: input, shape index: {}]   ;;  %s6660_s10 = inlined_call_operand.vmem [shape: f32[768,192], index: 10, kind: input, shape index: {}]   ;;  %s6661_s11 = inlined_call_operand.vmem [shape: f32[1,192], index: 11, kind: input, shape index: {}]   ;;  %s6662_s12 = inlined_call_operand.hbm [shape: f32[2,8,192], index: 12, kind: output, shape index: {}]  }
   0x1   :  { %v4180_v0 = vld [vmem:[%s6650_s0] sm:$0xff]  ;;  %v4185_v1 = vld [vmem:[%s6650_s0 + $0x8] sm:$0xff]  ;;  %v4192_v3 = vld [vmem:[%s6650_s0 + $0x10] sm:$0xff] }
   0x2   :  { %v49_v2 = vsel %vm48_vm0, %v4185_v1, 0.0  ;;  %v4197_v4 = vld [vmem:[%s6650_s0 + $0x18] sm:$0xff] }
   0x3   :  { %17 = vsyncpa [#allocation5], 0  ;;  %v50_v5 = vadd.f32 %v49_v2, %v4180_v0  ;;  %v53_v6 = vsel %vm48_vm0, %v4197_v4, 0.0  ;;  %v207_v8 = vld [vmem:[%s6653_s3 + $0x2d8] sm:$0xff]  ;;  %v206_v9 = vld [vmem:[%s6653_s3 + $0x2d0] sm:$0xff]  ;;  %vm4108_vm1 = vmmov 0  }
   0x4   :  { %v54_v7 = vadd.f32 %v53_v6, %v4192_v3  ;;  %v209_v10 = vld [vmem:[%s6653_s3 + $0x2e8] sm:$0xff]  ;;  %266 = vmatprep.subr.mxu0 %v207_v8  ;;  %v208_v12 = vld [vmem:[%s6653_s3 + $0x2e0] sm:$0xff]  ;;  %v203_v14 = vld [vmem:[%s6653_s3 + $0x2b8] sm:$0xff]  ;;  %vm662_vm3 = vcmask 64512  }
   0x5   :  { %51 = vadd.xlane.f32.xlu0 %v50_v5  ;;  %343 = vmatprep.subr.mxu1 %v209_v10  ;;  %v201_v11 = vld [vmem:[%s6653_s3 + $0x2a8] sm:$0xff]  ;;  %v200_v13 = vld [vmem:[%s6653_s3 + $0x2a0] sm:$0xff]  ;;  %v195_v15 = vld [vmem:[%s6653_s3 + $0x278] sm:$0xff] }
   0x6   :  { %267 = vmatpush1.msra.mxu0 %v206_v9  ;;  %344 = vmatpush1.msra.mxu1 %v208_v12  ;;  %v202_v16 = vld [vmem:[%s6653_s3 + $0x2b0] sm:$0xff]  ;;  %v197_v18 = vld [vmem:[%s6653_s3 + $0x288] sm:$0xff]  ;;  %v196_v20 = vld [vmem:[%s6653_s3 + $0x280] sm:$0xff] }
   0x7   :  { %268 = vmatprep.subr.mxu0 %v201_v11  ;;  %345 = vmatprep.subr.mxu1 %v203_v14  ;;  %v194_v17 = vld [vmem:[%s6653_s3 + $0x270] sm:$0xff]  ;;  %v189_v19 = vld [vmem:[%s6653_s3 + $0x248] sm:$0xff]  ;;  %v191_v21 = vld [vmem:[%s6653_s3 + $0x258] sm:$0xff] }
   0x8   :  { %269 = vmatpush1.msra.mxu0 %v200_v13  ;;  %346 = vmatpush1.msra.mxu1 %v202_v16  ;;  %v188_v22 = vld [vmem:[%s6653_s3 + $0x240] sm:$0xff]  ;;  %v190_v23 = vld [vmem:[%s6653_s3 + $0x250] sm:$0xff]  ;;  %v183_v24 = vld [vmem:[%s6653_s3 + $0x218] sm:$0xff] }
   0x9   :  { %55 = vadd.xlane.f32.xlu0 %v54_v7  ;;  %270 = vmatprep.subr.mxu0 %v195_v15  ;;  %v185_v25 = vld [vmem:[%s6653_s3 + $0x228] sm:$0xff]  ;;  %v182_v26 = vld [vmem:[%s6653_s3 + $0x210] sm:$0xff]  ;;  %v184_v27 = vld [vmem:[%s6653_s3 + $0x220] sm:$0xff] }
   0xa   :  { %347 = vmatprep.subr.mxu1 %v197_v18  ;;  %271 = vmatpush1.msra.mxu0 %v194_v17  ;;  %v177_v28 = vld [vmem:[%s6653_s3 + $0x1e8] sm:$0xff]  ;;  %v179_v29 = vld [vmem:[%s6653_s3 + $0x1f8] sm:$0xff]  ;;  %v176_v30 = vld [vmem:[%s6653_s3 + $0x1e0] sm:$0xff] }
   0xb   :  { %348 = vmatpush1.msra.mxu1 %v196_v20  ;;  %272 = vmatprep.subr.mxu0 %v189_v19  ;;  %v178_v31 = vld [vmem:[%s6653_s3 + $0x1f0] sm:$0xff]  ;;  %v171_v32 = vld [vmem:[%s6653_s3 + $0x1b8] sm:$0xff]  ;;  %v173_v33 = vld [vmem:[%s6653_s3 + $0x1c8] sm:$0xff] }
   0xc   :  { %349 = vmatprep.subr.mxu1 %v191_v21  ;;  %273 = vmatpush1.msra.mxu0 %v188_v22  ;;  %v170_v34 = vld [vmem:[%s6653_s3 + $0x1b0] sm:$0xff]  ;;  %v172_v35 = vld [vmem:[%s6653_s3 + $0x1c0] sm:$0xff]  ;;  %v165_v36 = vld [vmem:[%s6653_s3 + $0x188] sm:$0xff] }
   0xd   :  { %350 = vmatpush1.msra.mxu1 %v190_v23  ;;  %274 = vmatprep.subr.mxu0 %v183_v24  ;;  %v167_v37 = vld [vmem:[%s6653_s3 + $0x198] sm:$0xff]  ;;  %v164_v38 = vld [vmem:[%s6653_s3 + $0x180] sm:$0xff]  ;;  %v166_v39 = vld [vmem:[%s6653_s3 + $0x190] sm:$0xff] }
   0xe   :  { %351 = vmatprep.subr.mxu1 %v185_v25  ;;  %275 = vmatpush1.msra.mxu0 %v182_v26  ;;  %v159_v40 = vld [vmem:[%s6653_s3 + $0x158] sm:$0xff]  ;;  %v161_v41 = vld [vmem:[%s6653_s3 + $0x168] sm:$0xff]  ;;  %v158_v42 = vld [vmem:[%s6653_s3 + $0x150] sm:$0xff] }
   0xf   :  { %352 = vmatpush1.msra.mxu1 %v184_v27  ;;  %276 = vmatprep.subr.mxu0 %v177_v28  ;;  %v160_v43 = vld [vmem:[%s6653_s3 + $0x160] sm:$0xff]  ;;  %v153_v44 = vld [vmem:[%s6653_s3 + $0x128] sm:$0xff]  ;;  %v155_v45 = vld [vmem:[%s6653_s3 + $0x138] sm:$0xff] }
  0x10   :  { %353 = vmatprep.subr.mxu1 %v179_v29  ;;  %277 = vmatpush1.msra.mxu0 %v176_v30  ;;  %v152_v46 = vld [vmem:[%s6653_s3 + $0x120] sm:$0xff]  ;;  %v154_v47 = vld [vmem:[%s6653_s3 + $0x130] sm:$0xff]  ;;  %v147_v48 = vld [vmem:[%s6653_s3 + $0xf8] sm:$0xff] }
  0x11   :  { %354 = vmatpush1.msra.mxu1 %v178_v31  ;;  %278 = vmatprep.subr.mxu0 %v171_v32  ;;  %v149_v49 = vld [vmem:[%s6653_s3 + $0x108] sm:$0xff]  ;;  %v146_v50 = vld [vmem:[%s6653_s3 + $0xf0] sm:$0xff]  ;;  %v148_v51 = vld [vmem:[%s6653_s3 + $0x100] sm:$0xff] }
  0x12   :  { %355 = vmatprep.subr.mxu1 %v173_v33  ;;  %279 = vmatpush1.msra.mxu0 %v170_v34  ;;  %v141_v52 = vld [vmem:[%s6653_s3 + $0xc8] sm:$0xff]  ;;  %v143_v53 = vld [vmem:[%s6653_s3 + $0xd8] sm:$0xff]  ;;  %v140_v54 = vld [vmem:[%s6653_s3 + $0xc0] sm:$0xff] }
  0x13   :  { %356 = vmatpush1.msra.mxu1 %v172_v35  ;;  %280 = vmatprep.subr.mxu0 %v165_v36  ;;  %v134_v9 = vld [vmem:[%s6653_s3 + $0x90] sm:$0xff]  ;;  %v137_v10 = vld [vmem:[%s6653_s3 + $0xa8] sm:$0xff]  ;;  %v136_v12 = vld [vmem:[%s6653_s3 + $0xa0] sm:$0xff] }
  0x14   :  { %357 = vmatprep.subr.mxu1 %v167_v37  ;;  %281 = vmatpush1.msra.mxu0 %v164_v38  ;;  %v129_v11 = vld [vmem:[%s6653_s3 + $0x68] sm:$0xff]  ;;  %v128_v13 = vld [vmem:[%s6653_s3 + $0x60] sm:$0xff]  ;;  %v131_v14 = vld [vmem:[%s6653_s3 + $0x78] sm:$0xff] }
  0x15   :  { %358 = vmatpush1.msra.mxu1 %v166_v39  ;;  %282 = vmatprep.subr.mxu0 %v159_v40  ;;  %v123_v15 = vld [vmem:[%s6653_s3 + $0x38] sm:$0xff]  ;;  %v130_v16 = vld [vmem:[%s6653_s3 + $0x70] sm:$0xff]  ;;  %v125_v18 = vld [vmem:[%s6653_s3 + $0x48] sm:$0xff] }
  0x16   :  { %359 = vmatprep.subr.mxu1 %v161_v41  ;;  %283 = vmatpush1.msra.mxu0 %v158_v42  ;;  %v122_v17 = vld [vmem:[%s6653_s3 + $0x30] sm:$0xff]  ;;  %v117_v19 = vld [vmem:[%s6653_s3 + $0x8] sm:$0xff]  ;;  %v124_v20 = vld [vmem:[%s6653_s3 + $0x40] sm:$0xff] }
  0x17   :  { %360 = vmatpush1.msra.mxu1 %v160_v43  ;;  %284 = vmatprep.subr.mxu0 %v153_v44  ;;  %v116_v21 = vld [vmem:[%s6653_s3] sm:$0xff]  ;;  %v119_v22 = vld [vmem:[%s6653_s3 + $0x18] sm:$0xff]  ;;  %v118_v24 = vld [vmem:[%s6653_s3 + $0x10] sm:$0xff] }
  0x18   :  { %361 = vmatprep.subr.mxu1 %v155_v45  ;;  %285 = vmatpush1.msra.mxu0 %v152_v46  ;;  %v255_v23 = vld [vmem:[%s6653_s3 + $0x458] sm:$0xff]  ;;  %v254_v25 = vld [vmem:[%s6653_s3 + $0x450] sm:$0xff]  ;;  %v257_v26 = vld [vmem:[%s6653_s3 + $0x468] sm:$0xff] }
  0x19   :  { %362 = vmatpush1.msra.mxu1 %v154_v47  ;;  %286 = vmatprep.subr.mxu0 %v147_v48  ;;  %v249_v27 = vld [vmem:[%s6653_s3 + $0x428] sm:$0xff]  ;;  %v256_v28 = vld [vmem:[%s6653_s3 + $0x460] sm:$0xff]  ;;  %v251_v30 = vld [vmem:[%s6653_s3 + $0x438] sm:$0xff] }
  0x1a   :  { %363 = vmatprep.subr.mxu1 %v149_v49  ;;  %287 = vmatpush1.msra.mxu0 %v146_v50  ;;  %v248_v29 = vld [vmem:[%s6653_s3 + $0x420] sm:$0xff]  ;;  %v243_v31 = vld [vmem:[%s6653_s3 + $0x3f8] sm:$0xff]  ;;  %v250_v32 = vld [vmem:[%s6653_s3 + $0x430] sm:$0xff] }
  0x1b   :  { %364 = vmatpush1.msra.mxu1 %v148_v51  ;;  %288 = vmatprep.subr.mxu0 %v141_v52  ;;  %v242_v33 = vld [vmem:[%s6653_s3 + $0x3f0] sm:$0xff]  ;;  %v245_v34 = vld [vmem:[%s6653_s3 + $0x408] sm:$0xff]  ;;  %v244_v36 = vld [vmem:[%s6653_s3 + $0x400] sm:$0xff] }
  0x1c   :  { %365 = vmatprep.subr.mxu1 %v143_v53  ;;  %289 = vmatpush1.msra.mxu0 %v140_v54  ;;  %v237_v35 = vld [vmem:[%s6653_s3 + $0x3c8] sm:$0xff]  ;;  %v236_v37 = vld [vmem:[%s6653_s3 + $0x3c0] sm:$0xff]  ;;  %v239_v38 = vld [vmem:[%s6653_s3 + $0x3d8] sm:$0xff] }
  0x1d   :  { %v231_v39 = vld [vmem:[%s6653_s3 + $0x398] sm:$0xff]  ;;  %v238_v40 = vld [vmem:[%s6653_s3 + $0x3d0] sm:$0xff]  ;;  %v233_v42 = vld [vmem:[%s6653_s3 + $0x3a8] sm:$0xff] }
  0x1e   :  { %v230_v41 = vld [vmem:[%s6653_s3 + $0x390] sm:$0xff]  ;;  %v225_v43 = vld [vmem:[%s6653_s3 + $0x368] sm:$0xff]  ;;  %v232_v44 = vld [vmem:[%s6653_s3 + $0x3a0] sm:$0xff] }
  0x1f   :  { %v224_v45 = vld [vmem:[%s6653_s3 + $0x360] sm:$0xff]  ;;  %v227_v46 = vld [vmem:[%s6653_s3 + $0x378] sm:$0xff]  ;;  %v226_v48 = vld [vmem:[%s6653_s3 + $0x370] sm:$0xff] }
  0x20   :  { %v219_v47 = vld [vmem:[%s6653_s3 + $0x338] sm:$0xff]  ;;  %v218_v49 = vld [vmem:[%s6653_s3 + $0x330] sm:$0xff]  ;;  %v221_v50 = vld [vmem:[%s6653_s3 + $0x348] sm:$0xff] }
  0x21   :  { %v213_v51 = vld [vmem:[%s6653_s3 + $0x308] sm:$0xff]  ;;  %v220_v52 = vld [vmem:[%s6653_s3 + $0x340] sm:$0xff]  ;;  %v215_v54 = vld [vmem:[%s6653_s3 + $0x318] sm:$0xff] }
  0x22   :  { %v212_v53 = vld [vmem:[%s6653_s3 + $0x300] sm:$0xff] }
  0x8e   :  { %v52_v55 = vpop.xlane.xlu0 %51 }
  0x8f   :  { %v58_v56 = vmul.f32 0.0052083335, %v52_v55  ;;  %v214_v55 = vld [vmem:[%s6653_s3 + $0x310] sm:$0xff] }
  0x91   :  { %v4345_v57 = vsub.f32 %v4180_v0, %v58_v56  ;;  %v4348_v58 = vsub.f32 %v4185_v1, %v58_v56  ;;  %v211_v56 = vld [vmem:[%s6653_s3 + $0x2f8] sm:$0xff] }
  0x92   :  { %v56_v59 = vpop.xlane.xlu0 %55 }
  0x93   :  { %v59_v60 = vmul.f32 0.0052083335, %v56_v59  ;;  %v64_v61 = vmul.f32 %v4345_v57, %v4345_v57  ;;  %v65_v62 = vmul.f32 %v4348_v58, %v4348_v58 }
  0x95   :  { %v4355_v63 = vsub.f32 %v4192_v3, %v59_v60  ;;  %v4358_v2 = vsub.f32 %v4197_v4, %v59_v60  ;;  %v68_v0 = vsel %vm48_vm0, %v65_v62, 0.0  ;;  %v135_v3 = vld [vmem:[%s6653_s3 + $0x98] sm:$0xff]  ;;  %v142_v4 = vld [vmem:[%s6653_s3 + $0xd0] sm:$0xff] }
  0x96   :  { %v69_v5 = vadd.f32 %v68_v0, %v64_v61  ;;  %290 = vmatprep.subr.mxu0 %v135_v3  ;;  %366 = vmatpush1.msra.mxu1 %v142_v4  ;;  %v46_v3 = vld [vmem:[%s6651_s1] sm:$0x3] }
  0x97   :  { %v66_v1 = vmul.f32 %v4355_v63, %v4355_v63  ;;  %v67_v6 = vmul.f32 %v4358_v2, %v4358_v2  ;;  %291 = vmatpush1.msra.mxu0 %v134_v9  ;;  %367 = vmatprep.subr.mxu1 %v137_v10  ;;  %v47_v4 = vld [vmem:[%s6652_s2] sm:$0x3] }
  0x98   :  { %70 = vadd.xlane.f32.xlu1 %v69_v5  ;;  %292 = vmatprep.subr.mxu0 %v129_v11  ;;  %v87_v5 = vlaneseq }
  0x99   :  { %v72_v7 = vsel %vm48_vm0, %v67_v6, 0.0  ;;  %368 = vmatpush1.msra.mxu1 %v136_v12  ;;  %293 = vmatpush1.msra.mxu0 %v128_v13 }
  0x9a   :  { %v73_v8 = vadd.f32 %v72_v7, %v66_v1  ;;  %369 = vmatprep.subr.mxu1 %v131_v14  ;;  %294 = vmatprep.subr.mxu0 %v123_v15  ;;  %v4517_v6 = vshrl.u32 %v87_v5, 7 }
  0x9b   :  { %370 = vmatpush1.msra.mxu1 %v130_v16  ;;  %295 = vmatpush1.msra.mxu0 %v122_v17 }
  0x9c   :  { %74 = vadd.xlane.f32.xlu1 %v73_v8  ;;  %371 = vmatprep.subr.mxu1 %v125_v18  ;;  %v4520_v7 = vsub.s32 1, %v4517_v6  ;;  %v4523_v8 = vsub.s32 0, %v4517_v6 }
  0x9d   :  { %296 = vmatprep.subr.mxu0 %v117_v19  ;;  %372 = vmatpush1.msra.mxu1 %v124_v20 }
  0x9e   :  { %297 = vmatpush1.msra.mxu0 %v116_v21  ;;  %373 = vmatprep.subr.mxu1 %v119_v22  ;;  %v94_v9 = vrot.slane %v46_v3, %v4520_v7  ;;  %v90_v10 = vrot.slane %v46_v3, %v4523_v8  ;;  %v109_v13 = vrot.slane %v47_v4, %v4520_v7  ;;  %v234_v3 = vld [vmem:[%s6653_s3 + $0x3b0] sm:$0xff] }
  0x9f   :  { %314 = vmatprep.subr.mxu0 %v255_v23  ;;  %374 = vmatpush1.msra.mxu1 %v118_v24  ;;  %v105_v15 = vrot.slane %v47_v4, %v4523_v8  ;;  %v229_v4 = vld [vmem:[%s6653_s3 + $0x388] sm:$0xff] }
  0xa0   :  { %315 = vmatpush2.msra.mxu0 %v254_v25  ;;  %391 = vmatprep.subr.mxu1 %v257_v26  ;;  %v199_v25 = vld [vmem:[%s6653_s3 + $0x298] sm:$0xff] }
  0xa1   :  { %316 = vmatprep.subr.mxu0 %v249_v27  ;;  %392 = vmatpush2.msra.mxu1 %v256_v28  ;;  %v198_v27 = vld [vmem:[%s6653_s3 + $0x290] sm:$0xff]  ;;  %v193_v28 = vld [vmem:[%s6653_s3 + $0x268] sm:$0xff] }
  0xa2   :  { %317 = vmatpush2.msra.mxu0 %v248_v29  ;;  %393 = vmatprep.subr.mxu1 %v251_v30  ;;  %v192_v29 = vld [vmem:[%s6653_s3 + $0x260] sm:$0xff]  ;;  %v187_v30 = vld [vmem:[%s6653_s3 + $0x238] sm:$0xff] }
  0xa3   :  { %318 = vmatprep.subr.mxu0 %v243_v31  ;;  %394 = vmatpush2.msra.mxu1 %v250_v32  ;;  %v186_v31 = vld [vmem:[%s6653_s3 + $0x230] sm:$0xff]  ;;  %v181_v32 = vld [vmem:[%s6653_s3 + $0x208] sm:$0xff] }
  0xa4   :  { %319 = vmatpush2.msra.mxu0 %v242_v33  ;;  %395 = vmatprep.subr.mxu1 %v245_v34  ;;  %v180_v33 = vld [vmem:[%s6653_s3 + $0x200] sm:$0xff]  ;;  %v175_v34 = vld [vmem:[%s6653_s3 + $0x1d8] sm:$0xff] }
  0xa5   :  { %320 = vmatprep.subr.mxu0 %v237_v35  ;;  %396 = vmatpush2.msra.mxu1 %v244_v36  ;;  %v174_v35 = vld [vmem:[%s6653_s3 + $0x1d0] sm:$0xff]  ;;  %v169_v36 = vld [vmem:[%s6653_s3 + $0x1a8] sm:$0xff] }
  0xa6   :  { %321 = vmatpush2.msra.mxu0 %v236_v37  ;;  %397 = vmatprep.subr.mxu1 %v239_v38  ;;  %v168_v37 = vld [vmem:[%s6653_s3 + $0x1a0] sm:$0xff]  ;;  %v163_v38 = vld [vmem:[%s6653_s3 + $0x178] sm:$0xff] }
  0xa7   :  { %322 = vmatprep.subr.mxu0 %v231_v39  ;;  %398 = vmatpush2.msra.mxu1 %v238_v40  ;;  %v162_v39 = vld [vmem:[%s6653_s3 + $0x170] sm:$0xff]  ;;  %v157_v40 = vld [vmem:[%s6653_s3 + $0x148] sm:$0xff] }
  0xa8   :  { %323 = vmatpush2.msra.mxu0 %v230_v41  ;;  %399 = vmatprep.subr.mxu1 %v233_v42  ;;  %v156_v41 = vld [vmem:[%s6653_s3 + $0x140] sm:$0xff]  ;;  %v151_v42 = vld [vmem:[%s6653_s3 + $0x118] sm:$0xff] }
  0xa9   :  { %324 = vmatprep.subr.mxu0 %v225_v43  ;;  %400 = vmatpush2.msra.mxu1 %v232_v44  ;;  %v150_v43 = vld [vmem:[%s6653_s3 + $0x110] sm:$0xff]  ;;  %v145_v44 = vld [vmem:[%s6653_s3 + $0xe8] sm:$0xff] }
  0xaa   :  { %325 = vmatpush2.msra.mxu0 %v224_v45  ;;  %401 = vmatprep.subr.mxu1 %v227_v46  ;;  %v144_v45 = vld [vmem:[%s6653_s3 + $0xe0] sm:$0xff]  ;;  %v139_v46 = vld [vmem:[%s6653_s3 + $0xb8] sm:$0xff] }
  0xab   :  { %326 = vmatprep.subr.mxu0 %v219_v47  ;;  %402 = vmatpush2.msra.mxu1 %v226_v48  ;;  %v138_v47 = vld [vmem:[%s6653_s3 + $0xb0] sm:$0xff]  ;;  %v133_v48 = vld [vmem:[%s6653_s3 + $0x88] sm:$0xff] }
  0xac   :  { %327 = vmatpush2.msra.mxu0 %v218_v49  ;;  %403 = vmatprep.subr.mxu1 %v221_v50  ;;  %v132_v49 = vld [vmem:[%s6653_s3 + $0x80] sm:$0xff]  ;;  %v127_v50 = vld [vmem:[%s6653_s3 + $0x58] sm:$0xff] }
  0xad   :  { %328 = vmatprep.subr.mxu0 %v213_v51  ;;  %404 = vmatpush2.msra.mxu1 %v220_v52  ;;  %v126_v51 = vld [vmem:[%s6653_s3 + $0x50] sm:$0xff]  ;;  %v121_v52 = vld [vmem:[%s6653_s3 + $0x28] sm:$0xff] }
  0xae   :  { %329 = vmatpush2.msra.mxu0 %v212_v53  ;;  %405 = vmatprep.subr.mxu1 %v215_v54  ;;  %v120_v53 = vld [vmem:[%s6653_s3 + $0x20] sm:$0xff]  ;;  %v259_v54 = vld [vmem:[%s6653_s3 + $0x478] sm:$0xff] }
  0xaf   :  { %406 = vmatpush2.msra.mxu1 %v214_v55  ;;  %420 = vmatprep.subr.mxu0 %v211_v56  ;;  %v258_v55 = vld [vmem:[%s6653_s3 + $0x470] sm:$0xff]  ;;  %v253_v56 = vld [vmem:[%s6653_s3 + $0x448] sm:$0xff] }
 0x121   :  { %v71_v59 = vpop.xlane.xlu1 %70 }
 0x122   :  { %v76_v60 = vmul.f32 0.0052083335, %v71_v59  ;;  %v252_v59 = vld [vmem:[%s6653_s3 + $0x440] sm:$0xff] }
 0x124   :  { %v78_v61 = vadd.f32 1e-05, %v76_v60  ;;  %v247_v60 = vld [vmem:[%s6653_s3 + $0x418] sm:$0xff] }
 0x125   :  { %v75_v62 = vpop.xlane.xlu1 %74 }
 0x126   :  { %4025 = vrsqrt.f32 %v78_v61  ;;  %v77_v0 = vmul.f32 0.0052083335, %v75_v62  ;;  %v246_v61 = vld [vmem:[%s6653_s3 + $0x410] sm:$0xff]  ;;  %v241_v62 = vld [vmem:[%s6653_s3 + $0x3e8] sm:$0xff] }
 0x128   :  { %v79_v1 = vadd.f32 1e-05, %v77_v0  ;;  %v240_v0 = vld [vmem:[%s6653_s3 + $0x3e0] sm:$0xff] }
 0x12a   :  { %4027 = vrsqrt.f32 %v79_v1  ;;  %v235_v1 = vld [vmem:[%s6653_s3 + $0x3b8] sm:$0xff] }
 0x133   :  { %v4026_v11 = vpop.eup %4025 }
 0x134   :  { %v83_v12 = vmul.f32 %v4026_v11, %v4348_v58  ;;  %v82_v14 = vmul.f32 %v4026_v11, %v4345_v57  ;;  %v210_v58 = vld [vmem:[%s6653_s3 + $0x2f0] sm:$0xff]  ;;  %v205_v57 = vld [vmem:[%s6653_s3 + $0x2c8] sm:$0xff] }
 0x135   :  { %v222_v11 = vld [vmem:[%s6653_s3 + $0x350] sm:$0xff] }
 0x136   :  { %v98_v16 = vmul.f32 %v94_v9, %v83_v12  ;;  %v97_v17 = vmul.f32 %v90_v10, %v82_v14  ;;  %v217_v12 = vld [vmem:[%s6653_s3 + $0x328] sm:$0xff]  ;;  %v4107_v14 = vmov 0.0  }
 0x137   :  { %v4028_v18 = vpop.eup %4027  ;;  %3930 = vmatprep.subr.mxu1 %v4107_v14 }
 0x138   :  { %v113_v19 = vadd.f32 %v109_v13, %v98_v16  ;;  %v4537_v20 = vadd.f32 %v105_v15, %v97_v17  ;;  %v85_v21 = vmul.f32 %v4028_v18, %v4358_v2  ;;  %v84_v22 = vmul.f32 %v4028_v18, %v4355_v63  ;;  %v204_v63 = vld [vmem:[%s6653_s3 + $0x2c0] sm:$0xff] }
 0x13a   :  { %3828 = vmatprep.mubr.msk.f32.mxu0 %vm48_vm0, %v113_v19  ;;  %3830 = vmatprep.mubr.msk.f32.mxu1 %vm48_vm0, %v113_v19  ;;  %v100_v23 = vmul.f32 %v94_v9, %v85_v21  ;;  %v99_v24 = vmul.f32 %v90_v10, %v84_v22  ;;  %v228_v9 = vld [vmem:[%s6653_s3 + $0x380] sm:$0xff]  ;;  %v223_v10 = vld [vmem:[%s6653_s3 + $0x358] sm:$0xff]  ;;  %v512_v22 = vand.u32 127, %v87_v5 }
 0x13b   :  { %331 = vmatmul.mubr.f32.vlgmr.msra.gmra.mxu0 %v4537_v20  ;;  %408 = vmatmul.mubr.f32.vlgmr.msra.gmra.mxu1 %v4537_v20 }
 0x13c   :  { %421 = vmatpush1.msra.mxu0 %v210_v58  ;;  %v4554_v2 = vadd.f32 %v109_v13, %v100_v23  ;;  %v4559_v26 = vadd.f32 %v105_v15, %v99_v24  ;;  %v216_v13 = vld [vmem:[%s6653_s3 + $0x320] sm:$0xff]  ;;  %vm4730_vm2 = vcmp.le.s32.totalorder %v512_v22, %v4517_v6 }
 0x13d   :  { %422 = vmatprep.subr.mxu0 %v205_v57  ;;  %v2485_v23 = vld [vmem:[%s6654_s4 + $0x180] sm:$0xff] }
 0x13e   :  { %423 = vmatpush1.msra.mxu0 %v204_v63  ;;  %3829 = vmatprep.mubr.msk.f32.mxu0 %vm48_vm0, %v4554_v2 }
 0x13f   :  { %3831 = vmatprep.mubr.msk.f32.mxu1 %vm48_vm0, %v4554_v2  ;;  %424 = vmatprep.subr.mxu0 %v199_v25 }
 0x140   :  { %337 = vmatmul.mubr.f32.gmra.mxu0 %v4559_v26  ;;  %414 = vmatmul.mubr.f32.gmra.mxu1 %v4559_v26 }
 0x141   :  { %425 = vmatpush1.msra.mxu0 %v198_v27  ;;  %3832 = vmatprep.mubr.msk.f32.mxu0 %vm48_vm0, %v113_v19 }
 0x142   :  { %426 = vmatprep.subr.mxu0 %v193_v28  ;;  %3932 = vmatprep.mubr.msk.f32.mxu1 %vm4108_vm1, %v4107_v14 }
 0x143   :  { %427 = vmatpush1.msra.mxu0 %v192_v29 }
 0x144   :  { %428 = vmatprep.subr.mxu0 %v187_v30 }
 0x145   :  { %429 = vmatpush1.msra.mxu0 %v186_v31 }
 0x146   :  { %430 = vmatprep.subr.mxu0 %v181_v32 }
 0x147   :  { %431 = vmatpush1.msra.mxu0 %v180_v33 }
 0x148   :  { %432 = vmatprep.subr.mxu0 %v175_v34 }
 0x149   :  { %433 = vmatpush1.msra.mxu0 %v174_v35 }
 0x14a   :  { %434 = vmatprep.subr.mxu0 %v169_v36 }
 0x14b   :  { %435 = vmatpush1.msra.mxu0 %v168_v37 }
 0x14c   :  { %436 = vmatprep.subr.mxu0 %v163_v38 }
 0x14d   :  { %437 = vmatpush1.msra.mxu0 %v162_v39 }
 0x14e   :  { %438 = vmatprep.subr.mxu0 %v157_v40 }
 0x14f   :  { %439 = vmatpush1.msra.mxu0 %v156_v41 }
 0x150   :  { %440 = vmatprep.subr.mxu0 %v151_v42 }
 0x151   :  { %441 = vmatpush1.msra.mxu0 %v150_v43 }
 0x152   :  { %442 = vmatprep.subr.mxu0 %v145_v44 }
 0x153   :  { %443 = vmatpush1.msra.mxu0 %v144_v45 }
 0x154   :  { %444 = vmatprep.subr.mxu0 %v139_v46 }
 0x155   :  { %445 = vmatpush1.msra.mxu0 %v138_v47 }
 0x156   :  { %446 = vmatprep.subr.mxu0 %v133_v48 }
 0x157   :  { %447 = vmatpush1.msra.mxu0 %v132_v49 }
 0x158   :  { %448 = vmatprep.subr.mxu0 %v127_v50 }
 0x159   :  { %449 = vmatpush1.msra.mxu0 %v126_v51 }
 0x15a   :  { %450 = vmatprep.subr.mxu0 %v121_v52 }
 0x15b   :  { %451 = vmatpush1.msra.mxu0 %v120_v53 }
 0x15c   :  { %468 = vmatprep.subr.mxu0 %v259_v54 }
 0x15d   :  { %469 = vmatpush2.msra.mxu0 %v258_v55 }
 0x15e   :  { %470 = vmatprep.subr.mxu0 %v253_v56 }
 0x15f   :  { %471 = vmatpush2.msra.mxu0 %v252_v59 }
 0x160   :  { %472 = vmatprep.subr.mxu0 %v247_v60 }
 0x161   :  { %473 = vmatpush2.msra.mxu0 %v246_v61 }
 0x162   :  { %474 = vmatprep.subr.mxu0 %v241_v62 }
 0x163   :  { %475 = vmatpush2.msra.mxu0 %v240_v0 }
 0x164   :  { %476 = vmatprep.subr.mxu0 %v235_v1 }
 0x165   :  { %477 = vmatpush2.msra.mxu0 %v234_v3 }
 0x166   :  { %478 = vmatprep.subr.mxu0 %v229_v4 }
 0x167   :  { %479 = vmatpush2.msra.mxu0 %v228_v9 }
 0x168   :  { %480 = vmatprep.subr.mxu0 %v223_v10 }
 0x169   :  { %481 = vmatpush2.msra.mxu0 %v222_v11 }
 0x16a   :  { %482 = vmatprep.subr.mxu0 %v217_v12 }
 0x16b   :  { %483 = vmatpush2.msra.mxu0 %v216_v13 }
 0x16c   :  { %485 = vmatmul.mubr.f32.vlgmr.msra.gmra.mxu0 %v4537_v20  ;;  %3900 = vmatprep.subr.mxu0 %v4107_v14 }
 0x16d   :  { %3833 = vmatprep.mubr.msk.f32.mxu0 %vm48_vm0, %v4554_v2 }
 0x170   :  { %491 = vmatmul.mubr.f32.gmra.mxu0 %v4559_v26 }
 0x171   :  { %3902 = vmatprep.mubr.msk.f32.mxu0 %vm4108_vm1, %v4107_v14 }
 0x1fb   :  { %v332_v15 = vpop.f32.mrf.mxu0  ;;  %v4751_v46 = vpop.f32.mrf.mxu1 }
 0x1fc   :  { %3901 = vmatpush3.xpose.msra.mxu0 %v332_v15 }
 0x1fd   :  { %v4707_v16 = vpop.f32.mrf.mxu0  ;;  %3905 = vmatprep.subr.mxu0 %v4107_v14  ;;  %v411_v47 = vpop.f32.mrf.mxu1 }
 0x1fe   :  { %3931 = vmatpush3.msra.mxu1 %v4707_v16 }
 0x1ff   :  { %3903 = vmatmul.mubr.f32.vlgmr.msra.gmra.mxu0 %v332_v15  ;;  %3935 = vmatprep.subr.mxu1 %v4107_v14 }
 0x200   :  { %v338_v17 = vpop.f32.mrf.mxu0  ;;  %3907 = vmatprep.mubr.msk.f32.mxu0 %vm4108_vm1, %v4107_v14 }
 0x201   :  { %3906 = vmatpush3.xpose.msra.mxu0 %v338_v17 }
 0x202   :  { %3910 = vmatprep.subr.mxu0 %v4107_v14  ;;  %v4718_v18 = vpop.f32.mrf.mxu0 }
 0x204   :  { %3908 = vmatmul.mubr.f32.vlgmr.msra.gmra.mxu0 %v338_v17 }
 0x205   :  { %3911 = vmatpush3.msra.mxu0 %v332_v15  ;;  %3912 = vmatprep.mubr.msk.f32.mxu0 %vm4108_vm1, %v4107_v14 }
 0x206   :  { %3915 = vmatprep.subr.mxu0 %v4107_v14 }
 0x22c   :  { %v4720_v19 = vpop.f32.mrf.mxu0 }
 0x22e   :  { %v4722_v20 = vpop.f32.mrf.mxu0 }
 0x230   :  { %v4724_v21 = vpop.f32.mrf.mxu0 }
 0x232   :  { %v4727_v58 = vpop.f32.mrf.mxu0 }
 0x2bf   :  { %v582_v57 = vpop.f32.mrf.mxu0 }
 0x2c0   :  { %v656_v24 = vmul.f32 0.07216878, %v582_v57 }
 0x2c1   :  { %v3904_v63 = vpop.f32.mrf.mxu0 }
 0x2c2   :  { %v660_v2 = vsel %vm4730_vm2, %v656_v24, -inf }
 0x2c3   :  { %v663_v25 = vsel %vm662_vm3, %v660_v2, -inf }
 0x2c4   :  { %v652_v26 = vpop.f32.mrf.mxu0  ;;  %664 = vmax.xlane.f32.xlu0 %v663_v25 }
 0x2c5   :  { %v657_v27 = vmul.f32 0.07216878, %v652_v26 }
 0x2c6   :  { %v3909_v5 = vpop.f32.mrf.mxu0 }
 0x2c7   :  { %v661_v28 = vsel %vm4730_vm2, %v657_v27, -inf  ;;  %v415_v27 = vpop.f32.mrf.mxu1 }
 0x2c8   :  { %v666_v29 = vsel %vm662_vm3, %v661_v28, -inf }
 0x2c9   :  { %667 = vmax.xlane.f32.xlu1 %v666_v29 }
 0x34d   :  { %v665_v30 = vpop.xlane.xlu0 %664 }
 0x34e   :  { %v669_v31 = vsub.f32 %v660_v2, %v665_v30 }
 0x350   :  { %v671_v32 = vmul.f32 1.442695, %v669_v31 }
 0x352   :  { %4029 = vpow2.f32 %v671_v32  ;;  %v668_v33 = vpop.xlane.xlu1 %667 }
 0x353   :  { %v670_v34 = vsub.f32 %v661_v28, %v668_v33 }
 0x355   :  { %v673_v35 = vmul.f32 1.442695, %v670_v34 }
 0x357   :  { %4031 = vpow2.f32 %v673_v35 }
 0x35f   :  { %v4030_v36 = vpop.eup %4029 }
 0x360   :  { %v675_v37 = vsel %vm662_vm3, %v4030_v36, 0.0 }
 0x361   :  { %676 = vadd.xlane.f32.xlu0 %v675_v37 }
 0x364   :  { %v4032_v38 = vpop.eup %4031 }
 0x365   :  { %v678_v39 = vsel %vm662_vm3, %v4032_v38, 0.0 }
 0x366   :  { %679 = vadd.xlane.f32.xlu1 %v678_v39 }
 0x3ea   :  { %v677_v40 = vpop.xlane.xlu0 %676 }
 0x3eb   :  { %4033 = vrcp.f32 %v677_v40 }
 0x3ef   :  { %v680_v41 = vpop.xlane.xlu1 %679 }
 0x3f0   :  { %4035 = vrcp.f32 %v680_v41 }
 0x3f8   :  { %v4034_v42 = vpop.eup %4033 }
 0x3f9   :  { %v685_v43 = vmul.f32 %v4034_v42, %v4030_v36 }
 0x3fb   :  { %3913 = vmatmul.mubr.msk.f32.vlgmr.msra.gmra.mxu0 %vm662_vm3, %v685_v43 }
 0x3fc   :  { %3916 = vmatpush3.msra.mxu0 %v338_v17  ;;  %3917 = vmatprep.mubr.msk.f32.mxu0 %vm4108_vm1, %v4107_v14 }
 0x3fd   :  { %v4036_v44 = vpop.eup %4035  ;;  %3920 = vmatprep.subr.mxu0 %v4107_v14 }
 0x3fe   :  { %v686_v45 = vmul.f32 %v4036_v44, %v4032_v38 }
 0x400   :  { %3918 = vmatmul.mubr.msk.f32.vlgmr.msra.gmra.mxu0 %vm662_vm3, %v686_v45 }
 0x401   :  { %3921 = vmatpush3.xpose.msra.mxu0 %v4707_v16  ;;  %3922 = vmatprep.mubr.msk.f32.mxu0 %vm4108_vm1, %v4107_v14 }
 0x402   :  { %3925 = vmatprep.subr.mxu0 %v4107_v14 }
 0x404   :  { %3923 = vmatmul.mubr.f32.vlgmr.msra.gmra.mxu0 %v4707_v16 }
 0x405   :  { %3926 = vmatpush3.xpose.msra.mxu0 %v4718_v18  ;;  %3927 = vmatprep.mubr.msk.f32.mxu0 %vm4108_vm1, %v4107_v14 }
 0x406   :  { %3960 = vmatprep.subr.mxu0 %v4107_v14 }
 0x408   :  { %3928 = vmatmul.mubr.f32.vlgmr.msra.gmra.mxu0 %v4718_v18 }
 0x409   :  { %3961 = vmatpush3.xpose.msra.mxu0 %v411_v47  ;;  %3962 = vmatprep.mubr.msk.f32.mxu0 %vm4108_vm1, %v4107_v14 }
 0x40a   :  { %3970 = vmatprep.subr.mxu0 %v4107_v14 }
 0x40c   :  { %3963 = vmatmul.mubr.f32.vlgmr.msra.gmra.mxu0 %v411_v47 }
 0x40d   :  { %3971 = vmatpush3.msra.mxu0 %v411_v47  ;;  %3972 = vmatprep.mubr.msk.f32.mxu0 %vm4108_vm1, %v4107_v14 }
 0x40e   :  { %3980 = vmatprep.subr.mxu0 %v4107_v14 }
 0x4bb   :  { %v4765_v48 = vpop.f32.mrf.mxu0 }
 0x4bd   :  { %v3914_v49 = vpop.f32.mrf.mxu0 }
 0x4c0   :  { %v4767_v50 = vpop.f32.mrf.mxu0 }
 0x4c2   :  { %v3919_v51 = vpop.f32.mrf.mxu0 }
 0x4c4   :  { %v903_v52 = vpop.f32.mrf.mxu0 }
 0x4c5   :  { %v977_v53 = vmul.f32 0.07216878, %v903_v52 }
 0x4c6   :  { %v3924_v54 = vpop.f32.mrf.mxu0 }
 0x4c7   :  { %v979_v55 = vsel %vm4730_vm2, %v977_v53, -inf }
 0x4c8   :  { %v973_v56 = vpop.f32.mrf.mxu0  ;;  %v981_v59 = vsel %vm662_vm3, %v979_v55, -inf }
 0x4c9   :  { %v978_v60 = vmul.f32 0.07216878, %v973_v56  ;;  %982 = vmax.xlane.f32.xlu0 %v981_v59 }
 0x4ca   :  { %v3929_v61 = vpop.f32.mrf.mxu0 }
 0x4cb   :  { %v980_v62 = vsel %vm4730_vm2, %v978_v60, -inf }
 0x4cc   :  { %v4774_v0 = vpop.f32.mrf.mxu0  ;;  %v984_v1 = vsel %vm662_vm3, %v980_v62, -inf }
 0x4cd   :  { %985 = vmax.xlane.f32.xlu1 %v984_v1  ;;  %v1613_v47 = vmul.f32 0.07216878, %v4774_v0 }
 0x4ce   :  { %v3964_v3 = vpop.f32.mrf.mxu0 }
 0x4cf   :  { %v1615_v52 = vsel %vm4730_vm2, %v1613_v47, -inf }
 0x552   :  { %v983_v4 = vpop.xlane.xlu0 %982 }
 0x553   :  { %v987_v9 = vsub.f32 %v979_v55, %v983_v4  ;;  %v1617_v55 = vsel %vm662_vm3, %v1615_v52, -inf }
 0x555   :  { %v989_v10 = vmul.f32 1.442695, %v987_v9 }
 0x556   :  { %v986_v11 = vpop.xlane.xlu1 %985 }
 0x557   :  { %4037 = vpow2.f32 %v989_v10  ;;  %v988_v12 = vsub.f32 %v980_v62, %v986_v11 }
 0x559   :  { %v991_v13 = vmul.f32 1.442695, %v988_v12 }
 0x55b   :  { %4039 = vpow2.f32 %v991_v13 }
 0x564   :  { %v4038_v15 = vpop.eup %4037 }
 0x565   :  { %v993_v16 = vsel %vm662_vm3, %v4038_v15, 0.0 }
 0x566   :  { %994 = vadd.xlane.f32.xlu0 %v993_v16 }
 0x568   :  { %v4040_v17 = vpop.eup %4039 }
 0x569   :  { %v996_v22 = vsel %vm662_vm3, %v4040_v17, 0.0 }
 0x56a   :  { %997 = vadd.xlane.f32.xlu1 %v996_v22 }
 0x5ef   :  { %v995_v57 = vpop.xlane.xlu0 %994 }
 0x5f0   :  { %4041 = vrcp.f32 %v995_v57 }
 0x5f3   :  { %v998_v24 = vpop.xlane.xlu1 %997 }
 0x5f4   :  { %4043 = vrcp.f32 %v998_v24 }
 0x5fd   :  { %v4042_v63 = vpop.eup %4041 }
 0x5fe   :  { %v1003_v2 = vmul.f32 %v4042_v63, %v4038_v15 }
 0x600   :  { %3933 = vmatmul.mubr.msk.f32.vlgmr.msra.gmra.mxu1 %vm662_vm3, %v1003_v2 }
 0x601   :  { %v4044_v25 = vpop.eup %4043  ;;  %3936 = vmatpush3.msra.mxu1 %v4718_v18  ;;  %3937 = vmatprep.mubr.msk.f32.mxu1 %vm4108_vm1, %v4107_v14  ;;  %v417_v18 = vpop.f32.mrf.mxu1 }
 0x602   :  { %3940 = vmatprep.subr.mxu1 %v4107_v14  ;;  %v1004_v26 = vmul.f32 %v4044_v25, %v4040_v17 }
 0x604   :  { %3938 = vmatmul.mubr.msk.f32.vlgmr.msra.gmra.mxu1 %vm662_vm3, %v1004_v26 }
 0x605   :  { %3941 = vmatpush3.xpose.msra.mxu1 %v4751_v46  ;;  %3942 = vmatprep.mubr.msk.f32.mxu1 %vm4108_vm1, %v4107_v14 }
 0x606   :  { %3945 = vmatprep.subr.mxu1 %v4107_v14 }
 0x608   :  { %3943 = vmatmul.mubr.f32.vlgmr.msra.gmra.mxu1 %v4751_v46 }
 0x609   :  { %3946 = vmatpush3.xpose.msra.mxu1 %v415_v27  ;;  %3947 = vmatprep.mubr.msk.f32.mxu1 %vm4108_vm1, %v4107_v14 }
 0x60a   :  { %3950 = vmatprep.subr.mxu1 %v4107_v14 }
 0x60c   :  { %3948 = vmatmul.mubr.f32.vlgmr.msra.gmra.mxu1 %v415_v27 }
 0x60d   :  { %3951 = vmatpush3.msra.mxu1 %v4751_v46  ;;  %3952 = vmatprep.mubr.msk.f32.mxu1 %vm4108_vm1, %v4107_v14 }
 0x60e   :  { %3955 = vmatprep.subr.mxu1 %v4107_v14 }
 0x6c0   :  { %v4797_v5 = vpop.f32.mrf.mxu1 }
 0x6c2   :  { %v3934_v28 = vpop.f32.mrf.mxu1 }
 0x6c4   :  { %v4799_v29 = vpop.f32.mrf.mxu1 }
 0x6c6   :  { %v3939_v30 = vpop.f32.mrf.mxu1 }
 0x6c8   :  { %v1221_v31 = vpop.f32.mrf.mxu1 }
 0x6c9   :  { %v1295_v32 = vmul.f32 0.07216878, %v1221_v31 }
 0x6ca   :  { %v3944_v33 = vpop.f32.mrf.mxu1 }
 0x6cb   :  { %v1297_v34 = vsel %vm4730_vm2, %v1295_v32, -inf }
 0x6cc   :  { %v1291_v35 = vpop.f32.mrf.mxu1  ;;  %v1299_v36 = vsel %vm662_vm3, %v1297_v34, -inf }
 0x6cd   :  { %v1296_v37 = vmul.f32 0.07216878, %v1291_v35  ;;  %1300 = vmax.xlane.f32.xlu0 %v1299_v36 }
 0x6ce   :  { %v3949_v38 = vpop.f32.mrf.mxu1 }
 0x6cf   :  { %v1298_v39 = vsel %vm4730_vm2, %v1296_v37, -inf }
 0x6d0   :  { %v1302_v40 = vsel %vm662_vm3, %v1298_v39, -inf }
 0x6d1   :  { %1303 = vmax.xlane.f32.xlu1 %v1302_v40 }
 0x756   :  { %v1301_v41 = vpop.xlane.xlu0 %1300 }
 0x757   :  { %v1305_v42 = vsub.f32 %v1297_v34, %v1301_v41 }
 0x759   :  { %v1307_v43 = vmul.f32 1.442695, %v1305_v42 }
 0x75a   :  { %v1304_v44 = vpop.xlane.xlu1 %1303 }
 0x75b   :  { %4045 = vpow2.f32 %v1307_v43  ;;  %v1306_v45 = vsub.f32 %v1298_v39, %v1304_v44 }
 0x75d   :  { %v1309_v46 = vmul.f32 1.442695, %v1306_v45 }
 0x75f   :  { %4047 = vpow2.f32 %v1309_v46 }
 0x768   :  { %v4046_v49 = vpop.eup %4045 }
 0x769   :  { %v1311_v51 = vsel %vm662_vm3, %v4046_v49, 0.0 }
 0x76a   :  { %1312 = vadd.xlane.f32.xlu0 %v1311_v51 }
 0x76c   :  { %v4048_v53 = vpop.eup %4047 }
 0x76d   :  { %v1314_v54 = vsel %vm662_vm3, %v4048_v53, 0.0 }
 0x76e   :  { %1315 = vadd.xlane.f32.xlu1 %v1314_v54  ;;  %1618 = vmax.xlane.f32.xlu0 %v1617_v55 }
 0x7f3   :  { %v1313_v56 = vpop.xlane.xlu0 %1312 }
 0x7f4   :  { %4049 = vrcp.f32 %v1313_v56 }
 0x7f7   :  { %v1316_v59 = vpop.xlane.xlu1 %1315  ;;  %v1619_v60 = vpop.xlane.xlu0 %1618 }
 0x7f8   :  { %4051 = vrcp.f32 %v1316_v59  ;;  %v1623_v61 = vsub.f32 %v1615_v52, %v1619_v60 }
 0x7fa   :  { %v1625_v62 = vmul.f32 1.442695, %v1623_v61 }
 0x7fc   :  { %4053 = vpow2.f32 %v1625_v62 }
 0x801   :  { %v4050_v0 = vpop.eup %4049 }
 0x802   :  { %v1321_v1 = vmul.f32 %v4050_v0, %v4046_v49 }
 0x804   :  { %3953 = vmatmul.mubr.msk.f32.vlgmr.msra.gmra.mxu1 %vm662_vm3, %v1321_v1 }
 0x805   :  { %v4052_v3 = vpop.eup %4051  ;;  %3956 = vmatpush3.msra.mxu1 %v415_v27  ;;  %3957 = vmatprep.mubr.msk.f32.mxu1 %vm4108_vm1, %v4107_v14 }
 0x806   :  { %3965 = vmatprep.subr.mxu1 %v4107_v14  ;;  %v1322_v4 = vmul.f32 %v4052_v3, %v4048_v53 }
 0x808   :  { %3958 = vmatmul.mubr.msk.f32.vlgmr.msra.gmra.mxu1 %vm662_vm3, %v1322_v4 }
 0x809   :  { %v4054_v9 = vpop.eup %4053  ;;  %3966 = vmatpush3.xpose.msra.mxu1 %v417_v18  ;;  %3967 = vmatprep.mubr.msk.f32.mxu1 %vm4108_vm1, %v4107_v14 }
 0x80a   :  { %3975 = vmatprep.subr.mxu1 %v4107_v14  ;;  %v1629_v10 = vsel %vm662_vm3, %v4054_v9, 0.0 }
 0x80b   :  { %1630 = vadd.xlane.f32.xlu0 %v1629_v10 }
 0x80c   :  { %3968 = vmatmul.mubr.f32.vlgmr.msra.gmra.mxu1 %v417_v18 }
 0x80d   :  { %3976 = vmatpush3.msra.mxu1 %v417_v18  ;;  %3977 = vmatprep.mubr.msk.f32.mxu1 %vm4108_vm1, %v4107_v14 }
 0x80e   :  { %3985 = vmatprep.subr.mxu1 %v4107_v14 }
 0x894   :  { %v1631_v11 = vpop.xlane.xlu0 %1630 }
 0x895   :  { %4055 = vrcp.f32 %v1631_v11 }
 0x8a2   :  { %v4056_v12 = vpop.eup %4055 }
 0x8a3   :  { %v1639_v13 = vmul.f32 %v4056_v12, %v4054_v9 }
 0x8a5   :  { %3973 = vmatmul.mubr.msk.f32.vlgmr.msra.gmra.mxu0 %vm662_vm3, %v1639_v13 }
 0x8a6   :  { %3981 = vmatpush3.xpose.msra.mxu0 %v4720_v19  ;;  %3982 = vmatprep.mubr.msk.f32.mxu0 %vm4108_vm1, %v4107_v14 }
 0x8a7   :  { %3990 = vmatprep.subr.mxu0 %v4107_v14 }
 0x8a9   :  { %3983 = vmatmul.mubr.f32.vlgmr.msra.gmra.mxu0 %v4720_v19 }
 0x8aa   :  { %3991 = vmatpush3.msra.mxu0 %v4720_v19  ;;  %3992 = vmatprep.mubr.msk.f32.mxu0 %vm4108_vm1, %v4107_v14 }
 0x8ab   :  { %4000 = vmatprep.subr.mxu0 %v4107_v14 }
 0x8c4   :  { %v4835_v15 = vpop.f32.mrf.mxu1 }
 0x8c6   :  { %v3954_v16 = vpop.f32.mrf.mxu1 }
 0x8c8   :  { %v4837_v17 = vpop.f32.mrf.mxu1 }
 0x8ca   :  { %v3959_v22 = vpop.f32.mrf.mxu1 }
 0x8cc   :  { %v1609_v57 = vpop.f32.mrf.mxu1 }
 0x8cd   :  { %v1614_v24 = vmul.f32 0.07216878, %v1609_v57 }
 0x8ce   :  { %v3969_v63 = vpop.f32.mrf.mxu1 }
 0x8cf   :  { %v1616_v2 = vsel %vm4730_vm2, %v1614_v24, -inf }
 0x8d0   :  { %v1620_v25 = vsel %vm662_vm3, %v1616_v2, -inf }
 0x8d1   :  { %1621 = vmax.xlane.f32.xlu1 %v1620_v25 }
 0x95a   :  { %v1622_v19 = vpop.xlane.xlu1 %1621 }
 0x95b   :  { %v1624_v26 = vsub.f32 %v1616_v2, %v1622_v19  ;;  %v2468_v2 = vld [vmem:[%s6654_s4 + $0xf8] sm:$0xff] }
 0x95d   :  { %v1627_v27 = vmul.f32 1.442695, %v1624_v26 }
 0x95f   :  { %4057 = vpow2.f32 %v1627_v27  ;;  %v2467_v27 = vld [vmem:[%s6654_s4 + $0xf0] sm:$0xff] }
 0x965   :  { %v4842_v18 = vpop.f32.mrf.mxu0 }
 0x967   :  { %v3974_v28 = vpop.f32.mrf.mxu0 }
 0x968   :  { %v2464_v28 = vld [vmem:[%s6654_s4 + $0xd8] sm:$0xff] }
 0x969   :  { %v1857_v30 = vpop.f32.mrf.mxu0 }
 0x96a   :  { %v1931_v31 = vmul.f32 0.07216878, %v1857_v30  ;;  %v2463_v30 = vld [vmem:[%s6654_s4 + $0xd0] sm:$0xff] }
 0x96b   :  { %v3984_v32 = vpop.f32.mrf.mxu0 }
 0x96c   :  { %v4058_v33 = vpop.eup %4057  ;;  %v1933_v34 = vsel %vm4730_vm2, %v1931_v31, -inf  ;;  %v2462_v31 = vld [vmem:[%s6654_s4 + $0xc8] sm:$0xff]  ;;  %v2461_v32 = vld [vmem:[%s6654_s4 + $0xc0] sm:$0xff] }
 0x96d   :  { %v1632_v35 = vsel %vm662_vm3, %v4058_v33, 0.0  ;;  %v1935_v36 = vsel %vm662_vm3, %v1933_v34, -inf }
 0x96e   :  { %1633 = vadd.xlane.f32.xlu1 %v1632_v35  ;;  %1936 = vmax.xlane.f32.xlu0 %v1935_v36  ;;  %v2457_v35 = vld [vmem:[%s6654_s4 + $0xa0] sm:$0xff]  ;;  %v2456_v36 = vld [vmem:[%s6654_s4 + $0x98] sm:$0xff] }
 0x9f7   :  { %v1634_v37 = vpop.xlane.xlu1 %1633  ;;  %v1937_v38 = vpop.xlane.xlu0 %1936 }
 0x9f8   :  { %4059 = vrcp.f32 %v1634_v37  ;;  %v1941_v39 = vsub.f32 %v1933_v34, %v1937_v38  ;;  %v2458_v34 = vld [vmem:[%s6654_s4 + $0xa8] sm:$0xff]  ;;  %v2455_v37 = vld [vmem:[%s6654_s4 + $0x90] sm:$0xff] }
 0x9f9   :  { %v2454_v38 = vld [vmem:[%s6654_s4 + $0x88] sm:$0xff] }
 0x9fa   :  { %v1943_v40 = vmul.f32 1.442695, %v1941_v39  ;;  %v2453_v39 = vld [vmem:[%s6654_s4 + $0x80] sm:$0xff] }
 0x9fc   :  { %4061 = vpow2.f32 %v1943_v40  ;;  %v2452_v40 = vld [vmem:[%s6654_s4 + $0x78] sm:$0xff] }
 0xa05   :  { %v4060_v41 = vpop.eup %4059 }
 0xa06   :  { %v1640_v42 = vmul.f32 %v4060_v41, %v4058_v33  ;;  %v2459_v33 = vld [vmem:[%s6654_s4 + $0xb0] sm:$0xff] }
 0xa07   :  { %v2451_v41 = vld [vmem:[%s6654_s4 + $0x70] sm:$0xff] }
 0xa08   :  { %3978 = vmatmul.mubr.msk.f32.vlgmr.msra.gmra.mxu1 %vm662_vm3, %v1640_v42  ;;  %v2450_v42 = vld [vmem:[%s6654_s4 + $0x68] sm:$0xff] }
 0xa09   :  { %v4062_v43 = vpop.eup %4061  ;;  %3986 = vmatpush3.xpose.msra.mxu1 %v4724_v21  ;;  %3987 = vmatprep.mubr.msk.f32.mxu1 %vm4108_vm1, %v4107_v14 }
 0xa0a   :  { %3995 = vmatprep.subr.mxu1 %v4107_v14  ;;  %v1947_v44 = vsel %vm662_vm3, %v4062_v43, 0.0 }
 0xa0b   :  { %1948 = vadd.xlane.f32.xlu0 %v1947_v44  ;;  %v2448_v44 = vld [vmem:[%s6654_s4 + $0x58] sm:$0xff] }
 0xa0c   :  { %3988 = vmatmul.mubr.f32.vlgmr.msra.gmra.mxu1 %v4724_v21 }
 0xa0d   :  { %3996 = vmatpush3.msra.mxu1 %v4724_v21  ;;  %3997 = vmatprep.mubr.msk.f32.mxu1 %vm4108_vm1, %v4107_v14 }
 0xa0e   :  { %4005 = vmatprep.subr.mxu1 %v4107_v14 }
 0xa94   :  { %v1949_v45 = vpop.xlane.xlu0 %1948 }
 0xa95   :  { %4063 = vrcp.f32 %v1949_v45  ;;  %v2447_v45 = vld [vmem:[%s6654_s4 + $0x50] sm:$0xff] }
 0xaa2   :  { %v4064_v46 = vpop.eup %4063 }
 0xaa3   :  { %v1957_v47 = vmul.f32 %v4064_v46, %v4062_v43  ;;  %v2449_v43 = vld [vmem:[%s6654_s4 + $0x60] sm:$0xff]  ;;  %v2446_v46 = vld [vmem:[%s6654_s4 + $0x48] sm:$0xff] }
 0xaa5   :  { %3993 = vmatmul.mubr.msk.f32.vlgmr.msra.gmra.mxu0 %vm662_vm3, %v1957_v47  ;;  %v2445_v47 = vld [vmem:[%s6654_s4 + $0x40] sm:$0xff] }
 0xaa6   :  { %4001 = vmatpush3.xpose.msra.mxu0 %v4722_v20  ;;  %4002 = vmatprep.mubr.msk.f32.mxu0 %vm4108_vm1, %v4107_v14 }
 0xaa7   :  { %4010 = vmatprep.subr.mxu0 %v4107_v14 }
 0xaa9   :  { %4003 = vmatmul.mubr.f32.vlgmr.msra.gmra.mxu0 %v4722_v20 }
 0xaaa   :  { %4011 = vmatpush3.msra.mxu0 %v4722_v20  ;;  %4012 = vmatprep.mubr.msk.f32.mxu0 %vm4108_vm1, %v4107_v14 }
 0xaab   :  { %2641 = vmatprep.subr.mxu0 %v2468_v2  ;;  %v2488_v2 = vld [vmem:[%s6654_s4 + $0x198] sm:$0xff] }
 0xac8   :  { %v4868_v21 = vpop.f32.mrf.mxu1 }
 0xaca   :  { %v3979_v49 = vpop.f32.mrf.mxu1 }
 0xacb   :  { %v2444_v49 = vld [vmem:[%s6654_s4 + $0x38] sm:$0xff] }
 0xacc   :  { %v1927_v51 = vpop.f32.mrf.mxu1 }
 0xacd   :  { %v1932_v52 = vmul.f32 0.07216878, %v1927_v51  ;;  %v2443_v51 = vld [vmem:[%s6654_s4 + $0x30] sm:$0xff] }
 0xace   :  { %v3989_v53 = vpop.f32.mrf.mxu1 }
 0xacf   :  { %v1934_v54 = vsel %vm4730_vm2, %v1932_v52, -inf  ;;  %v2442_v52 = vld [vmem:[%s6654_s4 + $0x28] sm:$0xff]  ;;  %v2441_v53 = vld [vmem:[%s6654_s4 + $0x20] sm:$0xff] }
 0xad0   :  { %v1938_v55 = vsel %vm662_vm3, %v1934_v54, -inf }
 0xad1   :  { %1939 = vmax.xlane.f32.xlu1 %v1938_v55  ;;  %v2439_v55 = vld [vmem:[%s6654_s4 + $0x10] sm:$0xff] }
 0xb5a   :  { %v1940_v56 = vpop.xlane.xlu1 %1939 }
 0xb5b   :  { %v1942_v59 = vsub.f32 %v1934_v54, %v1940_v56  ;;  %v2440_v54 = vld [vmem:[%s6654_s4 + $0x18] sm:$0xff]  ;;  %v2438_v56 = vld [vmem:[%s6654_s4 + $0x8] sm:$0xff] }
 0xb5d   :  { %v1945_v60 = vmul.f32 1.442695, %v1942_v59  ;;  %v2437_v59 = vld [vmem:[%s6654_s4] sm:$0xff] }
 0xb5f   :  { %4065 = vpow2.f32 %v1945_v60  ;;  %v2500_v60 = vld [vmem:[%s6654_s4 + $0x1f8] sm:$0xff] }
 0xb65   :  { %v4873_v20 = vpop.f32.mrf.mxu0 }
 0xb67   :  { %v3994_v61 = vpop.f32.mrf.mxu0 }
 0xb68   :  { %v2499_v61 = vld [vmem:[%s6654_s4 + $0x1f0] sm:$0xff] }
 0xb69   :  { %v2175_v62 = vpop.f32.mrf.mxu0 }
 0xb6a   :  { %v2249_v0 = vmul.f32 0.07216878, %v2175_v62  ;;  %v2498_v62 = vld [vmem:[%s6654_s4 + $0x1e8] sm:$0xff] }
 0xb6b   :  { %v4004_v1 = vpop.f32.mrf.mxu0 }
 0xb6c   :  { %v4066_v3 = vpop.eup %4065  ;;  %v2251_v4 = vsel %vm4730_vm2, %v2249_v0, -inf  ;;  %v2497_v0 = vld [vmem:[%s6654_s4 + $0x1e0] sm:$0xff]  ;;  %v2496_v1 = vld [vmem:[%s6654_s4 + $0x1d8] sm:$0xff] }
 0xb6d   :  { %v1950_v9 = vsel %vm662_vm3, %v4066_v3, 0.0  ;;  %v2253_v10 = vsel %vm662_vm3, %v2251_v4, -inf }
 0xb6e   :  { %1951 = vadd.xlane.f32.xlu1 %v1950_v9  ;;  %2254 = vmax.xlane.f32.xlu0 %v2253_v10  ;;  %v2494_v9 = vld [vmem:[%s6654_s4 + $0x1c8] sm:$0xff]  ;;  %v2493_v10 = vld [vmem:[%s6654_s4 + $0x1c0] sm:$0xff] }
 0xbf7   :  { %v1952_v11 = vpop.xlane.xlu1 %1951  ;;  %v2255_v12 = vpop.xlane.xlu0 %2254 }
 0xbf8   :  { %4067 = vrcp.f32 %v1952_v11  ;;  %v2259_v13 = vsub.f32 %v2251_v4, %v2255_v12  ;;  %v2492_v12 = vld [vmem:[%s6654_s4 + $0x1b8] sm:$0xff] }
 0xbfa   :  { %v2261_v16 = vmul.f32 1.442695, %v2259_v13  ;;  %v2491_v13 = vld [vmem:[%s6654_s4 + $0x1b0] sm:$0xff] }
 0xbfc   :  { %4069 = vpow2.f32 %v2261_v16 }
 0xc05   :  { %v4068_v22 = vpop.eup %4067 }
 0xc06   :  { %v1958_v57 = vmul.f32 %v4068_v22, %v4066_v3  ;;  %v2495_v3 = vld [vmem:[%s6654_s4 + $0x1d0] sm:$0xff]  ;;  %v2490_v22 = vld [vmem:[%s6654_s4 + $0x1a8] sm:$0xff] }
 0xc08   :  { %3998 = vmatmul.mubr.msk.f32.vlgmr.msra.gmra.mxu1 %vm662_vm3, %v1958_v57 }
 0xc09   :  { %v4070_v24 = vpop.eup %4069  ;;  %4006 = vmatpush3.xpose.msra.mxu1 %v4727_v58  ;;  %4007 = vmatprep.mubr.msk.f32.mxu1 %vm4108_vm1, %v4107_v14 }
 0xc0a   :  { %4015 = vmatprep.subr.mxu1 %v4107_v14  ;;  %v2265_v63 = vsel %vm662_vm3, %v4070_v24, 0.0 }
 0xc0b   :  { %2266 = vadd.xlane.f32.xlu0 %v2265_v63 }
 0xc0c   :  { %4008 = vmatmul.mubr.f32.vlgmr.msra.gmra.mxu1 %v4727_v58 }
 0xc0d   :  { %4016 = vmatpush3.msra.mxu1 %v4727_v58  ;;  %4017 = vmatprep.mubr.msk.f32.mxu1 %vm4108_vm1, %v4107_v14  ;;  %v2466_v58 = vld [vmem:[%s6654_s4 + $0xe8] sm:$0xff]  ;;  %v2465_v14 = vld [vmem:[%s6654_s4 + $0xe0] sm:$0xff] }
 0xc94   :  { %v2267_v25 = vpop.xlane.xlu0 %2266 }
 0xc95   :  { %4071 = vrcp.f32 %v2267_v25 }
 0xca2   :  { %v4072_v19 = vpop.eup %4071 }
 0xca3   :  { %v2275_v26 = vmul.f32 %v4072_v19, %v4070_v24  ;;  %v2489_v24 = vld [vmem:[%s6654_s4 + $0x1a0] sm:$0xff]  ;;  %v2487_v19 = vld [vmem:[%s6654_s4 + $0x190] sm:$0xff] }
 0xca5   :  { %4013 = vmatmul.mubr.msk.f32.vlgmr.msra.gmra.mxu0 %vm662_vm3, %v2275_v26 }
 0xca6   :  { %2642 = vmatpush1.msra.mxu0 %v2467_v27  ;;  %2705 = vmatprep.mubr.f32.mxu0 %v4797_v5  ;;  %v2460_v5 = vld [vmem:[%s6654_s4 + $0xb8] sm:$0xff]  ;;  %v2486_v27 = vld [vmem:[%s6654_s4 + $0x188] sm:$0xff] }
 0xca7   :  { %2643 = vmatprep.subr.mxu0 %v2466_v58  ;;  %v2484_v58 = vld [vmem:[%s6654_s4 + $0x178] sm:$0xff] }
 0xca8   :  { %2644 = vmatpush1.msra.mxu0 %v2465_v14  ;;  %v2483_v14 = vld [vmem:[%s6654_s4 + $0x170] sm:$0xff] }
 0xca9   :  { %2645 = vmatprep.subr.mxu0 %v2464_v28  ;;  %v2482_v28 = vld [vmem:[%s6654_s4 + $0x168] sm:$0xff] }
 0xcaa   :  { %2646 = vmatpush1.msra.mxu0 %v2463_v30  ;;  %v2481_v30 = vld [vmem:[%s6654_s4 + $0x160] sm:$0xff] }
 0xcab   :  { %2647 = vmatprep.subr.mxu0 %v2462_v31  ;;  %v2480_v31 = vld [vmem:[%s6654_s4 + $0x158] sm:$0xff] }
 0xcac   :  { %2648 = vmatpush1.msra.mxu0 %v2461_v32  ;;  %v2479_v32 = vld [vmem:[%s6654_s4 + $0x150] sm:$0xff] }
 0xcad   :  { %2649 = vmatprep.subr.mxu0 %v2460_v5  ;;  %v2478_v5 = vld [vmem:[%s6654_s4 + $0x148] sm:$0xff] }
 0xcae   :  { %2650 = vmatpush1.msra.mxu0 %v2459_v33  ;;  %v2477_v33 = vld [vmem:[%s6654_s4 + $0x140] sm:$0xff] }
 0xcaf   :  { %2651 = vmatprep.subr.mxu0 %v2458_v34  ;;  %v2476_v34 = vld [vmem:[%s6654_s4 + $0x138] sm:$0xff] }
 0xcb0   :  { %2652 = vmatpush1.msra.mxu0 %v2457_v35  ;;  %v2475_v35 = vld [vmem:[%s6654_s4 + $0x130] sm:$0xff] }
 0xcb1   :  { %2653 = vmatprep.subr.mxu0 %v2456_v36  ;;  %v2474_v36 = vld [vmem:[%s6654_s4 + $0x128] sm:$0xff] }
 0xcb2   :  { %2654 = vmatpush1.msra.mxu0 %v2455_v37  ;;  %v2473_v37 = vld [vmem:[%s6654_s4 + $0x120] sm:$0xff] }
 0xcb3   :  { %2655 = vmatprep.subr.mxu0 %v2454_v38  ;;  %v2472_v38 = vld [vmem:[%s6654_s4 + $0x118] sm:$0xff] }
 0xcb4   :  { %2656 = vmatpush1.msra.mxu0 %v2453_v39  ;;  %v2471_v39 = vld [vmem:[%s6654_s4 + $0x110] sm:$0xff] }
 0xcb5   :  { %2657 = vmatprep.subr.mxu0 %v2452_v40  ;;  %v2470_v40 = vld [vmem:[%s6654_s4 + $0x108] sm:$0xff] }
 0xcb6   :  { %2658 = vmatpush1.msra.mxu0 %v2451_v41  ;;  %v2469_v41 = vld [vmem:[%s6654_s4 + $0x100] sm:$0xff] }
 0xcb7   :  { %2659 = vmatprep.subr.mxu0 %v2450_v42  ;;  %v2596_v42 = vld [vmem:[%s6654_s4 + $0x4f8] sm:$0xff] }
 0xcb8   :  { %2660 = vmatpush1.msra.mxu0 %v2449_v43  ;;  %v2595_v43 = vld [vmem:[%s6654_s4 + $0x4f0] sm:$0xff] }
 0xcb9   :  { %2661 = vmatprep.subr.mxu0 %v2448_v44  ;;  %v2594_v44 = vld [vmem:[%s6654_s4 + $0x4e8] sm:$0xff] }
 0xcba   :  { %2662 = vmatpush1.msra.mxu0 %v2447_v45  ;;  %v2593_v45 = vld [vmem:[%s6654_s4 + $0x4e0] sm:$0xff] }
 0xcbb   :  { %2663 = vmatprep.subr.mxu0 %v2446_v46  ;;  %v2592_v46 = vld [vmem:[%s6654_s4 + $0x4d8] sm:$0xff] }
 0xcbc   :  { %2664 = vmatpush1.msra.mxu0 %v2445_v47  ;;  %v2591_v47 = vld [vmem:[%s6654_s4 + $0x4d0] sm:$0xff] }
 0xcbd   :  { %2665 = vmatprep.subr.mxu0 %v2444_v49  ;;  %v2588_v49 = vld [vmem:[%s6654_s4 + $0x4b8] sm:$0xff] }
 0xcbe   :  { %2666 = vmatpush1.msra.mxu0 %v2443_v51  ;;  %v2587_v51 = vld [vmem:[%s6654_s4 + $0x4b0] sm:$0xff] }
 0xcbf   :  { %2667 = vmatprep.subr.mxu0 %v2442_v52  ;;  %v2585_v52 = vld [vmem:[%s6654_s4 + $0x4a0] sm:$0xff] }
 0xcc0   :  { %2668 = vmatpush1.msra.mxu0 %v2441_v53  ;;  %v2584_v53 = vld [vmem:[%s6654_s4 + $0x498] sm:$0xff] }
 0xcc1   :  { %2669 = vmatprep.subr.mxu0 %v2440_v54  ;;  %v2583_v54 = vld [vmem:[%s6654_s4 + $0x490] sm:$0xff] }
 0xcc2   :  { %2670 = vmatpush1.msra.mxu0 %v2439_v55  ;;  %v2582_v55 = vld [vmem:[%s6654_s4 + $0x488] sm:$0xff] }
 0xcc3   :  { %2671 = vmatprep.subr.mxu0 %v2438_v56  ;;  %v2581_v56 = vld [vmem:[%s6654_s4 + $0x480] sm:$0xff] }
 0xcc4   :  { %2672 = vmatpush1.msra.mxu0 %v2437_v59  ;;  %v2580_v59 = vld [vmem:[%s6654_s4 + $0x478] sm:$0xff] }
 0xcc5   :  { %2673 = vmatprep.subr.mxu0 %v2500_v60  ;;  %v2579_v60 = vld [vmem:[%s6654_s4 + $0x470] sm:$0xff] }
 0xcc6   :  { %2674 = vmatpush2.msra.mxu0 %v2499_v61  ;;  %v2578_v61 = vld [vmem:[%s6654_s4 + $0x468] sm:$0xff] }
 0xcc7   :  { %2675 = vmatprep.subr.mxu0 %v2498_v62  ;;  %v2577_v62 = vld [vmem:[%s6654_s4 + $0x460] sm:$0xff] }
 0xcc8   :  { %2676 = vmatpush2.msra.mxu0 %v2497_v0  ;;  %v5005_v4 = vpop.f32.mrf.mxu1  ;;  %v2576_v0 = vld [vmem:[%s6654_s4 + $0x458] sm:$0xff] }
 0xcc9   :  { %2677 = vmatprep.subr.mxu0 %v2496_v1  ;;  %v2575_v1 = vld [vmem:[%s6654_s4 + $0x450] sm:$0xff] }
 0xcca   :  { %2678 = vmatpush2.msra.mxu0 %v2495_v3  ;;  %v3999_v11 = vpop.f32.mrf.mxu1  ;;  %v2574_v3 = vld [vmem:[%s6654_s4 + $0x448] sm:$0xff] }
 0xccb   :  { %2679 = vmatprep.subr.mxu0 %v2494_v9  ;;  %v2573_v9 = vld [vmem:[%s6654_s4 + $0x440] sm:$0xff]  ;;  %v2571_v11 = vld [vmem:[%s6654_s4 + $0x430] sm:$0xff] }
 0xccc   :  { %2680 = vmatpush2.msra.mxu0 %v2493_v10  ;;  %v2245_v16 = vpop.f32.mrf.mxu1  ;;  %v2572_v10 = vld [vmem:[%s6654_s4 + $0x438] sm:$0xff] }
 0xccd   :  { %v2250_v57 = vmul.f32 0.07216878, %v2245_v16  ;;  %2681 = vmatprep.subr.mxu0 %v2492_v12  ;;  %v2570_v12 = vld [vmem:[%s6654_s4 + $0x428] sm:$0xff]  ;;  %v2568_v16 = vld [vmem:[%s6654_s4 + $0x418] sm:$0xff] }
 0xcce   :  { %2682 = vmatpush2.msra.mxu0 %v2491_v13  ;;  %v4009_v63 = vpop.f32.mrf.mxu1  ;;  %v2569_v13 = vld [vmem:[%s6654_s4 + $0x420] sm:$0xff] }
 0xccf   :  { %2683 = vmatprep.subr.mxu0 %v2490_v22  ;;  %v5030_v25 = vsel %vm4730_vm2, %v2250_v57, -inf  ;;  %v2567_v22 = vld [vmem:[%s6654_s4 + $0x410] sm:$0xff]  ;;  %v2566_v57 = vld [vmem:[%s6654_s4 + $0x408] sm:$0xff]  ;;  %v2628_v63 = vld [vmem:[%s6654_s4 + $0x5f8] sm:$0xff] }
 0xcd0   :  { %2684 = vmatpush2.msra.mxu0 %v2489_v24  ;;  %v2256_v26 = vsel %vm662_vm3, %v5030_v25, -inf  ;;  %v2565_v24 = vld [vmem:[%s6654_s4 + $0x400] sm:$0xff] }
 0xcd1   :  { %2685 = vmatprep.subr.mxu0 %v2488_v2  ;;  %2257 = vmax.xlane.f32.xlu1 %v2256_v26  ;;  %v2627_v2 = vld [vmem:[%s6654_s4 + $0x5f0] sm:$0xff]  ;;  %v2625_v26 = vld [vmem:[%s6654_s4 + $0x5e0] sm:$0xff] }
 0xcd2   :  { %2686 = vmatpush2.msra.mxu0 %v2487_v19  ;;  %v2626_v19 = vld [vmem:[%s6654_s4 + $0x5e8] sm:$0xff] }
 0xcd3   :  { %2687 = vmatprep.subr.mxu0 %v2486_v27  ;;  %v2624_v27 = vld [vmem:[%s6654_s4 + $0x5d8] sm:$0xff] }
 0xcd4   :  { %2688 = vmatpush2.msra.mxu0 %v2485_v23  ;;  %v2623_v23 = vld [vmem:[%s6654_s4 + $0x5d0] sm:$0xff] }
 0xcd5   :  { %2689 = vmatprep.subr.mxu0 %v2484_v58  ;;  %v2622_v58 = vld [vmem:[%s6654_s4 + $0x5c8] sm:$0xff] }
 0xcd6   :  { %2690 = vmatpush2.msra.mxu0 %v2483_v14  ;;  %v2621_v14 = vld [vmem:[%s6654_s4 + $0x5c0] sm:$0xff] }
 0xcd7   :  { %2691 = vmatprep.subr.mxu0 %v2482_v28  ;;  %v2620_v28 = vld [vmem:[%s6654_s4 + $0x5b8] sm:$0xff] }
 0xcd8   :  { %2692 = vmatpush2.msra.mxu0 %v2481_v30  ;;  %v2619_v30 = vld [vmem:[%s6654_s4 + $0x5b0] sm:$0xff] }
 0xcd9   :  { %2693 = vmatprep.subr.mxu0 %v2480_v31  ;;  %v2618_v31 = vld [vmem:[%s6654_s4 + $0x5a8] sm:$0xff] }
 0xcda   :  { %2694 = vmatpush2.msra.mxu0 %v2479_v32  ;;  %v2617_v32 = vld [vmem:[%s6654_s4 + $0x5a0] sm:$0xff] }
 0xcdb   :  { %2695 = vmatprep.subr.mxu0 %v2478_v5  ;;  %v2616_v5 = vld [vmem:[%s6654_s4 + $0x598] sm:$0xff] }
 0xcdc   :  { %2696 = vmatpush2.msra.mxu0 %v2477_v33  ;;  %v2615_v33 = vld [vmem:[%s6654_s4 + $0x590] sm:$0xff] }
 0xcdd   :  { %2697 = vmatprep.subr.mxu0 %v2476_v34  ;;  %v2614_v34 = vld [vmem:[%s6654_s4 + $0x588] sm:$0xff] }
 0xcde   :  { %2698 = vmatpush2.msra.mxu0 %v2475_v35  ;;  %v2613_v35 = vld [vmem:[%s6654_s4 + $0x580] sm:$0xff] }
 0xcdf   :  { %2699 = vmatprep.subr.mxu0 %v2474_v36  ;;  %v2612_v36 = vld [vmem:[%s6654_s4 + $0x578] sm:$0xff] }
 0xce0   :  { %2700 = vmatpush2.msra.mxu0 %v2473_v37  ;;  %v2611_v37 = vld [vmem:[%s6654_s4 + $0x570] sm:$0xff] }
 0xce1   :  { %2701 = vmatprep.subr.mxu0 %v2472_v38  ;;  %v2610_v38 = vld [vmem:[%s6654_s4 + $0x568] sm:$0xff] }
 0xce2   :  { %2702 = vmatpush2.msra.mxu0 %v2471_v39  ;;  %v2609_v39 = vld [vmem:[%s6654_s4 + $0x560] sm:$0xff] }
 0xce3   :  { %2703 = vmatprep.subr.mxu0 %v2470_v40  ;;  %v2608_v40 = vld [vmem:[%s6654_s4 + $0x558] sm:$0xff] }
 0xce4   :  { %2704 = vmatpush2.msra.mxu0 %v2469_v41  ;;  %v2607_v41 = vld [vmem:[%s6654_s4 + $0x550] sm:$0xff] }
 0xce5   :  { %2706 = vmatmul.mubr.f32.vlgmr.msra.gmra.mxu0 %v4765_v48  ;;  %2795 = vmatprep.subr.mxu0 %v2596_v42  ;;  %v2590_v48 = vld [vmem:[%s6654_s4 + $0x4c8] sm:$0xff] }
 0xce6   :  { %2711 = vmatprep.mubr.f32.mxu0 %v4799_v29  ;;  %2796 = vmatpush1.msra.mxu0 %v2595_v43  ;;  %v2589_v29 = vld [vmem:[%s6654_s4 + $0x4c0] sm:$0xff]  ;;  %v2606_v42 = vld [vmem:[%s6654_s4 + $0x548] sm:$0xff] }
 0xce7   :  { %2797 = vmatprep.subr.mxu0 %v2594_v44  ;;  %v2605_v43 = vld [vmem:[%s6654_s4 + $0x540] sm:$0xff]  ;;  %v2604_v44 = vld [vmem:[%s6654_s4 + $0x538] sm:$0xff] }
 0xce8   :  { %2798 = vmatpush1.msra.mxu0 %v2593_v45  ;;  %v2603_v45 = vld [vmem:[%s6654_s4 + $0x530] sm:$0xff] }
 0xce9   :  { %2712 = vmatmul.mubr.f32.gmra.mxu0 %v4767_v50  ;;  %2799 = vmatprep.subr.mxu0 %v2592_v46  ;;  %v2586_v50 = vld [vmem:[%s6654_s4 + $0x4a8] sm:$0xff] }
 0xcea   :  { %2800 = vmatpush1.msra.mxu0 %v2591_v47  ;;  %v2602_v46 = vld [vmem:[%s6654_s4 + $0x528] sm:$0xff]  ;;  %v2601_v47 = vld [vmem:[%s6654_s4 + $0x520] sm:$0xff] }
 0xceb   :  { %2801 = vmatprep.subr.mxu0 %v2590_v48  ;;  %v2600_v48 = vld [vmem:[%s6654_s4 + $0x518] sm:$0xff] }
 0xcec   :  { %2802 = vmatpush1.msra.mxu0 %v2589_v29  ;;  %v2599_v29 = vld [vmem:[%s6654_s4 + $0x510] sm:$0xff] }
 0xced   :  { %2803 = vmatprep.subr.mxu0 %v2588_v49  ;;  %v2598_v49 = vld [vmem:[%s6654_s4 + $0x508] sm:$0xff] }
 0xcee   :  { %2804 = vmatpush1.msra.mxu0 %v2587_v51  ;;  %v2597_v51 = vld [vmem:[%s6654_s4 + $0x500] sm:$0xff] }
 0xcef   :  { %2805 = vmatprep.subr.mxu0 %v2586_v50 }
 0xcf0   :  { %2806 = vmatpush1.msra.mxu0 %v2585_v52 }
 0xcf1   :  { %2807 = vmatprep.subr.mxu0 %v2584_v53 }
 0xcf2   :  { %2808 = vmatpush1.msra.mxu0 %v2583_v54 }
 0xcf3   :  { %2809 = vmatprep.subr.mxu0 %v2582_v55 }
 0xcf4   :  { %2810 = vmatpush1.msra.mxu0 %v2581_v56 }
 0xcf5   :  { %2811 = vmatprep.subr.mxu0 %v2580_v59 }
 0xcf6   :  { %2812 = vmatpush1.msra.mxu0 %v2579_v60  ;;  %v2532_v60 = vld [vmem:[%s6654_s4 + $0x2f8] sm:$0xff] }
 0xcf7   :  { %2813 = vmatprep.subr.mxu0 %v2578_v61  ;;  %2718 = vmatprep.subr.mxu1 %v2532_v60  ;;  %v2548_v60 = vld [vmem:[%s6654_s4 + $0x378] sm:$0xff] }
 0xcf8   :  { %2814 = vmatpush1.msra.mxu0 %v2577_v62 }
 0xcf9   :  { %2815 = vmatprep.subr.mxu0 %v2576_v0 }
 0xcfa   :  { %2816 = vmatpush1.msra.mxu0 %v2575_v1 }
 0xcfb   :  { %2817 = vmatprep.subr.mxu0 %v2574_v3 }
 0xcfc   :  { %2818 = vmatpush1.msra.mxu0 %v2573_v9 }
 0xcfd   :  { %2819 = vmatprep.subr.mxu0 %v2572_v10 }
 0xcfe   :  { %2820 = vmatpush1.msra.mxu0 %v2571_v11  ;;  %v2531_v11 = vld [vmem:[%s6654_s4 + $0x2f0] sm:$0xff] }
 0xcff   :  { %2821 = vmatprep.subr.mxu0 %v2570_v12  ;;  %v2530_v12 = vld [vmem:[%s6654_s4 + $0x2e8] sm:$0xff] }
 0xd00   :  { %2822 = vmatpush1.msra.mxu0 %v2569_v13  ;;  %v2529_v13 = vld [vmem:[%s6654_s4 + $0x2e0] sm:$0xff] }
 0xd01   :  { %2823 = vmatprep.subr.mxu0 %v2568_v16  ;;  %v2528_v16 = vld [vmem:[%s6654_s4 + $0x2d8] sm:$0xff] }
 0xd02   :  { %2824 = vmatpush1.msra.mxu0 %v2567_v22  ;;  %v2527_v22 = vld [vmem:[%s6654_s4 + $0x2d0] sm:$0xff] }
 0xd03   :  { %2825 = vmatprep.subr.mxu0 %v2566_v57  ;;  %v2526_v57 = vld [vmem:[%s6654_s4 + $0x2c8] sm:$0xff] }
 0xd04   :  { %2826 = vmatpush1.msra.mxu0 %v2565_v24  ;;  %v2525_v24 = vld [vmem:[%s6654_s4 + $0x2c0] sm:$0xff] }
 0xd05   :  { %2827 = vmatprep.subr.mxu0 %v2628_v63  ;;  %v2523_v63 = vld [vmem:[%s6654_s4 + $0x2b0] sm:$0xff] }
 0xd06   :  { %2828 = vmatpush2.msra.mxu0 %v2627_v2  ;;  %v2522_v2 = vld [vmem:[%s6654_s4 + $0x2a8] sm:$0xff] }
 0xd07   :  { %2829 = vmatprep.subr.mxu0 %v2626_v19  ;;  %v2521_v19 = vld [vmem:[%s6654_s4 + $0x2a0] sm:$0xff] }
 0xd08   :  { %2830 = vmatpush2.msra.mxu0 %v2625_v26  ;;  %v2520_v26 = vld [vmem:[%s6654_s4 + $0x298] sm:$0xff] }
 0xd09   :  { %2831 = vmatprep.subr.mxu0 %v2624_v27  ;;  %v2519_v27 = vld [vmem:[%s6654_s4 + $0x290] sm:$0xff] }
 0xd0a   :  { %2832 = vmatpush2.msra.mxu0 %v2623_v23  ;;  %v2518_v23 = vld [vmem:[%s6654_s4 + $0x288] sm:$0xff] }
 0xd0b   :  { %2833 = vmatprep.subr.mxu0 %v2622_v58  ;;  %v2517_v58 = vld [vmem:[%s6654_s4 + $0x280] sm:$0xff] }
 0xd0c   :  { %2834 = vmatpush2.msra.mxu0 %v2621_v14  ;;  %v2516_v14 = vld [vmem:[%s6654_s4 + $0x278] sm:$0xff] }
 0xd0d   :  { %2835 = vmatprep.subr.mxu0 %v2620_v28  ;;  %v2515_v28 = vld [vmem:[%s6654_s4 + $0x270] sm:$0xff] }
 0xd0e   :  { %2836 = vmatpush2.msra.mxu0 %v2619_v30  ;;  %v2514_v30 = vld [vmem:[%s6654_s4 + $0x268] sm:$0xff] }
 0xd0f   :  { %2837 = vmatprep.subr.mxu0 %v2618_v31  ;;  %v2513_v31 = vld [vmem:[%s6654_s4 + $0x260] sm:$0xff] }
 0xd10   :  { %2838 = vmatpush2.msra.mxu0 %v2617_v32  ;;  %v2512_v32 = vld [vmem:[%s6654_s4 + $0x258] sm:$0xff] }
 0xd11   :  { %2839 = vmatprep.subr.mxu0 %v2616_v5  ;;  %v2511_v5 = vld [vmem:[%s6654_s4 + $0x250] sm:$0xff] }
 0xd12   :  { %2840 = vmatpush2.msra.mxu0 %v2615_v33  ;;  %v2510_v33 = vld [vmem:[%s6654_s4 + $0x248] sm:$0xff] }
 0xd13   :  { %2841 = vmatprep.subr.mxu0 %v2614_v34  ;;  %v2509_v34 = vld [vmem:[%s6654_s4 + $0x240] sm:$0xff] }
 0xd14   :  { %2842 = vmatpush2.msra.mxu0 %v2613_v35  ;;  %v2508_v35 = vld [vmem:[%s6654_s4 + $0x238] sm:$0xff] }
 0xd15   :  { %2843 = vmatprep.subr.mxu0 %v2612_v36  ;;  %v2507_v36 = vld [vmem:[%s6654_s4 + $0x230] sm:$0xff] }
 0xd16   :  { %2844 = vmatpush2.msra.mxu0 %v2611_v37  ;;  %v2506_v37 = vld [vmem:[%s6654_s4 + $0x228] sm:$0xff] }
 0xd17   :  { %2845 = vmatprep.subr.mxu0 %v2610_v38  ;;  %v2505_v38 = vld [vmem:[%s6654_s4 + $0x220] sm:$0xff] }
 0xd18   :  { %2846 = vmatpush2.msra.mxu0 %v2609_v39  ;;  %v2504_v39 = vld [vmem:[%s6654_s4 + $0x218] sm:$0xff] }
 0xd19   :  { %2847 = vmatprep.subr.mxu0 %v2608_v40  ;;  %v2503_v40 = vld [vmem:[%s6654_s4 + $0x210] sm:$0xff] }
 0xd1a   :  { %2848 = vmatpush2.msra.mxu0 %v2607_v41  ;;  %v2502_v41 = vld [vmem:[%s6654_s4 + $0x208] sm:$0xff] }
 0xd1b   :  { %2849 = vmatprep.subr.mxu0 %v2606_v42  ;;  %v2501_v42 = vld [vmem:[%s6654_s4 + $0x200] sm:$0xff] }
 0xd1c   :  { %2850 = vmatpush2.msra.mxu0 %v2605_v43  ;;  %v2564_v43 = vld [vmem:[%s6654_s4 + $0x3f8] sm:$0xff] }
 0xd1d   :  { %2851 = vmatprep.subr.mxu0 %v2604_v44  ;;  %v2563_v44 = vld [vmem:[%s6654_s4 + $0x3f0] sm:$0xff] }
 0xd1e   :  { %2852 = vmatpush2.msra.mxu0 %v2603_v45  ;;  %v2562_v45 = vld [vmem:[%s6654_s4 + $0x3e8] sm:$0xff] }
 0xd1f   :  { %2853 = vmatprep.subr.mxu0 %v2602_v46  ;;  %v2561_v46 = vld [vmem:[%s6654_s4 + $0x3e0] sm:$0xff] }
 0xd20   :  { %2854 = vmatpush2.msra.mxu0 %v2601_v47  ;;  %v2560_v47 = vld [vmem:[%s6654_s4 + $0x3d8] sm:$0xff] }
 0xd21   :  { %2855 = vmatprep.subr.mxu0 %v2600_v48  ;;  %v2559_v48 = vld [vmem:[%s6654_s4 + $0x3d0] sm:$0xff] }
 0xd22   :  { %2856 = vmatpush2.msra.mxu0 %v2599_v29  ;;  %v2558_v29 = vld [vmem:[%s6654_s4 + $0x3c8] sm:$0xff] }
 0xd23   :  { %2857 = vmatprep.subr.mxu0 %v2598_v49  ;;  %v2557_v49 = vld [vmem:[%s6654_s4 + $0x3c0] sm:$0xff] }
 0xd24   :  { %2858 = vmatpush2.msra.mxu0 %v2597_v51  ;;  %v2556_v51 = vld [vmem:[%s6654_s4 + $0x3b8] sm:$0xff] }
 0xd5a   :  { %v2258_v50 = vpop.xlane.xlu1 %2257 }
 0xd5b   :  { %v2260_v52 = vsub.f32 %v5030_v25, %v2258_v50  ;;  %v5295_v25 = vld [vmem:[%s6655_s5] sm:$0x3]  ;;  %v2555_v50 = vld [vmem:[%s6654_s4 + $0x3b0] sm:$0xff] }
 0xd5d   :  { %v2263_v53 = vmul.f32 1.442695, %v2260_v52  ;;  %v2554_v52 = vld [vmem:[%s6654_s4 + $0x3a8] sm:$0xff] }
 0xd5f   :  { %4073 = vpow2.f32 %v2263_v53  ;;  %v2553_v53 = vld [vmem:[%s6654_s4 + $0x3a0] sm:$0xff] }
 0xd65   :  { %v2346_v54 = vpop.f32.mrf.mxu0 }
 0xd66   :  { %2859 = vmatprep.mubr.f32.mxu0 %v2346_v54  ;;  %v2552_v54 = vld [vmem:[%s6654_s4 + $0x398] sm:$0xff] }
 0xd67   :  { %v4014_v55 = vpop.f32.mrf.mxu0  ;;  %2860 = vmatmul.mubr.f32.vlgmr.msra.gmra.mxu0 %v4873_v20  ;;  %v5303_v20 = vrot.slane %v5295_v25, %v4523_v8 }
 0xd68   :  { %v2551_v55 = vld [vmem:[%s6654_s4 + $0x390] sm:$0xff] }
 0xd6c   :  { %v4074_v56 = vpop.eup %4073 }
 0xd6d   :  { %v2268_v59 = vsel %vm662_vm3, %v4074_v56, 0.0 }
 0xd6e   :  { %2269 = vadd.xlane.f32.xlu1 %v2268_v59  ;;  %v2549_v59 = vld [vmem:[%s6654_s4 + $0x380] sm:$0xff] }
 0xda5   :  { %v5297_v61 = vpop.f32.mrf.mxu0 }
 0xda7   :  { %v5299_v62 = vpop.f32.mrf.mxu0 }
 0xda9   :  { %v2713_v0 = vpop.f32.mrf.mxu0 }
 0xdaa   :  { %v5306_v1 = vadd.f32 %v2713_v0, %v5303_v20  ;;  %v2547_v0 = vld [vmem:[%s6654_s4 + $0x370] sm:$0xff] }
 0xdf7   :  { %v2270_v3 = vpop.xlane.xlu1 %2269 }
 0xdf8   :  { %4075 = vrcp.f32 %v2270_v3  ;;  %v2546_v3 = vld [vmem:[%s6654_s4 + $0x368] sm:$0xff] }
 0xe05   :  { %v4076_v9 = vpop.eup %4075 }
 0xe06   :  { %v2276_v10 = vmul.f32 %v4076_v9, %v4074_v56  ;;  %v2550_v56 = vld [vmem:[%s6654_s4 + $0x388] sm:$0xff]  ;;  %v2545_v9 = vld [vmem:[%s6654_s4 + $0x360] sm:$0xff] }
 0xe08   :  { %4018 = vmatmul.mubr.msk.f32.vlgmr.msra.gmra.mxu1 %vm662_vm3, %v2276_v10  ;;  %v2544_v10 = vld [vmem:[%s6654_s4 + $0x358] sm:$0xff] }
 0xe09   :  { %2719 = vmatpush1.msra.mxu1 %v2531_v11  ;;  %2782 = vmatprep.mubr.f32.mxu1 %v4842_v18  ;;  %v2524_v18 = vld [vmem:[%s6654_s4 + $0x2b8] sm:$0xff]  ;;  %v2543_v11 = vld [vmem:[%s6654_s4 + $0x350] sm:$0xff] }
 0xe0a   :  { %2720 = vmatprep.subr.mxu1 %v2530_v12  ;;  %v2542_v12 = vld [vmem:[%s6654_s4 + $0x348] sm:$0xff] }
 0xe0b   :  { %2721 = vmatpush1.msra.mxu1 %v2529_v13  ;;  %v2541_v13 = vld [vmem:[%s6654_s4 + $0x340] sm:$0xff] }
 0xe0c   :  { %2722 = vmatprep.subr.mxu1 %v2528_v16  ;;  %v2540_v16 = vld [vmem:[%s6654_s4 + $0x338] sm:$0xff] }
 0xe0d   :  { %2723 = vmatpush1.msra.mxu1 %v2527_v22  ;;  %v2539_v22 = vld [vmem:[%s6654_s4 + $0x330] sm:$0xff] }
 0xe0e   :  { %2724 = vmatprep.subr.mxu1 %v2526_v57  ;;  %v2538_v57 = vld [vmem:[%s6654_s4 + $0x328] sm:$0xff] }
 0xe0f   :  { %2725 = vmatpush1.msra.mxu1 %v2525_v24  ;;  %v2537_v24 = vld [vmem:[%s6654_s4 + $0x320] sm:$0xff] }
 0xe10   :  { %2726 = vmatprep.subr.mxu1 %v2524_v18  ;;  %v2536_v18 = vld [vmem:[%s6654_s4 + $0x318] sm:$0xff] }
 0xe11   :  { %2727 = vmatpush1.msra.mxu1 %v2523_v63  ;;  %v2535_v63 = vld [vmem:[%s6654_s4 + $0x310] sm:$0xff] }
 0xe12   :  { %2728 = vmatprep.subr.mxu1 %v2522_v2  ;;  %v2534_v2 = vld [vmem:[%s6654_s4 + $0x308] sm:$0xff] }
 0xe13   :  { %2729 = vmatpush1.msra.mxu1 %v2521_v19  ;;  %v2533_v19 = vld [vmem:[%s6654_s4 + $0x300] sm:$0xff] }
 0xe14   :  { %2730 = vmatprep.subr.mxu1 %v2520_v26 }
 0xe15   :  { %2731 = vmatpush1.msra.mxu1 %v2519_v27 }
 0xe16   :  { %2732 = vmatprep.subr.mxu1 %v2518_v23  ;;  %v2638_v23 = vrot.slane %v5295_v25, %v4520_v7  ;;  %v4082_v25 = vld [vmem:[%s6650_s0] sm:$0xff] }
 0xe17   :  { %2733 = vmatpush1.msra.mxu1 %v2517_v58  ;;  %v2715_v58 = vpop.f32.mrf.mxu0 }
 0xe18   :  { %2734 = vmatprep.subr.mxu1 %v2516_v14  ;;  %v2708_v14 = vadd.f32 %v5297_v61, %v5303_v20 }
 0xe19   :  { %2735 = vmatpush1.msra.mxu1 %v2515_v28 }
 0xe1a   :  { %2736 = vmatprep.subr.mxu1 %v2514_v30 }
 0xe1b   :  { %2737 = vmatpush1.msra.mxu1 %v2513_v31 }
 0xe1c   :  { %2738 = vmatprep.subr.mxu1 %v2512_v32 }
 0xe1d   :  { %2739 = vmatpush1.msra.mxu1 %v2511_v5 }
 0xe1e   :  { %2740 = vmatprep.subr.mxu1 %v2510_v33 }
 0xe1f   :  { %2741 = vmatpush1.msra.mxu1 %v2509_v34 }
 0xe20   :  { %2742 = vmatprep.subr.mxu1 %v2508_v35  ;;  %v3035_v35 = vld [vmem:[%s6658_s8 + $0x2d8] sm:$0xff] }
 0xe21   :  { %2743 = vmatpush1.msra.mxu1 %v2507_v36  ;;  %v3039_v36 = vld [vmem:[%s6658_s8 + $0x2f8] sm:$0xff] }
 0xe22   :  { %2744 = vmatprep.subr.mxu1 %v2506_v37  ;;  %v3034_v37 = vld [vmem:[%s6658_s8 + $0x2d0] sm:$0xff]  ;;  %3280 = vmatprep.subr.mxu0 %v3039_v36  ;;  %v2985_v36 = vld [vmem:[%s6658_s8 + $0x148] sm:$0xff] }
 0xe23   :  { %2745 = vmatpush1.msra.mxu1 %v2505_v38  ;;  %v3038_v38 = vld [vmem:[%s6658_s8 + $0x2f0] sm:$0xff] }
 0xe24   :  { %2746 = vmatprep.subr.mxu1 %v2504_v39  ;;  %v3029_v39 = vld [vmem:[%s6658_s8 + $0x2a8] sm:$0xff]  ;;  %3281 = vmatpush1.msra.mxu0 %v3038_v38  ;;  %v2984_v38 = vld [vmem:[%s6658_s8 + $0x140] sm:$0xff] }
 0xe25   :  { %2747 = vmatpush1.msra.mxu1 %v2503_v40  ;;  %v3033_v40 = vld [vmem:[%s6658_s8 + $0x2c8] sm:$0xff] }
 0xe26   :  { %2748 = vmatprep.subr.mxu1 %v2502_v41  ;;  %v3028_v41 = vld [vmem:[%s6658_s8 + $0x2a0] sm:$0xff]  ;;  %3282 = vmatprep.subr.mxu0 %v3033_v40  ;;  %v2979_v40 = vld [vmem:[%s6658_s8 + $0x118] sm:$0xff] }
 0xe27   :  { %2749 = vmatpush1.msra.mxu1 %v2501_v42  ;;  %v2861_v28 = vpop.f32.mrf.mxu0  ;;  %v3032_v42 = vld [vmem:[%s6658_s8 + $0x2c0] sm:$0xff] }
 0xe28   :  { %2750 = vmatprep.subr.mxu1 %v2564_v43  ;;  %v3023_v43 = vld [vmem:[%s6658_s8 + $0x278] sm:$0xff]  ;;  %3283 = vmatpush1.msra.mxu0 %v3032_v42  ;;  %v2978_v42 = vld [vmem:[%s6658_s8 + $0x110] sm:$0xff] }
 0xe29   :  { %2751 = vmatpush2.msra.mxu1 %v2563_v44  ;;  %v3027_v44 = vld [vmem:[%s6658_s8 + $0x298] sm:$0xff] }
 0xe2a   :  { %2752 = vmatprep.subr.mxu1 %v2562_v45  ;;  %3284 = vmatprep.subr.mxu0 %v3027_v44  ;;  %v2973_v44 = vld [vmem:[%s6658_s8 + $0xe8] sm:$0xff] }
 0xe2b   :  { %2753 = vmatpush2.msra.mxu1 %v2561_v46 }
 0xe2c   :  { %2754 = vmatprep.subr.mxu1 %v2560_v47  ;;  %v2716_v47 = vadd.f32 %v2715_v58, %v2638_v23  ;;  %v3008_v58 = vld [vmem:[%s6658_s8 + $0x200] sm:$0xff] }
 0xe2d   :  { %2755 = vmatpush2.msra.mxu1 %v2559_v48 }
 0xe2e   :  { %2756 = vmatprep.subr.mxu1 %v2558_v29 }
 0xe2f   :  { %2757 = vmatpush2.msra.mxu1 %v2557_v49 }
 0xe30   :  { %2758 = vmatprep.subr.mxu1 %v2556_v51 }
 0xe31   :  { %2759 = vmatpush2.msra.mxu1 %v2555_v50 }
 0xe32   :  { %2760 = vmatprep.subr.mxu1 %v2554_v52 }
 0xe33   :  { %2761 = vmatpush2.msra.mxu1 %v2553_v53  ;;  %v4083_v53 = vld [vmem:[%s6650_s0 + $0x18] sm:$0xff] }
 0xe34   :  { %2762 = vmatprep.subr.mxu1 %v2552_v54 }
 0xe35   :  { %2763 = vmatpush2.msra.mxu1 %v2551_v55  ;;  %v4084_v55 = vld [vmem:[%s6650_s0 + $0x10] sm:$0xff] }
 0xe36   :  { %2764 = vmatprep.subr.mxu1 %v2550_v56 }
 0xe37   :  { %2765 = vmatpush2.msra.mxu1 %v2549_v59 }
 0xe38   :  { %2766 = vmatprep.subr.mxu1 %v2548_v60 }
 0xe39   :  { %2767 = vmatpush2.msra.mxu1 %v2547_v0 }
 0xe3a   :  { %2768 = vmatprep.subr.mxu1 %v2546_v3  ;;  %v3022_v3 = vld [vmem:[%s6658_s8 + $0x270] sm:$0xff] }
 0xe3b   :  { %2769 = vmatpush2.msra.mxu1 %v2545_v9  ;;  %v3026_v9 = vld [vmem:[%s6658_s8 + $0x290] sm:$0xff] }
 0xe3c   :  { %2770 = vmatprep.subr.mxu1 %v2544_v10  ;;  %3285 = vmatpush1.msra.mxu0 %v3026_v9  ;;  %v3017_v10 = vld [vmem:[%s6658_s8 + $0x248] sm:$0xff]  ;;  %v2944_v9 = vld [vmem:[%s6658_s8] sm:$0xff] }
 0xe3d   :  { %2771 = vmatpush2.msra.mxu1 %v2543_v11  ;;  %v3021_v11 = vld [vmem:[%s6658_s8 + $0x268] sm:$0xff] }
 0xe3e   :  { %2772 = vmatprep.subr.mxu1 %v2542_v12  ;;  %3286 = vmatprep.subr.mxu0 %v3021_v11  ;;  %v3083_v11 = vld [vmem:[%s6658_s8 + $0x458] sm:$0xff] }
 0xe3f   :  { %2773 = vmatpush2.msra.mxu1 %v2541_v13 }
 0xe40   :  { %2774 = vmatprep.subr.mxu1 %v2540_v16  ;;  %v3016_v16 = vld [vmem:[%s6658_s8 + $0x240] sm:$0xff] }
 0xe41   :  { %2775 = vmatpush2.msra.mxu1 %v2539_v22  ;;  %v3020_v22 = vld [vmem:[%s6658_s8 + $0x260] sm:$0xff] }
 0xe42   :  { %2776 = vmatprep.subr.mxu1 %v2538_v57  ;;  %v3011_v57 = vld [vmem:[%s6658_s8 + $0x218] sm:$0xff]  ;;  %3287 = vmatpush1.msra.mxu0 %v3020_v22  ;;  %v3082_v22 = vld [vmem:[%s6658_s8 + $0x450] sm:$0xff] }
 0xe43   :  { %2777 = vmatpush2.msra.mxu1 %v2537_v24  ;;  %v3015_v24 = vld [vmem:[%s6658_s8 + $0x238] sm:$0xff] }
 0xe44   :  { %2778 = vmatprep.subr.mxu1 %v2536_v18  ;;  %v3010_v18 = vld [vmem:[%s6658_s8 + $0x210] sm:$0xff]  ;;  %3288 = vmatprep.subr.mxu0 %v3015_v24  ;;  %v3077_v24 = vld [vmem:[%s6658_s8 + $0x428] sm:$0xff] }
 0xe45   :  { %2779 = vmatpush2.msra.mxu1 %v2535_v63  ;;  %v3014_v63 = vld [vmem:[%s6658_s8 + $0x230] sm:$0xff] }
 0xe46   :  { %2780 = vmatprep.subr.mxu1 %v2534_v2  ;;  %3289 = vmatpush1.msra.mxu0 %v3014_v63  ;;  %v3076_v63 = vld [vmem:[%s6658_s8 + $0x420] sm:$0xff] }
 0xe47   :  { %2781 = vmatpush2.msra.mxu1 %v2533_v19 }
 0xe48   :  { %2783 = vmatmul.mubr.f32.vlgmr.msra.gmra.mxu1 %v4835_v15  ;;  %v2710_v15 = vadd.f32 %v5299_v62, %v2638_v23  ;;  %3126 = vmatprep.subr.mxu1 %v3035_v35  ;;  %v3004_v23 = vld [vmem:[%s6658_s8 + $0x1e0] sm:$0xff]  ;;  %v2981_v35 = vld [vmem:[%s6658_s8 + $0x128] sm:$0xff] }
 0xe49   :  { %2788 = vmatprep.mubr.f32.mxu1 %v4868_v21  ;;  %3127 = vmatpush1.msra.mxu1 %v3034_v37  ;;  %v2980_v37 = vld [vmem:[%s6658_s8 + $0x120] sm:$0xff] }
 0xe4a   :  { %3128 = vmatprep.subr.mxu1 %v3029_v39  ;;  %v2975_v39 = vld [vmem:[%s6658_s8 + $0xf8] sm:$0xff] }
 0xe4b   :  { %3129 = vmatpush1.msra.mxu1 %v3028_v41  ;;  %v2974_v41 = vld [vmem:[%s6658_s8 + $0xf0] sm:$0xff] }
 0xe4c   :  { %2789 = vmatmul.mubr.f32.gmra.mxu1 %v4837_v17  ;;  %v2863_v17 = vpop.f32.mrf.mxu0  ;;  %3130 = vmatprep.subr.mxu1 %v3023_v43  ;;  %v2969_v43 = vld [vmem:[%s6658_s8 + $0xc8] sm:$0xff] }
 0xe4d   :  { %3131 = vmatpush1.msra.mxu1 %v3022_v3  ;;  %v2949_v3 = vld [vmem:[%s6658_s8 + $0x28] sm:$0xff] }
 0xe4e   :  { %3132 = vmatprep.subr.mxu1 %v3017_v10  ;;  %v2948_v10 = vld [vmem:[%s6658_s8 + $0x20] sm:$0xff] }
 0xe4f   :  { %3133 = vmatpush1.msra.mxu1 %v3016_v16  ;;  %v3087_v16 = vld [vmem:[%s6658_s8 + $0x478] sm:$0xff] }
 0xe50   :  { %3134 = vmatprep.subr.mxu1 %v3011_v57  ;;  %v3086_v57 = vld [vmem:[%s6658_s8 + $0x470] sm:$0xff] }
 0xe51   :  { %3135 = vmatpush1.msra.mxu1 %v3010_v18  ;;  %v3081_v18 = vld [vmem:[%s6658_s8 + $0x448] sm:$0xff] }
 0xec8   :  { %v2419_v26 = vpop.f32.mrf.mxu1 }
 0xec9   :  { %2865 = vmatprep.mubr.f32.mxu0 %v2419_v26  ;;  %v3005_v26 = vld [vmem:[%s6658_s8 + $0x1e8] sm:$0xff] }
 0xeca   :  { %v4019_v27 = vpop.f32.mrf.mxu1  ;;  %2866 = vmatmul.mubr.f32.gmra.mxu0 %v5005_v4  ;;  %v4081_v4 = vld [vmem:[%s6650_s0 + $0x8] sm:$0xff]  ;;  %3136 = vmatprep.subr.mxu1 %v3005_v26  ;;  %v3075_v26 = vld [vmem:[%s6658_s8 + $0x418] sm:$0xff] }
 0xecb   :  { %v3009_v27 = vld [vmem:[%s6658_s8 + $0x208] sm:$0xff]  ;;  %3137 = vmatpush1.msra.mxu1 %v3004_v23  ;;  %v3074_v23 = vld [vmem:[%s6658_s8 + $0x410] sm:$0xff] }
 0xecc   :  { %3290 = vmatprep.subr.mxu0 %v3009_v27  ;;  %v3070_v27 = vld [vmem:[%s6658_s8 + $0x3f0] sm:$0xff] }
 0xecd   :  { %3291 = vmatpush1.msra.mxu0 %v3008_v58  ;;  %v3065_v58 = vld [vmem:[%s6658_s8 + $0x3c8] sm:$0xff] }
 0xf08   :  { %v2784_v30 = vpop.f32.mrf.mxu1 }
 0xf09   :  { %v2785_v31 = vadd.f32 %v2784_v30, %v2708_v14  ;;  %v2999_v14 = vld [vmem:[%s6658_s8 + $0x1b8] sm:$0xff] }
 0xf0a   :  { %v2786_v21 = vpop.f32.mrf.mxu1  ;;  %3138 = vmatprep.subr.mxu1 %v2999_v14  ;;  %v3069_v14 = vld [vmem:[%s6658_s8 + $0x3e8] sm:$0xff] }
 0xf0b   :  { %v2787_v32 = vadd.f32 %v2786_v21, %v2710_v15  ;;  %v2862_v5 = vadd.f32 %v2861_v28, %v2785_v31  ;;  %v3003_v28 = vld [vmem:[%s6658_s8 + $0x1d8] sm:$0xff]  ;;  %v2998_v15 = vld [vmem:[%s6658_s8 + $0x1b0] sm:$0xff] }
 0xf0c   :  { %v2790_v45 = vpop.f32.mrf.mxu1  ;;  %v3002_v21 = vld [vmem:[%s6658_s8 + $0x1d0] sm:$0xff]  ;;  %3292 = vmatprep.subr.mxu0 %v3003_v28  ;;  %3139 = vmatpush1.msra.mxu1 %v2998_v15  ;;  %v3064_v28 = vld [vmem:[%s6658_s8 + $0x3c0] sm:$0xff]  ;;  %v3059_v15 = vld [vmem:[%s6658_s8 + $0x398] sm:$0xff] }
 0xf0d   :  { %v2864_v33 = vadd.f32 %v2863_v17, %v2787_v32  ;;  %v5516_v61 = vadd.f32 %v4082_v25, %v2862_v5  ;;  %v2791_v48 = vadd.f32 %v2790_v45, %v5306_v1  ;;  %v2993_v32 = vld [vmem:[%s6658_s8 + $0x188] sm:$0xff]  ;;  %v2992_v5 = vld [vmem:[%s6658_s8 + $0x180] sm:$0xff]  ;;  %3293 = vmatpush1.msra.mxu0 %v3002_v21  ;;  %v2991_v25 = vld [vmem:[%s6658_s8 + $0x178] sm:$0xff] }
 0xf0e   :  { %v2792_v46 = vpop.f32.mrf.mxu1  ;;  %v2997_v17 = vld [vmem:[%s6658_s8 + $0x1a8] sm:$0xff]  ;;  %3140 = vmatprep.subr.mxu1 %v2993_v32  ;;  %v2968_v45 = vld [vmem:[%s6658_s8 + $0xc0] sm:$0xff]  ;;  %v3058_v21 = vld [vmem:[%s6658_s8 + $0x390] sm:$0xff] }
 0xf0f   :  { %v5511_v34 = vadd.f32 %v4081_v4, %v2864_v33  ;;  %v2793_v49 = vadd.f32 %v2792_v46, %v2716_v47  ;;  %v2996_v33 = vld [vmem:[%s6658_s8 + $0x1a0] sm:$0xff]  ;;  %v2987_v4 = vld [vmem:[%s6658_s8 + $0x158] sm:$0xff]  ;;  %3294 = vmatprep.subr.mxu0 %v2997_v17  ;;  %3141 = vmatpush1.msra.mxu1 %v2992_v5  ;;  %v3062_v32 = vld [vmem:[%s6658_s8 + $0x3b0] sm:$0xff] }
 0xf10   :  { %3295 = vmatpush1.msra.mxu0 %v2996_v33  ;;  %3142 = vmatprep.subr.mxu1 %v2987_v4  ;;  %v2972_v46 = vld [vmem:[%s6658_s8 + $0xe0] sm:$0xff]  ;;  %v2963_v47 = vld [vmem:[%s6658_s8 + $0x98] sm:$0xff]  ;;  %v3053_v17 = vld [vmem:[%s6658_s8 + $0x368] sm:$0xff] }
 0xf11   :  { %v2878_v62 = vsel %vm48_vm0, %v5511_v34, 0.0  ;;  %3296 = vmatprep.subr.mxu0 %v2991_v25  ;;  %v3057_v5 = vld [vmem:[%s6658_s8 + $0x388] sm:$0xff]  ;;  %v3052_v33 = vld [vmem:[%s6658_s8 + $0x360] sm:$0xff]  ;;  %v3047_v25 = vld [vmem:[%s6658_s8 + $0x338] sm:$0xff] }
 0xf12   :  { %v2879_v20 = vadd.f32 %v2878_v62, %v5516_v61  ;;  %v2986_v62 = vld [vmem:[%s6658_s8 + $0x150] sm:$0xff]  ;;  %v3056_v4 = vld [vmem:[%s6658_s8 + $0x380] sm:$0xff] }
 0xf13   :  { %3143 = vmatpush1.msra.mxu1 %v2986_v62  ;;  %v3051_v62 = vld [vmem:[%s6658_s8 + $0x358] sm:$0xff] }
 0xf14   :  { %2880 = vadd.xlane.f32.xlu0 %v2879_v20  ;;  %v2990_v20 = vld [vmem:[%s6658_s8 + $0x170] sm:$0xff]  ;;  %3144 = vmatprep.subr.mxu1 %v2981_v35 }
 0xf15   :  { %3297 = vmatpush1.msra.mxu0 %v2990_v20  ;;  %3145 = vmatpush1.msra.mxu1 %v2980_v37  ;;  %v3046_v20 = vld [vmem:[%s6658_s8 + $0x330] sm:$0xff]  ;;  %v3045_v37 = vld [vmem:[%s6658_s8 + $0x328] sm:$0xff] }
 0xf16   :  { %3298 = vmatprep.subr.mxu0 %v2985_v36  ;;  %3146 = vmatprep.subr.mxu1 %v2975_v39  ;;  %v3050_v35 = vld [vmem:[%s6658_s8 + $0x350] sm:$0xff]  ;;  %v3041_v36 = vld [vmem:[%s6658_s8 + $0x308] sm:$0xff]  ;;  %v3044_v39 = vld [vmem:[%s6658_s8 + $0x320] sm:$0xff] }
 0xf17   :  { %3299 = vmatpush1.msra.mxu0 %v2984_v38  ;;  %3147 = vmatpush1.msra.mxu1 %v2974_v41  ;;  %v3040_v38 = vld [vmem:[%s6658_s8 + $0x300] sm:$0xff] }
 0xf18   :  { %3300 = vmatprep.subr.mxu0 %v2979_v40  ;;  %3148 = vmatprep.subr.mxu1 %v2969_v43  ;;  %v3037_v40 = vld [vmem:[%s6658_s8 + $0x2e8] sm:$0xff] }
 0xf19   :  { %3301 = vmatpush1.msra.mxu0 %v2978_v42  ;;  %3149 = vmatpush1.msra.mxu1 %v2968_v45 }
 0xf1a   :  { %3302 = vmatprep.subr.mxu0 %v2973_v44  ;;  %3150 = vmatprep.subr.mxu1 %v2963_v47 }
 0xf1b   :  { %3303 = vmatpush1.msra.mxu0 %v2972_v46 }
 0xf8a   :  { %v2867_v29 = vpop.f32.mrf.mxu0 }
 0xf8b   :  { %v2868_v51 = vadd.f32 %v2867_v29, %v2791_v48  ;;  %v2967_v48 = vld [vmem:[%s6658_s8 + $0xb8] sm:$0xff]  ;;  %v2962_v29 = vld [vmem:[%s6658_s8 + $0x90] sm:$0xff] }
 0xf8c   :  { %v2869_v50 = vpop.f32.mrf.mxu0  ;;  %3304 = vmatprep.subr.mxu0 %v2967_v48  ;;  %3151 = vmatpush1.msra.mxu1 %v2962_v29 }
 0xf8d   :  { %v2870_v52 = vadd.f32 %v2869_v50, %v2793_v49  ;;  %v5560_v56 = vadd.f32 %v4084_v55, %v2868_v51  ;;  %v2966_v49 = vld [vmem:[%s6658_s8 + $0xb0] sm:$0xff]  ;;  %v2957_v51 = vld [vmem:[%s6658_s8 + $0x68] sm:$0xff]  ;;  %v2951_v55 = vld [vmem:[%s6658_s8 + $0x38] sm:$0xff] }
 0xf8e   :  { %v2961_v50 = vld [vmem:[%s6658_s8 + $0x88] sm:$0xff]  ;;  %3305 = vmatpush1.msra.mxu0 %v2966_v49  ;;  %3152 = vmatprep.subr.mxu1 %v2957_v51 }
 0xf8f   :  { %v5555_v54 = vadd.f32 %v4083_v53, %v2870_v52  ;;  %v2956_v52 = vld [vmem:[%s6658_s8 + $0x60] sm:$0xff]  ;;  %3306 = vmatprep.subr.mxu0 %v2961_v50 }
 0xf90   :  { %v2960_v53 = vld [vmem:[%s6658_s8 + $0x80] sm:$0xff]  ;;  %3153 = vmatpush1.msra.mxu1 %v2956_v52 }
 0xf91   :  { %v2882_v1 = vsel %vm48_vm0, %v5555_v54, 0.0  ;;  %3307 = vmatpush1.msra.mxu0 %v2960_v53  ;;  %3154 = vmatprep.subr.mxu1 %v2951_v55  ;;  %v2876_v50 = vld [vmem:[%s6656_s6] sm:$0x3] }
 0xf92   :  { %v2883_v59 = vadd.f32 %v2882_v1, %v5560_v56  ;;  %v2955_v1 = vld [vmem:[%s6658_s8 + $0x58] sm:$0xff]  ;;  %v2877_v52 = vld [vmem:[%s6657_s7] sm:$0x3]  ;;  %v5855_v53 = vrot.slane %v2876_v50, %v4523_v8  ;;  %v5858_v55 = vrot.slane %v2876_v50, %v4520_v7  ;;  %v3054_v50 = vld [vmem:[%s6658_s8 + $0x370] sm:$0xff] }
 0xf93   :  { %3308 = vmatprep.subr.mxu0 %v2955_v1 }
 0xf94   :  { %2884 = vadd.xlane.f32.xlu1 %v2883_v59  ;;  %v2950_v59 = vld [vmem:[%s6658_s8 + $0x30] sm:$0xff] }
 0xf95   :  { %3155 = vmatpush1.msra.mxu1 %v2950_v59 }
 0xf9d   :  { %v2881_v60 = vpop.xlane.xlu0 %2880 }
 0xf9e   :  { %v2886_v0 = vmul.f32 0.0052083335, %v2881_v60  ;;  %v2954_v60 = vld [vmem:[%s6658_s8 + $0x50] sm:$0xff] }
 0xf9f   :  { %3309 = vmatpush1.msra.mxu0 %v2954_v60 }
 0xfa0   :  { %v5578_v12 = vsub.f32 %v5516_v61, %v2886_v0  ;;  %v5581_v13 = vsub.f32 %v5511_v34, %v2886_v0  ;;  %v2945_v0 = vld [vmem:[%s6658_s8 + $0x8] sm:$0xff]  ;;  %3310 = vmatprep.subr.mxu0 %v2949_v3  ;;  %v5866_v3 = vrot.slane %v2877_v52, %v4520_v7 }
 0xfa1   :  { %3156 = vmatprep.subr.mxu1 %v2945_v0  ;;  %3311 = vmatpush1.msra.mxu0 %v2948_v10  ;;  %v5863_v0 = vrot.slane %v2877_v52, %v4523_v8  ;;  %v3049_v52 = vld [vmem:[%s6658_s8 + $0x348] sm:$0xff] }
 0xfa2   :  { %v2892_v2 = vmul.f32 %v5578_v12, %v5578_v12  ;;  %v2893_v19 = vmul.f32 %v5581_v13, %v5581_v13  ;;  %3157 = vmatpush1.msra.mxu1 %v2944_v9  ;;  %3328 = vmatprep.subr.mxu0 %v3087_v16 }
 0xfa3   :  { %3174 = vmatprep.subr.mxu1 %v3083_v11  ;;  %3329 = vmatpush2.msra.mxu0 %v3086_v57  ;;  %v3025_v57 = vld [vmem:[%s6658_s8 + $0x288] sm:$0xff] }
 0xfa4   :  { %v2896_v30 = vsel %vm48_vm0, %v2893_v19, 0.0  ;;  %3175 = vmatpush2.msra.mxu1 %v3082_v22  ;;  %3330 = vmatprep.subr.mxu0 %v3081_v18  ;;  %v3071_v19 = vld [vmem:[%s6658_s8 + $0x3f8] sm:$0xff]  ;;  %v3030_v22 = vld [vmem:[%s6658_s8 + $0x2b0] sm:$0xff] }
 0xfa5   :  { %v2897_v31 = vadd.f32 %v2896_v30, %v2892_v2  ;;  %3176 = vmatprep.subr.mxu1 %v3077_v24  ;;  %v3080_v2 = vld [vmem:[%s6658_s8 + $0x440] sm:$0xff]  ;;  %v3019_v18 = vld [vmem:[%s6658_s8 + $0x258] sm:$0xff] }
 0xfa6   :  { %3177 = vmatpush2.msra.mxu1 %v3076_v63  ;;  %3331 = vmatpush2.msra.mxu0 %v3080_v2  ;;  %v3068_v30 = vld [vmem:[%s6658_s8 + $0x3e0] sm:$0xff]  ;;  %v3018_v63 = vld [vmem:[%s6658_s8 + $0x250] sm:$0xff]  ;;  %v3013_v2 = vld [vmem:[%s6658_s8 + $0x228] sm:$0xff] }
 0xfa7   :  { %2898 = vadd.xlane.f32.xlu0 %v2897_v31  ;;  %3178 = vmatprep.subr.mxu1 %v3071_v19  ;;  %v3063_v31 = vld [vmem:[%s6658_s8 + $0x3b8] sm:$0xff]  ;;  %v3024_v24 = vld [vmem:[%s6658_s8 + $0x280] sm:$0xff] }
 0xfa8   :  { %3332 = vmatprep.subr.mxu0 %v3075_v26  ;;  %3179 = vmatpush2.msra.mxu1 %v3070_v27  ;;  %v3012_v19 = vld [vmem:[%s6658_s8 + $0x220] sm:$0xff]  ;;  %v3007_v26 = vld [vmem:[%s6658_s8 + $0x1f8] sm:$0xff]  ;;  %v3006_v27 = vld [vmem:[%s6658_s8 + $0x1f0] sm:$0xff] }
 0xfa9   :  { %3333 = vmatpush2.msra.mxu0 %v3074_v23  ;;  %3180 = vmatprep.subr.mxu1 %v3065_v58  ;;  %v3001_v23 = vld [vmem:[%s6658_s8 + $0x1c8] sm:$0xff]  ;;  %v3000_v58 = vld [vmem:[%s6658_s8 + $0x1c0] sm:$0xff] }
 0xfaa   :  { %3334 = vmatprep.subr.mxu0 %v3069_v14  ;;  %3181 = vmatpush2.msra.mxu1 %v3064_v28  ;;  %v2995_v14 = vld [vmem:[%s6658_s8 + $0x198] sm:$0xff]  ;;  %v2994_v28 = vld [vmem:[%s6658_s8 + $0x190] sm:$0xff] }
 0xfab   :  { %3335 = vmatpush2.msra.mxu0 %v3068_v30  ;;  %3182 = vmatprep.subr.mxu1 %v3059_v15  ;;  %v2989_v30 = vld [vmem:[%s6658_s8 + $0x168] sm:$0xff]  ;;  %v2988_v15 = vld [vmem:[%s6658_s8 + $0x160] sm:$0xff] }
 0xfac   :  { %3336 = vmatprep.subr.mxu0 %v3063_v31  ;;  %3183 = vmatpush2.msra.mxu1 %v3058_v21  ;;  %v2983_v31 = vld [vmem:[%s6658_s8 + $0x138] sm:$0xff]  ;;  %v2982_v21 = vld [vmem:[%s6658_s8 + $0x130] sm:$0xff] }
 0xfad   :  { %3337 = vmatpush2.msra.mxu0 %v3062_v32  ;;  %3184 = vmatprep.subr.mxu1 %v3053_v17  ;;  %v2977_v32 = vld [vmem:[%s6658_s8 + $0x108] sm:$0xff]  ;;  %v2976_v17 = vld [vmem:[%s6658_s8 + $0x100] sm:$0xff] }
 0xfae   :  { %3338 = vmatprep.subr.mxu0 %v3057_v5  ;;  %3185 = vmatpush2.msra.mxu1 %v3052_v33  ;;  %v2971_v5 = vld [vmem:[%s6658_s8 + $0xd8] sm:$0xff]  ;;  %v2970_v33 = vld [vmem:[%s6658_s8 + $0xd0] sm:$0xff] }
 0xfaf   :  { %3339 = vmatpush2.msra.mxu0 %v3056_v4  ;;  %3186 = vmatprep.subr.mxu1 %v3047_v25  ;;  %v2965_v4 = vld [vmem:[%s6658_s8 + $0xa8] sm:$0xff]  ;;  %v2964_v25 = vld [vmem:[%s6658_s8 + $0xa0] sm:$0xff] }
 0xfb0   :  { %3340 = vmatprep.subr.mxu0 %v3051_v62  ;;  %3187 = vmatpush2.msra.mxu1 %v3046_v20  ;;  %v2959_v62 = vld [vmem:[%s6658_s8 + $0x78] sm:$0xff]  ;;  %v2958_v20 = vld [vmem:[%s6658_s8 + $0x70] sm:$0xff] }
 0xfb1   :  { %3341 = vmatpush2.msra.mxu0 %v3050_v35  ;;  %3188 = vmatprep.subr.mxu1 %v3041_v36  ;;  %v2953_v35 = vld [vmem:[%s6658_s8 + $0x48] sm:$0xff]  ;;  %v2952_v36 = vld [vmem:[%s6658_s8 + $0x40] sm:$0xff] }
 0xfb2   :  { %3342 = vmatprep.subr.mxu0 %v3045_v37  ;;  %3189 = vmatpush2.msra.mxu1 %v3040_v38  ;;  %v2947_v37 = vld [vmem:[%s6658_s8 + $0x18] sm:$0xff]  ;;  %v2946_v38 = vld [vmem:[%s6658_s8 + $0x10] sm:$0xff] }
 0xfb3   :  { %3343 = vmatpush2.msra.mxu0 %v3044_v39  ;;  %3203 = vmatprep.subr.mxu1 %v3037_v40  ;;  %v3085_v39 = vld [vmem:[%s6658_s8 + $0x468] sm:$0xff]  ;;  %v3084_v40 = vld [vmem:[%s6658_s8 + $0x460] sm:$0xff] }
0x101d   :  { %v2885_v41 = vpop.xlane.xlu1 %2884 }
0x101e   :  { %v2887_v42 = vmul.f32 0.0052083335, %v2885_v41  ;;  %v3079_v41 = vld [vmem:[%s6658_s8 + $0x438] sm:$0xff] }
0x1020   :  { %v5838_v43 = vsub.f32 %v5560_v56, %v2887_v42  ;;  %v5841_v44 = vsub.f32 %v5555_v54, %v2887_v42  ;;  %v3078_v42 = vld [vmem:[%s6658_s8 + $0x430] sm:$0xff] }
0x1022   :  { %v2894_v45 = vmul.f32 %v5838_v43, %v5838_v43  ;;  %v2895_v46 = vmul.f32 %v5841_v44, %v5841_v44 }
0x1024   :  { %v2900_v47 = vsel %vm48_vm0, %v2895_v46, 0.0  ;;  %v3072_v46 = vld [vmem:[%s6658_s8 + $0x400] sm:$0xff] }
0x1025   :  { %v2901_v48 = vadd.f32 %v2900_v47, %v2894_v45  ;;  %v3073_v45 = vld [vmem:[%s6658_s8 + $0x408] sm:$0xff]  ;;  %v3067_v47 = vld [vmem:[%s6658_s8 + $0x3d8] sm:$0xff] }
0x1027   :  { %2902 = vadd.xlane.f32.xlu1 %v2901_v48  ;;  %v3066_v48 = vld [vmem:[%s6658_s8 + $0x3d0] sm:$0xff] }
0x1030   :  { %v2899_v29 = vpop.xlane.xlu0 %2898 }
0x1031   :  { %v2904_v49 = vmul.f32 0.0052083335, %v2899_v29  ;;  %v3061_v29 = vld [vmem:[%s6658_s8 + $0x3a8] sm:$0xff] }
0x1033   :  { %v2906_v51 = vadd.f32 1e-05, %v2904_v49  ;;  %v3060_v49 = vld [vmem:[%s6658_s8 + $0x3a0] sm:$0xff] }
0x1035   :  { %4077 = vrsqrt.f32 %v2906_v51  ;;  %v3055_v51 = vld [vmem:[%s6658_s8 + $0x378] sm:$0xff] }
0x1042   :  { %v4078_v1 = vpop.eup %4077 }
0x1043   :  { %v2910_v59 = vmul.f32 %v4078_v1, %v5578_v12  ;;  %v2911_v60 = vmul.f32 %v4078_v1, %v5581_v13  ;;  %v3036_v12 = vld [vmem:[%s6658_s8 + $0x2e0] sm:$0xff]  ;;  %v3031_v13 = vld [vmem:[%s6658_s8 + $0x2b8] sm:$0xff] }
0x1044   :  { %v3048_v1 = vld [vmem:[%s6658_s8 + $0x340] sm:$0xff] }
0x1045   :  { %v2926_v9 = vmul.f32 %v5858_v55, %v2911_v60  ;;  %v2925_v10 = vmul.f32 %v5855_v53, %v2910_v59  ;;  %v3043_v59 = vld [vmem:[%s6658_s8 + $0x318] sm:$0xff]  ;;  %v3042_v60 = vld [vmem:[%s6658_s8 + $0x310] sm:$0xff] }
0x1047   :  { %v5871_v11 = vadd.f32 %v5866_v3, %v2926_v9  ;;  %v5874_v16 = vadd.f32 %v5863_v0, %v2925_v10  ;;  %v3400_v9 = vld [vmem:[%s6660_s10 + $0xf8] sm:$0xff] }
0x1048   :  { %v3464_v10 = vld [vmem:[%s6660_s10 + $0x2f8] sm:$0xff] }
0x1049   :  { %3846 = vmatprep.mubr.msk.f32.mxu1 %vm48_vm0, %v5871_v11  ;;  %3850 = vmatprep.mubr.msk.f32.mxu0 %vm48_vm0, %v5871_v11 }
0x104a   :  { %3191 = vmatmul.mubr.f32.vlgmr.msra.gmra.mxu1 %v5874_v16  ;;  %3345 = vmatmul.mubr.f32.vlgmr.msra.gmra.mxu0 %v5874_v16 }
0x104b   :  { %3204 = vmatpush1.msra.mxu1 %v3036_v12  ;;  %v3463_v12 = vld [vmem:[%s6660_s10 + $0x2f0] sm:$0xff]  ;;  %3650 = vmatprep.subr.mxu0 %v3464_v10  ;;  %v3482_v10 = vld [vmem:[%s6660_s10 + $0x388] sm:$0xff] }
0x104c   :  { %3205 = vmatprep.subr.mxu1 %v3031_v13  ;;  %v3462_v13 = vld [vmem:[%s6660_s10 + $0x2e8] sm:$0xff]  ;;  %3651 = vmatpush1.msra.mxu0 %v3463_v12  ;;  %v3481_v12 = vld [vmem:[%s6660_s10 + $0x380] sm:$0xff] }
0x104d   :  { %3206 = vmatpush1.msra.mxu1 %v3030_v22  ;;  %v3461_v22 = vld [vmem:[%s6660_s10 + $0x2e0] sm:$0xff]  ;;  %3652 = vmatprep.subr.mxu0 %v3462_v13  ;;  %v3480_v13 = vld [vmem:[%s6660_s10 + $0x378] sm:$0xff] }
0x104e   :  { %3207 = vmatprep.subr.mxu1 %v3025_v57  ;;  %v3460_v57 = vld [vmem:[%s6660_s10 + $0x2d8] sm:$0xff]  ;;  %3653 = vmatpush1.msra.mxu0 %v3461_v22 }
0x104f   :  { %3208 = vmatpush1.msra.mxu1 %v3024_v24  ;;  %v3459_v24 = vld [vmem:[%s6660_s10 + $0x2d0] sm:$0xff]  ;;  %3654 = vmatprep.subr.mxu0 %v3460_v57 }
0x1050   :  { %3209 = vmatprep.subr.mxu1 %v3019_v18  ;;  %v3458_v18 = vld [vmem:[%s6660_s10 + $0x2c8] sm:$0xff]  ;;  %3655 = vmatpush1.msra.mxu0 %v3459_v24  ;;  %v3479_v57 = vld [vmem:[%s6660_s10 + $0x370] sm:$0xff] }
0x1051   :  { %3210 = vmatpush1.msra.mxu1 %v3018_v63  ;;  %v3457_v63 = vld [vmem:[%s6660_s10 + $0x2c0] sm:$0xff]  ;;  %3656 = vmatprep.subr.mxu0 %v3458_v18 }
0x1052   :  { %3211 = vmatprep.subr.mxu1 %v3013_v2  ;;  %v3456_v2 = vld [vmem:[%s6660_s10 + $0x2b8] sm:$0xff]  ;;  %3657 = vmatpush1.msra.mxu0 %v3457_v63  ;;  %v3478_v63 = vld [vmem:[%s6660_s10 + $0x368] sm:$0xff] }
0x1053   :  { %3212 = vmatpush1.msra.mxu1 %v3012_v19  ;;  %v3455_v19 = vld [vmem:[%s6660_s10 + $0x2b0] sm:$0xff]  ;;  %3658 = vmatprep.subr.mxu0 %v3456_v2  ;;  %v3477_v2 = vld [vmem:[%s6660_s10 + $0x360] sm:$0xff] }
0x1054   :  { %3213 = vmatprep.subr.mxu1 %v3007_v26  ;;  %v3454_v26 = vld [vmem:[%s6660_s10 + $0x2a8] sm:$0xff]  ;;  %3659 = vmatpush1.msra.mxu0 %v3455_v19 }
0x1055   :  { %3214 = vmatpush1.msra.mxu1 %v3006_v27  ;;  %v3453_v27 = vld [vmem:[%s6660_s10 + $0x2a0] sm:$0xff]  ;;  %3660 = vmatprep.subr.mxu0 %v3454_v26 }
0x1056   :  { %3215 = vmatprep.subr.mxu1 %v3001_v23  ;;  %v3452_v23 = vld [vmem:[%s6660_s10 + $0x298] sm:$0xff]  ;;  %3661 = vmatpush1.msra.mxu0 %v3453_v27  ;;  %v3393_v27 = vld [vmem:[%s6660_s10 + $0xc0] sm:$0xff] }
0x1057   :  { %3216 = vmatpush1.msra.mxu1 %v3000_v58  ;;  %v3451_v58 = vld [vmem:[%s6660_s10 + $0x290] sm:$0xff]  ;;  %3662 = vmatprep.subr.mxu0 %v3452_v23  ;;  %v3392_v23 = vld [vmem:[%s6660_s10 + $0xb8] sm:$0xff] }
0x1058   :  { %3217 = vmatprep.subr.mxu1 %v2995_v14  ;;  %v3450_v14 = vld [vmem:[%s6660_s10 + $0x288] sm:$0xff]  ;;  %3663 = vmatpush1.msra.mxu0 %v3451_v58  ;;  %v3391_v58 = vld [vmem:[%s6660_s10 + $0xb0] sm:$0xff] }
0x1059   :  { %3218 = vmatpush1.msra.mxu1 %v2994_v28  ;;  %v3449_v28 = vld [vmem:[%s6660_s10 + $0x280] sm:$0xff]  ;;  %3664 = vmatprep.subr.mxu0 %v3450_v14  ;;  %v3390_v14 = vld [vmem:[%s6660_s10 + $0xa8] sm:$0xff] }
0x105a   :  { %3219 = vmatprep.subr.mxu1 %v2989_v30  ;;  %v3448_v30 = vld [vmem:[%s6660_s10 + $0x278] sm:$0xff]  ;;  %3665 = vmatpush1.msra.mxu0 %v3449_v28  ;;  %v3389_v28 = vld [vmem:[%s6660_s10 + $0xa0] sm:$0xff] }
0x105b   :  { %3220 = vmatpush1.msra.mxu1 %v2988_v15  ;;  %v3447_v15 = vld [vmem:[%s6660_s10 + $0x270] sm:$0xff]  ;;  %3666 = vmatprep.subr.mxu0 %v3448_v30  ;;  %v3388_v30 = vld [vmem:[%s6660_s10 + $0x98] sm:$0xff] }
0x105c   :  { %3221 = vmatprep.subr.mxu1 %v2983_v31  ;;  %v3446_v31 = vld [vmem:[%s6660_s10 + $0x268] sm:$0xff]  ;;  %3667 = vmatpush1.msra.mxu0 %v3447_v15  ;;  %v3387_v15 = vld [vmem:[%s6660_s10 + $0x90] sm:$0xff] }
0x105d   :  { %3222 = vmatpush1.msra.mxu1 %v2982_v21  ;;  %v3445_v21 = vld [vmem:[%s6660_s10 + $0x260] sm:$0xff]  ;;  %3668 = vmatprep.subr.mxu0 %v3446_v31  ;;  %v3386_v31 = vld [vmem:[%s6660_s10 + $0x88] sm:$0xff] }
0x105e   :  { %3223 = vmatprep.subr.mxu1 %v2977_v32  ;;  %v3444_v32 = vld [vmem:[%s6660_s10 + $0x258] sm:$0xff]  ;;  %3669 = vmatpush1.msra.mxu0 %v3445_v21  ;;  %v3385_v21 = vld [vmem:[%s6660_s10 + $0x80] sm:$0xff] }
0x105f   :  { %3224 = vmatpush1.msra.mxu1 %v2976_v17  ;;  %v3443_v17 = vld [vmem:[%s6660_s10 + $0x250] sm:$0xff]  ;;  %3670 = vmatprep.subr.mxu0 %v3444_v32  ;;  %v3384_v32 = vld [vmem:[%s6660_s10 + $0x78] sm:$0xff] }
0x1060   :  { %3225 = vmatprep.subr.mxu1 %v2971_v5  ;;  %v3442_v5 = vld [vmem:[%s6660_s10 + $0x248] sm:$0xff]  ;;  %3671 = vmatpush1.msra.mxu0 %v3443_v17  ;;  %v3383_v17 = vld [vmem:[%s6660_s10 + $0x70] sm:$0xff] }
0x1061   :  { %3226 = vmatpush1.msra.mxu1 %v2970_v33  ;;  %v3441_v33 = vld [vmem:[%s6660_s10 + $0x240] sm:$0xff]  ;;  %3672 = vmatprep.subr.mxu0 %v3442_v5  ;;  %v3382_v5 = vld [vmem:[%s6660_s10 + $0x68] sm:$0xff] }
0x1062   :  { %3227 = vmatprep.subr.mxu1 %v2965_v4  ;;  %v3440_v4 = vld [vmem:[%s6660_s10 + $0x238] sm:$0xff]  ;;  %3673 = vmatpush1.msra.mxu0 %v3441_v33  ;;  %v3381_v33 = vld [vmem:[%s6660_s10 + $0x60] sm:$0xff] }
0x1063   :  { %3228 = vmatpush1.msra.mxu1 %v2964_v25  ;;  %v3439_v25 = vld [vmem:[%s6660_s10 + $0x230] sm:$0xff]  ;;  %3674 = vmatprep.subr.mxu0 %v3440_v4  ;;  %v3380_v4 = vld [vmem:[%s6660_s10 + $0x58] sm:$0xff] }
0x1064   :  { %3229 = vmatprep.subr.mxu1 %v2959_v62  ;;  %v3438_v62 = vld [vmem:[%s6660_s10 + $0x228] sm:$0xff]  ;;  %3675 = vmatpush1.msra.mxu0 %v3439_v25  ;;  %v3379_v25 = vld [vmem:[%s6660_s10 + $0x50] sm:$0xff] }
0x1065   :  { %3230 = vmatpush1.msra.mxu1 %v2958_v20  ;;  %v3437_v20 = vld [vmem:[%s6660_s10 + $0x220] sm:$0xff]  ;;  %3676 = vmatprep.subr.mxu0 %v3438_v62  ;;  %v3378_v62 = vld [vmem:[%s6660_s10 + $0x48] sm:$0xff] }
0x1066   :  { %3231 = vmatprep.subr.mxu1 %v2953_v35  ;;  %v3436_v35 = vld [vmem:[%s6660_s10 + $0x218] sm:$0xff]  ;;  %3677 = vmatpush1.msra.mxu0 %v3437_v20  ;;  %v3377_v20 = vld [vmem:[%s6660_s10 + $0x40] sm:$0xff] }
0x1067   :  { %3232 = vmatpush1.msra.mxu1 %v2952_v36  ;;  %v3435_v36 = vld [vmem:[%s6660_s10 + $0x210] sm:$0xff]  ;;  %3678 = vmatprep.subr.mxu0 %v3436_v35  ;;  %v3376_v35 = vld [vmem:[%s6660_s10 + $0x38] sm:$0xff] }
0x1068   :  { %3233 = vmatprep.subr.mxu1 %v2947_v37  ;;  %v3434_v37 = vld [vmem:[%s6660_s10 + $0x208] sm:$0xff]  ;;  %3679 = vmatpush1.msra.mxu0 %v3435_v36  ;;  %v3375_v36 = vld [vmem:[%s6660_s10 + $0x30] sm:$0xff] }
0x1069   :  { %3234 = vmatpush1.msra.mxu1 %v2946_v38  ;;  %3680 = vmatprep.subr.mxu0 %v3434_v37  ;;  %v3374_v37 = vld [vmem:[%s6660_s10 + $0x28] sm:$0xff] }
0x106a   :  { %3251 = vmatprep.subr.mxu1 %v3085_v39  ;;  %v3433_v39 = vld [vmem:[%s6660_s10 + $0x200] sm:$0xff] }
0x106b   :  { %3252 = vmatpush2.msra.mxu1 %v3084_v40  ;;  %3681 = vmatpush1.msra.mxu0 %v3433_v39  ;;  %v3372_v39 = vld [vmem:[%s6660_s10 + $0x18] sm:$0xff] }
0x106c   :  { %3253 = vmatprep.subr.mxu1 %v3079_v41  ;;  %v3496_v41 = vld [vmem:[%s6660_s10 + $0x3f8] sm:$0xff] }
0x106d   :  { %3254 = vmatpush2.msra.mxu1 %v3078_v42  ;;  %v3495_v42 = vld [vmem:[%s6660_s10 + $0x3f0] sm:$0xff]  ;;  %3682 = vmatprep.subr.mxu0 %v3496_v41  ;;  %v3370_v41 = vld [vmem:[%s6660_s10 + $0x8] sm:$0xff] }
0x106e   :  { %3255 = vmatprep.subr.mxu1 %v3073_v45  ;;  %3683 = vmatpush2.msra.mxu0 %v3495_v42  ;;  %v3369_v42 = vld [vmem:[%s6660_s10] sm:$0xff] }
0x106f   :  { %3256 = vmatpush2.msra.mxu1 %v3072_v46  ;;  %v3494_v46 = vld [vmem:[%s6660_s10 + $0x3e8] sm:$0xff] }
0x1070   :  { %3257 = vmatprep.subr.mxu1 %v3067_v47  ;;  %v3493_v47 = vld [vmem:[%s6660_s10 + $0x3e0] sm:$0xff]  ;;  %3684 = vmatprep.subr.mxu0 %v3494_v46  ;;  %v3431_v46 = vld [vmem:[%s6660_s10 + $0x1f0] sm:$0xff] }
0x1071   :  { %3258 = vmatpush2.msra.mxu1 %v3066_v48  ;;  %v3492_v48 = vld [vmem:[%s6660_s10 + $0x3d8] sm:$0xff]  ;;  %3685 = vmatpush2.msra.mxu0 %v3493_v47  ;;  %v3430_v47 = vld [vmem:[%s6660_s10 + $0x1e8] sm:$0xff] }
0x1072   :  { %3259 = vmatprep.subr.mxu1 %v3061_v29  ;;  %v3491_v29 = vld [vmem:[%s6660_s10 + $0x3d0] sm:$0xff]  ;;  %3686 = vmatprep.subr.mxu0 %v3492_v48  ;;  %v3429_v48 = vld [vmem:[%s6660_s10 + $0x1e0] sm:$0xff] }
0x1073   :  { %3260 = vmatpush2.msra.mxu1 %v3060_v49  ;;  %v3490_v49 = vld [vmem:[%s6660_s10 + $0x3c8] sm:$0xff]  ;;  %3687 = vmatpush2.msra.mxu0 %v3491_v29  ;;  %v3428_v29 = vld [vmem:[%s6660_s10 + $0x1d8] sm:$0xff] }
0x1074   :  { %3261 = vmatprep.subr.mxu1 %v3055_v51  ;;  %v3489_v51 = vld [vmem:[%s6660_s10 + $0x3c0] sm:$0xff]  ;;  %3688 = vmatprep.subr.mxu0 %v3490_v49  ;;  %v3427_v49 = vld [vmem:[%s6660_s10 + $0x1d0] sm:$0xff] }
0x1075   :  { %3262 = vmatpush2.msra.mxu1 %v3054_v50  ;;  %v3488_v50 = vld [vmem:[%s6660_s10 + $0x3b8] sm:$0xff]  ;;  %3689 = vmatpush2.msra.mxu0 %v3489_v51  ;;  %v3426_v51 = vld [vmem:[%s6660_s10 + $0x1c8] sm:$0xff] }
0x1076   :  { %3263 = vmatprep.subr.mxu1 %v3049_v52  ;;  %v3487_v52 = vld [vmem:[%s6660_s10 + $0x3b0] sm:$0xff]  ;;  %3690 = vmatprep.subr.mxu0 %v3488_v50  ;;  %v3425_v50 = vld [vmem:[%s6660_s10 + $0x1c0] sm:$0xff] }
0x1077   :  { %3264 = vmatpush2.msra.mxu1 %v3048_v1  ;;  %v3486_v1 = vld [vmem:[%s6660_s10 + $0x3a8] sm:$0xff]  ;;  %3691 = vmatpush2.msra.mxu0 %v3487_v52  ;;  %v3424_v52 = vld [vmem:[%s6660_s10 + $0x1b8] sm:$0xff] }
0x1078   :  { %3265 = vmatprep.subr.mxu1 %v3043_v59  ;;  %v3485_v59 = vld [vmem:[%s6660_s10 + $0x3a0] sm:$0xff]  ;;  %3692 = vmatprep.subr.mxu0 %v3486_v1  ;;  %v3423_v1 = vld [vmem:[%s6660_s10 + $0x1b0] sm:$0xff] }
0x1079   :  { %3266 = vmatpush2.msra.mxu1 %v3042_v60  ;;  %v3484_v60 = vld [vmem:[%s6660_s10 + $0x398] sm:$0xff]  ;;  %3693 = vmatpush2.msra.mxu0 %v3485_v59  ;;  %v3422_v59 = vld [vmem:[%s6660_s10 + $0x1a8] sm:$0xff] }
0x107a   :  { %3573 = vmatprep.subr.mxu1 %v3400_v9  ;;  %v3483_v9 = vld [vmem:[%s6660_s10 + $0x390] sm:$0xff]  ;;  %3694 = vmatprep.subr.mxu0 %v3484_v60  ;;  %v3421_v60 = vld [vmem:[%s6660_s10 + $0x1a0] sm:$0xff] }
0x107b   :  { %3695 = vmatpush2.msra.mxu0 %v3483_v9  ;;  %v3420_v9 = vld [vmem:[%s6660_s10 + $0x198] sm:$0xff] }
0x107c   :  { %3696 = vmatprep.subr.mxu0 %v3482_v10  ;;  %v3419_v10 = vld [vmem:[%s6660_s10 + $0x190] sm:$0xff] }
0x107d   :  { %3697 = vmatpush2.msra.mxu0 %v3481_v12  ;;  %v3418_v12 = vld [vmem:[%s6660_s10 + $0x188] sm:$0xff] }
0x107e   :  { %3698 = vmatprep.subr.mxu0 %v3480_v13  ;;  %v3417_v13 = vld [vmem:[%s6660_s10 + $0x180] sm:$0xff] }
0x107f   :  { %3699 = vmatpush2.msra.mxu0 %v3479_v57  ;;  %v3415_v57 = vld [vmem:[%s6660_s10 + $0x170] sm:$0xff] }
0x1080   :  { %3700 = vmatprep.subr.mxu0 %v3478_v63  ;;  %v3412_v63 = vld [vmem:[%s6660_s10 + $0x158] sm:$0xff] }
0x1081   :  { %3701 = vmatpush2.msra.mxu0 %v3477_v2  ;;  %v3411_v2 = vld [vmem:[%s6660_s10 + $0x150] sm:$0xff] }
0x10b0   :  { %v2903_v38 = vpop.xlane.xlu1 %2902 }
0x10b1   :  { %v2905_v40 = vmul.f32 0.0052083335, %v2903_v38  ;;  %v3373_v38 = vld [vmem:[%s6660_s10 + $0x20] sm:$0xff] }
0x10b3   :  { %v2907_v45 = vadd.f32 1e-05, %v2905_v40  ;;  %v3371_v40 = vld [vmem:[%s6660_s10 + $0x10] sm:$0xff] }
0x10b5   :  { %4079 = vrsqrt.f32 %v2907_v45  ;;  %v3432_v45 = vld [vmem:[%s6660_s10 + $0x1f8] sm:$0xff] }
0x10c2   :  { %v4080_v22 = vpop.eup %4079 }
0x10c3   :  { %v2913_v24 = vmul.f32 %v4080_v22, %v5841_v44  ;;  %v2912_v18 = vmul.f32 %v4080_v22, %v5838_v43  ;;  %v3416_v22 = vld [vmem:[%s6660_s10 + $0x178] sm:$0xff] }
0x10c5   :  { %v2928_v19 = vmul.f32 %v5858_v55, %v2913_v24  ;;  %v2927_v26 = vmul.f32 %v5855_v53, %v2912_v18  ;;  %v3399_v55 = vld [vmem:[%s6660_s10 + $0xf0] sm:$0xff]  ;;  %v3398_v53 = vld [vmem:[%s6660_s10 + $0xe8] sm:$0xff]  ;;  %v3413_v18 = vld [vmem:[%s6660_s10 + $0x160] sm:$0xff] }
0x10c6   :  { %v3414_v24 = vld [vmem:[%s6660_s10 + $0x168] sm:$0xff] }
0x10c7   :  { %v2943_v44 = vadd.f32 %v5866_v3, %v2928_v19  ;;  %v2942_v43 = vadd.f32 %v5863_v0, %v2927_v26  ;;  %v3397_v0 = vld [vmem:[%s6660_s10 + $0xe0] sm:$0xff]  ;;  %v3396_v3 = vld [vmem:[%s6660_s10 + $0xd8] sm:$0xff]  ;;  %v3410_v19 = vld [vmem:[%s6660_s10 + $0x148] sm:$0xff] }
0x10c8   :  { %v3409_v26 = vld [vmem:[%s6660_s10 + $0x140] sm:$0xff] }
0x10c9   :  { %3847 = vmatprep.mubr.msk.f32.mxu1 %vm48_vm0, %v2943_v44  ;;  %3851 = vmatprep.mubr.msk.f32.mxu0 %vm48_vm0, %v2943_v44 }
0x10ca   :  { %3197 = vmatmul.mubr.f32.gmra.mxu1 %v2942_v43  ;;  %3351 = vmatmul.mubr.f32.gmra.mxu0 %v2942_v43 }
0x10cb   :  { %3848 = vmatprep.mubr.msk.f32.mxu1 %vm48_vm0, %v5871_v11  ;;  %v3395_v11 = vld [vmem:[%s6660_s10 + $0xd0] sm:$0xff] }
0x10ce   :  { %3268 = vmatmul.mubr.f32.vlgmr.msra.gmra.mxu1 %v5874_v16  ;;  %v3394_v16 = vld [vmem:[%s6660_s10 + $0xc8] sm:$0xff] }
0x10cf   :  { %3849 = vmatprep.mubr.msk.f32.mxu1 %vm48_vm0, %v2943_v44  ;;  %3574 = vmatpush1.msra.mxu1 %v3399_v55  ;;  %v3408_v44 = vld [vmem:[%s6660_s10 + $0x138] sm:$0xff]  ;;  %v6368_v55 = vld [vmem:[%s6659_s9] sm:$0x3f] }
0x10d0   :  { %3575 = vmatprep.subr.mxu1 %v3398_v53  ;;  %v3406_v53 = vld [vmem:[%s6660_s10 + $0x128] sm:$0xff] }
0x10d1   :  { %3576 = vmatpush1.msra.mxu1 %v3397_v0  ;;  %v3405_v0 = vld [vmem:[%s6660_s10 + $0x120] sm:$0xff] }
0x10d2   :  { %3274 = vmatmul.mubr.f32.gmra.mxu1 %v2942_v43  ;;  %3577 = vmatprep.subr.mxu1 %v3396_v3  ;;  %v3407_v43 = vld [vmem:[%s6660_s10 + $0x130] sm:$0xff]  ;;  %v3404_v3 = vld [vmem:[%s6660_s10 + $0x118] sm:$0xff] }
0x10d3   :  { %3578 = vmatpush1.msra.mxu1 %v3395_v11  ;;  %v6381_v11 = vrot.slane %v6368_v55, %v4523_v8 }
0x10d4   :  { %3579 = vmatprep.subr.mxu1 %v3394_v16  ;;  %v3403_v16 = vld [vmem:[%s6660_s10 + $0x110] sm:$0xff] }
0x10d5   :  { %3580 = vmatpush1.msra.mxu1 %v3393_v27  ;;  %v6388_v27 = vrot.slane %v6368_v55, %v4520_v7 }
0x10d6   :  { %3581 = vmatprep.subr.mxu1 %v3392_v23  ;;  %v3402_v23 = vld [vmem:[%s6660_s10 + $0x108] sm:$0xff] }
0x10d7   :  { %3582 = vmatpush1.msra.mxu1 %v3391_v58 }
0x10d8   :  { %3583 = vmatprep.subr.mxu1 %v3390_v14  ;;  %v3401_v14 = vld [vmem:[%s6660_s10 + $0x100] sm:$0xff] }
0x10d9   :  { %3584 = vmatpush1.msra.mxu1 %v3389_v28  ;;  %v3476_v28 = vld [vmem:[%s6660_s10 + $0x358] sm:$0xff] }
0x10da   :  { %3585 = vmatprep.subr.mxu1 %v3388_v30  ;;  %v3528_v30 = vld [vmem:[%s6660_s10 + $0x4f8] sm:$0xff]  ;;  %3702 = vmatprep.subr.mxu0 %v3476_v28  ;;  %v3555_v28 = vld [vmem:[%s6660_s10 + $0x5d0] sm:$0xff] }
0x10db   :  { %3586 = vmatpush1.msra.mxu1 %v3387_v15  ;;  %v3475_v15 = vld [vmem:[%s6660_s10 + $0x350] sm:$0xff] }
0x10dc   :  { %3587 = vmatprep.subr.mxu1 %v3386_v31  ;;  %3703 = vmatpush2.msra.mxu0 %v3475_v15  ;;  %v3553_v15 = vld [vmem:[%s6660_s10 + $0x5c0] sm:$0xff] }
0x10dd   :  { %3588 = vmatpush1.msra.mxu1 %v3385_v21 }
0x10de   :  { %3589 = vmatprep.subr.mxu1 %v3384_v32  ;;  %v3474_v32 = vld [vmem:[%s6660_s10 + $0x348] sm:$0xff] }
0x10df   :  { %3590 = vmatpush1.msra.mxu1 %v3383_v17  ;;  %3704 = vmatprep.subr.mxu0 %v3474_v32  ;;  %v3550_v32 = vld [vmem:[%s6660_s10 + $0x5a8] sm:$0xff] }
0x10e0   :  { %3591 = vmatprep.subr.mxu1 %v3382_v5  ;;  %v3473_v5 = vld [vmem:[%s6660_s10 + $0x340] sm:$0xff] }
0x10e1   :  { %3592 = vmatpush1.msra.mxu1 %v3381_v33  ;;  %3705 = vmatpush2.msra.mxu0 %v3473_v5  ;;  %v3472_v33 = vld [vmem:[%s6660_s10 + $0x338] sm:$0xff] }
0x10e2   :  { %3593 = vmatprep.subr.mxu1 %v3380_v4  ;;  %3706 = vmatprep.subr.mxu0 %v3472_v33  ;;  %v3548_v5 = vld [vmem:[%s6660_s10 + $0x598] sm:$0xff]  ;;  %v3547_v33 = vld [vmem:[%s6660_s10 + $0x590] sm:$0xff] }
0x10e3   :  { %3594 = vmatpush1.msra.mxu1 %v3379_v25  ;;  %v3471_v25 = vld [vmem:[%s6660_s10 + $0x330] sm:$0xff] }
0x10e4   :  { %3595 = vmatprep.subr.mxu1 %v3378_v62  ;;  %3707 = vmatpush2.msra.mxu0 %v3471_v25  ;;  %v3545_v25 = vld [vmem:[%s6660_s10 + $0x580] sm:$0xff] }
0x10e5   :  { %3596 = vmatpush1.msra.mxu1 %v3377_v20  ;;  %v3527_v20 = vld [vmem:[%s6660_s10 + $0x4f0] sm:$0xff] }
0x10e6   :  { %3597 = vmatprep.subr.mxu1 %v3376_v35  ;;  %v3470_v35 = vld [vmem:[%s6660_s10 + $0x328] sm:$0xff] }
0x10e7   :  { %3598 = vmatpush1.msra.mxu1 %v3375_v36  ;;  %v3526_v36 = vld [vmem:[%s6660_s10 + $0x4e8] sm:$0xff]  ;;  %3708 = vmatprep.subr.mxu0 %v3470_v35 }
0x10e8   :  { %3599 = vmatprep.subr.mxu1 %v3374_v37  ;;  %v3469_v37 = vld [vmem:[%s6660_s10 + $0x320] sm:$0xff]  ;;  %v3542_v35 = vld [vmem:[%s6660_s10 + $0x568] sm:$0xff] }
0x10e9   :  { %3600 = vmatpush1.msra.mxu1 %v3373_v38  ;;  %v3525_v38 = vld [vmem:[%s6660_s10 + $0x4e0] sm:$0xff]  ;;  %3709 = vmatpush2.msra.mxu0 %v3469_v37  ;;  %v3540_v37 = vld [vmem:[%s6660_s10 + $0x558] sm:$0xff] }
0x10ea   :  { %3601 = vmatprep.subr.mxu1 %v3372_v39  ;;  %v3468_v39 = vld [vmem:[%s6660_s10 + $0x318] sm:$0xff] }
0x10eb   :  { %3602 = vmatpush1.msra.mxu1 %v3371_v40  ;;  %v3524_v40 = vld [vmem:[%s6660_s10 + $0x4d8] sm:$0xff]  ;;  %3710 = vmatprep.subr.mxu0 %v3468_v39  ;;  %v3538_v39 = vld [vmem:[%s6660_s10 + $0x548] sm:$0xff] }
0x10ec   :  { %3603 = vmatprep.subr.mxu1 %v3370_v41  ;;  %v3467_v41 = vld [vmem:[%s6660_s10 + $0x310] sm:$0xff] }
0x10ed   :  { %3604 = vmatpush1.msra.mxu1 %v3369_v42  ;;  %v3523_v42 = vld [vmem:[%s6660_s10 + $0x4d0] sm:$0xff]  ;;  %3711 = vmatpush2.msra.mxu0 %v3467_v41  ;;  %v3536_v41 = vld [vmem:[%s6660_s10 + $0x538] sm:$0xff] }
0x10ee   :  { %3605 = vmatprep.subr.mxu1 %v3432_v45  ;;  %v3466_v45 = vld [vmem:[%s6660_s10 + $0x308] sm:$0xff] }
0x10ef   :  { %3606 = vmatpush2.msra.mxu1 %v3431_v46  ;;  %v3522_v46 = vld [vmem:[%s6660_s10 + $0x4c8] sm:$0xff]  ;;  %3712 = vmatprep.subr.mxu0 %v3466_v45 }
0x10f0   :  { %3607 = vmatprep.subr.mxu1 %v3430_v47  ;;  %v3465_v47 = vld [vmem:[%s6660_s10 + $0x300] sm:$0xff]  ;;  %v3534_v45 = vld [vmem:[%s6660_s10 + $0x528] sm:$0xff] }
0x10f1   :  { %3608 = vmatpush2.msra.mxu1 %v3429_v48  ;;  %v3521_v48 = vld [vmem:[%s6660_s10 + $0x4c0] sm:$0xff]  ;;  %3713 = vmatpush2.msra.mxu0 %v3465_v47  ;;  %v3532_v47 = vld [vmem:[%s6660_s10 + $0x518] sm:$0xff] }
0x10f2   :  { %3609 = vmatprep.subr.mxu1 %v3428_v29  ;;  %v3520_v29 = vld [vmem:[%s6660_s10 + $0x4b8] sm:$0xff] }
0x10f3   :  { %3610 = vmatpush2.msra.mxu1 %v3427_v49  ;;  %v3519_v49 = vld [vmem:[%s6660_s10 + $0x4b0] sm:$0xff] }
0x10f4   :  { %3611 = vmatprep.subr.mxu1 %v3426_v51  ;;  %v3518_v51 = vld [vmem:[%s6660_s10 + $0x4a8] sm:$0xff] }
0x10f5   :  { %3612 = vmatpush2.msra.mxu1 %v3425_v50  ;;  %v3517_v50 = vld [vmem:[%s6660_s10 + $0x4a0] sm:$0xff] }
0x10f6   :  { %3613 = vmatprep.subr.mxu1 %v3424_v52  ;;  %v3516_v52 = vld [vmem:[%s6660_s10 + $0x498] sm:$0xff] }
0x10f7   :  { %3614 = vmatpush2.msra.mxu1 %v3423_v1  ;;  %v3515_v1 = vld [vmem:[%s6660_s10 + $0x490] sm:$0xff] }
0x10f8   :  { %3615 = vmatprep.subr.mxu1 %v3422_v59  ;;  %v3514_v59 = vld [vmem:[%s6660_s10 + $0x488] sm:$0xff] }
0x10f9   :  { %3616 = vmatpush2.msra.mxu1 %v3421_v60  ;;  %v3513_v60 = vld [vmem:[%s6660_s10 + $0x480] sm:$0xff] }
0x10fa   :  { %3617 = vmatprep.subr.mxu1 %v3420_v9  ;;  %v3512_v9 = vld [vmem:[%s6660_s10 + $0x478] sm:$0xff] }
0x10fb   :  { %3618 = vmatpush2.msra.mxu1 %v3419_v10  ;;  %v3511_v10 = vld [vmem:[%s6660_s10 + $0x470] sm:$0xff] }
0x10fc   :  { %3619 = vmatprep.subr.mxu1 %v3418_v12  ;;  %v3510_v12 = vld [vmem:[%s6660_s10 + $0x468] sm:$0xff] }
0x10fd   :  { %3620 = vmatpush2.msra.mxu1 %v3417_v13  ;;  %v3509_v13 = vld [vmem:[%s6660_s10 + $0x460] sm:$0xff] }
0x10fe   :  { %3621 = vmatprep.subr.mxu1 %v3416_v22  ;;  %v3508_v22 = vld [vmem:[%s6660_s10 + $0x458] sm:$0xff] }
0x10ff   :  { %3622 = vmatpush2.msra.mxu1 %v3415_v57  ;;  %v3507_v57 = vld [vmem:[%s6660_s10 + $0x450] sm:$0xff] }
0x1100   :  { %3623 = vmatprep.subr.mxu1 %v3414_v24  ;;  %v3506_v24 = vld [vmem:[%s6660_s10 + $0x448] sm:$0xff] }
0x1101   :  { %3624 = vmatpush2.msra.mxu1 %v3413_v18  ;;  %v3505_v18 = vld [vmem:[%s6660_s10 + $0x440] sm:$0xff] }
0x1102   :  { %3625 = vmatprep.subr.mxu1 %v3412_v63  ;;  %v3504_v63 = vld [vmem:[%s6660_s10 + $0x438] sm:$0xff] }
0x1103   :  { %3626 = vmatpush2.msra.mxu1 %v3411_v2  ;;  %v3503_v2 = vld [vmem:[%s6660_s10 + $0x430] sm:$0xff] }
0x1104   :  { %3627 = vmatprep.subr.mxu1 %v3410_v19  ;;  %v3502_v19 = vld [vmem:[%s6660_s10 + $0x428] sm:$0xff] }
0x1105   :  { %3628 = vmatpush2.msra.mxu1 %v3409_v26  ;;  %v3501_v26 = vld [vmem:[%s6660_s10 + $0x420] sm:$0xff] }
0x1106   :  { %3629 = vmatprep.subr.mxu1 %v3408_v44  ;;  %v3500_v44 = vld [vmem:[%s6660_s10 + $0x418] sm:$0xff] }
0x1107   :  { %3630 = vmatpush2.msra.mxu1 %v3407_v43  ;;  %v3499_v43 = vld [vmem:[%s6660_s10 + $0x410] sm:$0xff] }
0x1108   :  { %3631 = vmatprep.subr.mxu1 %v3406_v53  ;;  %v3498_v53 = vld [vmem:[%s6660_s10 + $0x408] sm:$0xff] }
0x1109   :  { %3632 = vmatpush2.msra.mxu1 %v3405_v0  ;;  %v3497_v0 = vld [vmem:[%s6660_s10 + $0x400] sm:$0xff] }
0x110a   :  { %v3192_v58 = vpop.f32.mrf.mxu1  ;;  %3633 = vmatprep.subr.mxu1 %v3404_v3  ;;  %v3560_v3 = vld [vmem:[%s6660_s10 + $0x5f8] sm:$0xff] }
0x110b   :  { %3634 = vmatpush2.msra.mxu1 %v3403_v16  ;;  %v3193_v31 = vadd.f32 %v3192_v58, %v6381_v11  ;;  %v3559_v16 = vld [vmem:[%s6660_s10 + $0x5f0] sm:$0xff]  ;;  %v3557_v58 = vld [vmem:[%s6660_s10 + $0x5e0] sm:$0xff] }
0x110c   :  { %v3194_v21 = vpop.f32.mrf.mxu1  ;;  %3635 = vmatprep.subr.mxu1 %v3402_v23  ;;  %v3558_v23 = vld [vmem:[%s6660_s10 + $0x5e8] sm:$0xff] }
0x110d   :  { %v3195_v17 = vadd.f32 %v3194_v21, %v6388_v27  ;;  %3636 = vmatpush2.msra.mxu1 %v3401_v14  ;;  %v3357_v62 = vmax.f32 %v3193_v31, 0.0  ;;  %v3556_v14 = vld [vmem:[%s6660_s10 + $0x5d8] sm:$0xff]  ;;  %v3551_v21 = vld [vmem:[%s6660_s10 + $0x5b0] sm:$0xff] }
0x110e   :  { %3727 = vmatprep.subr.mxu1 %v3528_v30  ;;  %v3554_v30 = vld [vmem:[%s6660_s10 + $0x5c8] sm:$0xff]  ;;  %v3552_v31 = vld [vmem:[%s6660_s10 + $0x5b8] sm:$0xff] }
0x110f   :  { %v3358_v4 = vmax.f32 %v3195_v17, 0.0  ;;  %v3549_v17 = vld [vmem:[%s6660_s10 + $0x5a0] sm:$0xff] }
0x1111   :  { %3637 = vmatprep.mubr.f32.mxu1 %v3358_v4  ;;  %v3546_v4 = vld [vmem:[%s6660_s10 + $0x588] sm:$0xff] }
0x1112   :  { %3638 = vmatmul.mubr.f32.vlgmr.msra.gmra.mxu1 %v3357_v62  ;;  %v3544_v62 = vld [vmem:[%s6660_s10 + $0x578] sm:$0xff] }
0x1113   :  { %3728 = vmatpush1.msra.mxu1 %v3527_v20  ;;  %v3543_v20 = vld [vmem:[%s6660_s10 + $0x570] sm:$0xff] }
0x1114   :  { %3729 = vmatprep.subr.mxu1 %v3526_v36  ;;  %v3541_v36 = vld [vmem:[%s6660_s10 + $0x560] sm:$0xff] }
0x1115   :  { %3730 = vmatpush1.msra.mxu1 %v3525_v38  ;;  %v3539_v38 = vld [vmem:[%s6660_s10 + $0x550] sm:$0xff] }
0x1116   :  { %3731 = vmatprep.subr.mxu1 %v3524_v40  ;;  %v3537_v40 = vld [vmem:[%s6660_s10 + $0x540] sm:$0xff] }
0x1117   :  { %3732 = vmatpush1.msra.mxu1 %v3523_v42  ;;  %v3535_v42 = vld [vmem:[%s6660_s10 + $0x530] sm:$0xff] }
0x1118   :  { %3733 = vmatprep.subr.mxu1 %v3522_v46  ;;  %v3533_v46 = vld [vmem:[%s6660_s10 + $0x520] sm:$0xff] }
0x1119   :  { %3734 = vmatpush1.msra.mxu1 %v3521_v48  ;;  %v3531_v48 = vld [vmem:[%s6660_s10 + $0x510] sm:$0xff] }
0x111a   :  { %3735 = vmatprep.subr.mxu1 %v3520_v29  ;;  %v3530_v29 = vld [vmem:[%s6660_s10 + $0x508] sm:$0xff] }
0x111b   :  { %3736 = vmatpush1.msra.mxu1 %v3519_v49  ;;  %v3529_v49 = vld [vmem:[%s6660_s10 + $0x500] sm:$0xff] }
0x111c   :  { %3737 = vmatprep.subr.mxu1 %v3518_v51  ;;  %v3346_v51 = vpop.f32.mrf.mxu0 }
0x111d   :  { %3738 = vmatpush1.msra.mxu1 %v3517_v50  ;;  %v3112_v50 = vsub.s32 5, %v4517_v6 }
0x111e   :  { %3739 = vmatprep.subr.mxu1 %v3516_v52  ;;  %v3108_v52 = vsub.s32 4, %v4517_v6 }
0x111f   :  { %3740 = vmatpush1.msra.mxu1 %v3515_v1  ;;  %v3348_v1 = vpop.f32.mrf.mxu0 }
0x1120   :  { %3741 = vmatprep.subr.mxu1 %v3514_v59  ;;  %v3100_v59 = vsub.s32 2, %v4517_v6 }
0x1121   :  { %3742 = vmatpush1.msra.mxu1 %v3513_v60  ;;  %v3113_v60 = vrot.slane %v6368_v55, %v3112_v50 }
0x1122   :  { %3743 = vmatprep.subr.mxu1 %v3512_v9  ;;  %v3104_v9 = vsub.s32 3, %v4517_v6 }
0x1123   :  { %3744 = vmatpush1.msra.mxu1 %v3511_v10 }
0x1124   :  { %3745 = vmatprep.subr.mxu1 %v3510_v12 }
0x1125   :  { %3746 = vmatpush1.msra.mxu1 %v3509_v13  ;;  %v3109_v13 = vrot.slane %v6368_v55, %v3108_v52 }
0x1126   :  { %3747 = vmatprep.subr.mxu1 %v3508_v22 }
0x1127   :  { %3748 = vmatpush1.msra.mxu1 %v3507_v57 }
0x1128   :  { %3749 = vmatprep.subr.mxu1 %v3506_v24  ;;  %v3101_v24 = vrot.slane %v6368_v55, %v3100_v59 }
0x1129   :  { %3750 = vmatpush1.msra.mxu1 %v3505_v18  ;;  %v3349_v18 = vadd.f32 %v3348_v1, %v3113_v60 }
0x112a   :  { %3751 = vmatprep.subr.mxu1 %v3504_v63 }
0x112b   :  { %3752 = vmatpush1.msra.mxu1 %v3503_v2  ;;  %v3105_v2 = vrot.slane %v6368_v55, %v3104_v9 }
0x112c   :  { %3753 = vmatprep.subr.mxu1 %v3502_v19 }
0x112d   :  { %3754 = vmatpush1.msra.mxu1 %v3501_v26 }
0x112e   :  { %3755 = vmatprep.subr.mxu1 %v3500_v44 }
0x112f   :  { %3756 = vmatpush1.msra.mxu1 %v3499_v43  ;;  %v3347_v43 = vadd.f32 %v3346_v51, %v3109_v13 }
0x1130   :  { %3757 = vmatprep.subr.mxu1 %v3498_v53 }
0x1131   :  { %3758 = vmatpush1.msra.mxu1 %v3497_v0 }
0x1132   :  { %3759 = vmatprep.subr.mxu1 %v3560_v3  ;;  %v3362_v3 = vmax.f32 %v3349_v18, 0.0 }
0x1133   :  { %3760 = vmatpush2.msra.mxu1 %v3559_v16 }
0x1134   :  { %3761 = vmatprep.subr.mxu1 %v3558_v23 }
0x1135   :  { %3762 = vmatpush2.msra.mxu1 %v3557_v58 }
0x1136   :  { %3763 = vmatprep.subr.mxu1 %v3556_v14  ;;  %v3361_v14 = vmax.f32 %v3347_v43, 0.0 }
0x1137   :  { %3764 = vmatpush2.msra.mxu1 %v3555_v28 }
0x1138   :  { %3765 = vmatprep.subr.mxu1 %v3554_v30 }
0x1139   :  { %3766 = vmatpush2.msra.mxu1 %v3553_v15 }
0x113a   :  { %3767 = vmatprep.subr.mxu1 %v3552_v31 }
0x113b   :  { %3768 = vmatpush2.msra.mxu1 %v3551_v21 }
0x113c   :  { %3769 = vmatprep.subr.mxu1 %v3550_v32 }
0x113d   :  { %3770 = vmatpush2.msra.mxu1 %v3549_v17 }
0x113e   :  { %3771 = vmatprep.subr.mxu1 %v3548_v5 }
0x113f   :  { %3772 = vmatpush2.msra.mxu1 %v3547_v33  ;;  %v3561_v33 = vld [vmem:[%s6661_s11] sm:$0x3]  ;;  %s4109_s11 = smov [#allocation4]  }
0x1140   :  { %3773 = vmatprep.subr.mxu1 %v3546_v4  ;;  %s3817_s29 = sshll.u32 %s4109_s11, 4  ;;  %s3818_s29 = int_to_ptr.vmem [resolvable:$true] %s3817_s29 }
0x1141   :  { %3774 = vmatpush2.msra.mxu1 %v3545_v25  ;;  %v3566_v25 = vrot.slane %v3561_v33, %v4523_v8  ;;  %s4085_s0 = scalar_lea.vmem %s3818_s29, 512  ;;  %p4090_p1 = scmp.lt.s32.totalorder %s3818_s29, %s3818_s29 }
0x1142   :  { %3775 = vmatprep.subr.mxu1 %v3544_v62  ;;  %p4086_p0 = scmp.ne.s32.totalorder %s3818_s29, %s4085_s0  ;;  %p4091_p2 = scmp.lt.s32.totalorder %s4085_s0, %s4085_s0 }
0x1143   :  { %3776 = vmatpush2.msra.mxu1 %v3543_v20  ;;  %v3570_v20 = vrot.slane %v3561_v33, %v4520_v7 }
0x1144   :  { %3777 = vmatprep.subr.mxu1 %v3542_v35  ;;  %p4092_p3 = por %p4091_p2, %p4090_p1 }
0x1145   :  { %3778 = vmatpush2.msra.mxu1 %v3541_v36 }
0x1146   :  { %3779 = vmatprep.subr.mxu1 %v3540_v37  ;;  %p4093_p4 = pnand %p4092_p3, %p4086_p0 }
0x1147   :  { %3780 = vmatpush2.msra.mxu1 %v3539_v38 }
0x1148   :  { %3781 = vmatprep.subr.mxu1 %v3538_v39 }
0x1149   :  { %3782 = vmatpush2.msra.mxu1 %v3537_v40 }
0x114a   :  { %3783 = vmatprep.subr.mxu1 %v3536_v41 }
0x114b   :  { %3784 = vmatpush2.msra.mxu1 %v3535_v42 }
0x114c   :  { %3785 = vmatprep.subr.mxu1 %v3534_v45 }
0x114d   :  { %3786 = vmatpush2.msra.mxu1 %v3533_v46 }
0x114e   :  { %3787 = vmatprep.subr.mxu1 %v3532_v47 }
0x114f   :  { %3788 = vmatpush2.msra.mxu1 %v3531_v48 }
0x1150   :  { %3789 = vmatprep.subr.mxu1 %v3530_v29 }
0x1151   :  { %3790 = vmatpush2.msra.mxu1 %v3529_v49 }
0x118a   :  { %v3198_v10 = vpop.f32.mrf.mxu1  ;;  %v3352_v12 = vpop.f32.mrf.mxu0 }
0x118b   :  { %v3199_v22 = vadd.f32 %v3198_v10, %v6381_v11  ;;  %v3353_v28 = vadd.f32 %v3352_v12, %v3109_v13 }
0x118c   :  { %v3200_v57 = vpop.f32.mrf.mxu1  ;;  %v3354_v19 = vpop.f32.mrf.mxu0 }
0x118d   :  { %v3201_v63 = vadd.f32 %v3200_v57, %v6388_v27  ;;  %v3363_v53 = vmax.f32 %v3199_v22, 0.0  ;;  %v3355_v16 = vadd.f32 %v3354_v19, %v3113_v60  ;;  %v3367_v32 = vmax.f32 %v3353_v28, 0.0 }
0x118e   :  { %v3269_v26 = vpop.f32.mrf.mxu1 }
0x118f   :  { %v3364_v44 = vmax.f32 %v3201_v63, 0.0  ;;  %v3270_v6 = vadd.f32 %v3269_v26, %v3101_v24  ;;  %v3368_v15 = vmax.f32 %v3355_v16, 0.0 }
0x1190   :  { %v3271_v0 = vpop.f32.mrf.mxu1 }
0x1191   :  { %v3272_v23 = vadd.f32 %v3271_v0, %v3105_v2  ;;  %3643 = vmatprep.mubr.f32.mxu1 %v3364_v44  ;;  %v3359_v27 = vmax.f32 %v3270_v6, 0.0 }
0x1192   :  { %v3275_v11 = vpop.f32.mrf.mxu1  ;;  %3644 = vmatmul.mubr.f32.gmra.mxu1 %v3363_v53 }
0x1193   :  { %v3360_v58 = vmax.f32 %v3272_v23, 0.0  ;;  %3791 = vmatprep.mubr.f32.mxu1 %v3362_v3  ;;  %v3276_v30 = vadd.f32 %v3275_v11, %v3101_v24 }
0x1194   :  { %v3277_v55 = vpop.f32.mrf.mxu1 }
0x1195   :  { %v3278_v31 = vadd.f32 %v3277_v55, %v3105_v2  ;;  %3714 = vmatprep.mubr.f32.mxu0 %v3360_v58  ;;  %v3365_v17 = vmax.f32 %v3276_v30, 0.0 }
0x1196   :  { %3715 = vmatmul.mubr.f32.vlgmr.msra.gmra.mxu0 %v3359_v27  ;;  %3792 = vmatmul.mubr.f32.vlgmr.msra.gmra.mxu1 %v3361_v14 }
0x1197   :  { %v3366_v21 = vmax.f32 %v3278_v31, 0.0  ;;  %3797 = vmatprep.mubr.f32.mxu1 %v3368_v15 }
0x1199   :  { %3720 = vmatprep.mubr.f32.mxu0 %v3366_v21 }
0x119a   :  { %3721 = vmatmul.mubr.f32.gmra.mxu0 %v3365_v17  ;;  %3798 = vmatmul.mubr.f32.gmra.mxu1 %v3367_v32 }
0x11d2   :  { %v3639_v5 = vpop.f32.mrf.mxu1 }
0x11d3   :  { %v3640_v36 = vadd.f32 %v3639_v5, %v3566_v25 }
0x11d4   :  { %v3641_v4 = vpop.f32.mrf.mxu1 }
0x11d5   :  { %v3642_v39 = vadd.f32 %v3641_v4, %v3570_v20 }
0x1252   :  { %v3645_v62 = vpop.f32.mrf.mxu1 }
0x1253   :  { %v3646_v45 = vadd.f32 %v3645_v62, %v3566_v25 }
0x1254   :  { %v3647_v35 = vpop.f32.mrf.mxu1 }
0x1255   :  { %v3648_v49 = vadd.f32 %v3647_v35, %v3570_v20 }
0x1256   :  { %v3716_v37 = vpop.f32.mrf.mxu0  ;;  %v3793_v38 = vpop.f32.mrf.mxu1 }
0x1257   :  { %v3717_v40 = vadd.f32 %v3716_v37, %v3640_v36 }
0x1258   :  { %v3718_v41 = vpop.f32.mrf.mxu0  ;;  %v3795_v42 = vpop.f32.mrf.mxu1 }
0x1259   :  { %v3794_v46 = vadd.f32 %v3793_v38, %v3717_v40  ;;  %v3719_v47 = vadd.f32 %v3718_v41, %v3642_v39 }
0x125a   :  { %v3722_v48 = vpop.f32.mrf.mxu0  ;;  %v3799_v29 = vpop.f32.mrf.mxu1 }
0x125b   :  { %v3804_v51 = vadd.f32 %v3794_v46, %v5516_v61  ;;  %v3796_v8 = vadd.f32 %v3795_v42, %v3719_v47  ;;  %v3723_v50 = vadd.f32 %v3722_v48, %v3646_v45 }
0x125c   :  { %v3724_v52 = vpop.f32.mrf.mxu0  ;;  %v3801_v60 = vpop.f32.mrf.mxu1 }
0x125d   :  { %3808 = vst [vmem:[#allocation4] sm:$0xff] %v3804_v51  ;;  %v3805_v7 = vadd.f32 %v3796_v8, %v5511_v34  ;;  %v3800_v1 = vadd.f32 %v3799_v29, %v3723_v50  ;;  %v3725_v59 = vadd.f32 %v3724_v52, %v3648_v49 }
0x125f   :  { %3809 = vst.msk [vmem:[#allocation4 + $0x8] sm:$0xff] %vm48_vm0, %v3805_v7  ;;  %v3806_v9 = vadd.f32 %v3800_v1, %v5560_v56  ;;  %v3802_v10 = vadd.f32 %v3801_v60, %v3725_v59 }
0x1261   :  { %3810 = vst [vmem:[#allocation4 + $0x10] sm:$0xff] %v3806_v9  ;;  %v3807_v12 = vadd.f32 %v3802_v10, %v5555_v54 }
0x1263   :  { %3811 = vst.msk [vmem:[#allocation4 + $0x18] sm:$0xff] %vm48_vm0, %v3807_v12 }
0x1264   :  { %4096 = shalt.err (!%p4093_p4)
}
0x1265   :  { %s4110_s5 = smov 256   ;;  %s4111_s30 = smov 16  }
0x1266   :  { %3823 = dma.vmem_to_hbm [thread:$0]  %s3818_s29, 512, %s6662_s12, [#allocation5], %s4110_s5, %s4110_s5, %s4111_s30  }
0x1267   :  { %4105 = dma.done.wait [#allocation5], 512  }
0x1268   :  { %4106 = vsyncadd [#allocation5], 4294966784 }
0x1269   :  { %3827 = vsyncpa [#allocation5], 1 }

</bundles_post_ra>
